<compile_context>
chip_gen: v7x
topology: tpu7x:2x2x1
jax: 0.10.0
libtpu: 0.0.40
codegen_flags: <defaults>
</compile_context>

<pallas_src>
import math

import jax
import jax.numpy as jnp
import numpy as np
from jax.experimental import pallas as pl
from jax.experimental.pallas import tpu as pltpu

# ---- model hyperparameters (from the PyTorch module) ----
N_EMBD = 384
BLOCK_SIZE = 32
N_HEAD = 1          # single head => head_size == n_embd
N_LAYER = 1
VOCAB_SIZE = 65     # len(chars) for tiny-shakespeare-style charset
V_PAD = 128         # lane-padded vocab (token-table rows / logit columns)
LN_EPS = 1e-5
NEG_INF = -1e30     # large finite mask value (avoids -inf/NaN risk)


def _layernorm(z, g, b):
    mu = jnp.mean(z, axis=-1, keepdims=True)
    var = jnp.mean((z - mu) ** 2, axis=-1, keepdims=True)
    return (z - mu) * jax.lax.rsqrt(var + LN_EPS) * g + b


def _mm_bf16(a_bf16, w_bf16):
    """bf16 operands into the MXU, f32 accumulation."""
    return jnp.dot(a_bf16, w_bf16, preferred_element_type=jnp.float32)


def gpt_kernel(idx_ref, tok_ref, pos_ref, bias_ref,
               wqkv_ref,
               wproj_ref, bproj_ref,
               ln1g_ref, ln1b_ref,
               w1_ref, b1_ref, w2_ref, b2_ref,
               ln2g_ref, ln2b_ref,
               lnfg_ref, lnfb_ref,
               wlm_ref, blm_ref,
               out_ref):
    R = out_ref.shape[0]            # fused rows this step = BCHUNK * T
    V = tok_ref.shape[0]            # lane-padded vocab (128)
    C = N_EMBD
    bf16 = jnp.bfloat16

    # ---- fused embedding: exact token gather as a one-hot matmul + positions ----
    idx = idx_ref[...]                                               # (R, 1) int32
    onehot = (jax.lax.broadcasted_iota(jnp.int32, (R, V), 1) == idx)
    x = jnp.dot(onehot.astype(jnp.float32), tok_ref[...],
                preferred_element_type=jnp.float32)                  # (R, C) f32
    x = x + pos_ref[...]

    # ---- single self-attention head over the fused rows ----
    x_bf = x.astype(bf16)                               # cast once, reuse 1x below
    qkv = _mm_bf16(x_bf, wqkv_ref[...])                 # (R, 3C) f32; [k | q | v]
    k = qkv[:, :C]
    q = qkv[:, C:2 * C]
    v = qkv[:, 2 * C:]

    scale = jnp.float32(1.0 / math.sqrt(N_EMBD))        # k.shape[-1] ** -0.5
    # q @ k^T without an explicit transpose: contract the last axes of both.
    wei = jax.lax.dot_general(q, k, (((1,), (1,)), ((), ())),
                              preferred_element_type=jnp.float32) * scale
    wei = wei + bias_ref[...]          # block-diagonal causal mask (0 / -1e30)
    wei = wei - jnp.max(wei, axis=-1, keepdims=True)
    wei = jnp.exp(wei)
    wei = wei * pl.reciprocal(jnp.sum(wei, axis=-1, keepdims=True), approx=False)
    sa = jnp.dot(wei, v, preferred_element_type=jnp.float32)         # (R, C)

    # MultiHeadAttention output projection
    y = _mm_bf16(sa.astype(bf16), wproj_ref[...]) + bproj_ref[...]

    # residual + ln1
    x = _layernorm(x + y, ln1g_ref[...], ln1b_ref[...])

    # feed-forward: Linear(C, 4C) -> ReLU -> Linear(4C, C)
    h = jnp.maximum(_mm_bf16(x.astype(bf16), w1_ref[...]) + b1_ref[...], 0.0)
    y = _mm_bf16(h.astype(bf16), w2_ref[...]) + b2_ref[...]

    # residual + ln2
    x = _layernorm(x + y, ln2g_ref[...], ln2b_ref[...])

    # final layernorm + lm head (lane-padded logits, unmasked vst)
    x = _layernorm(x, lnfg_ref[...], lnfb_ref[...])
    out_ref[...] = _mm_bf16(x.astype(bf16), wlm_ref[...]) + blm_ref[...]  # (R, V_PAD)


def _choose_bchunk(B, T):
    """Fuse enough batch elements per grid step to get ~128 MXU rows; must divide B."""
    bchunk = math.gcd(B, max(1, 128 // T))
    if (bchunk * T) % 8 != 0 and B // bchunk > 1:
        bchunk = B          # keep blocks sublane-aligned: fall back to one fused step
    return bchunk


def gpt_forward_padded(index, params):
    """index: (B, T) int32 token ids. Returns lane-padded logits (B, T, V_PAD) f32."""
    B, T = index.shape
    assert T <= BLOCK_SIZE
    C = N_EMBD

    bchunk = _choose_bchunk(B, T)
    num_chunks = B // bchunk
    R = bchunk * T

    idx2d = index.reshape(B * T, 1).astype(jnp.int32)

    # positional rows for one chunk (identical for every chunk -> resident in VMEM)
    pos_flat = jnp.tile(params["pos_table"][:T], (bchunk, 1))            # (R, C)

    # block-diagonal causal additive mask over the fused rows (static, host-built)
    r = np.arange(R)
    same_seq = (r[:, None] // T) == (r[None, :] // T)
    causal = (r[None, :] % T) <= (r[:, None] % T)
    attn_bias = jnp.asarray(
        np.where(same_seq & causal, 0.0, NEG_INF).astype(np.float32))    # (R, R)

    res = lambda i: (0, 0)                  # grid-invariant (resident) blocks
    w = lambda shape: pl.BlockSpec(shape, res)

    grid_spec = pltpu.PrefetchScalarGridSpec(
        num_scalar_prefetch=0,
        grid=(num_chunks,),
        in_specs=[
            pl.BlockSpec((R, 1), lambda i: (i, 0)),          # token ids (chunk rows)
            w((V_PAD, C)),                                    # token table (padded)
            w((R, C)),                                        # positional rows
            w((R, R)),                                        # attention mask bias
            w((C, 3 * C)),                                    # fused wk|wq|wv (bf16)
            w((C, C)), w((1, C)),                             # wproj (bf16), bproj
            w((1, C)), w((1, C)),                             # ln1 g, b
            w((C, 4 * C)), w((1, 4 * C)),                     # ffn w1 (bf16), b1
            w((4 * C, C)), w((1, C)),                         # ffn w2 (bf16), b2
            w((1, C)), w((1, C)),                             # ln2 g, b
            w((1, C)), w((1, C)),                             # ln_f g, b
            w((C, V_PAD)), w((1, V_PAD)),                     # lm head w (bf16), b
        ],
        out_specs=pl.BlockSpec((R, V_PAD), lambda i: (i, 0)),
    )

    logits = pl.pallas_call(
        gpt_kernel,
        grid_spec=grid_spec,
        out_shape=jax.ShapeDtypeStruct((B * T, V_PAD), jnp.float32),
        compiler_params=pltpu.CompilerParams(
            dimension_semantics=("parallel",),
            # bf16 weights keep even the double-buffered footprint (~8 MiB) well
            # under every generation's scoped-VMEM default; set the limit explicitly
            # so v5e's 16 MiB default is never the binding constraint.
            vmem_limit_bytes=32 * 1024 * 1024,
        ),
    )(idx2d, params["tok_table"], pos_flat, attn_bias,
      params["wqkv"],
      params["wproj"], params["bproj"],
      params["ln1g"], params["ln1b"],
      params["w1"], params["b1"], params["w2"], params["b2"],
      params["ln2g"], params["ln2b"],
      params["lnfg"], params["lnfb"],
      params["wlm"], params["blm"])

    return logits.reshape(B, T, V_PAD)


def gpt_forward(index, params):
    # Slice to the real vocab only at the final consumer (lane width 65 forces
    # masked partial stores); gpt_forward_padded is the fast path.
    return gpt_forward_padded(index, params)[:, :, :VOCAB_SIZE]


def make_params(key):
    """Deterministic init mirroring _init_weights: Linear/Embedding ~ N(0, 0.02),
    biases 0, LayerNorm gamma=1/beta=0. Big matmul weights stored in bfloat16."""
    C = N_EMBD
    keys = jax.random.split(key, 9)
    std = 0.02
    bf16 = jnp.bfloat16

    def normal(k, shape):
        return std * jax.random.normal(k, shape, dtype=jnp.float32)

    wk = normal(keys[2], (C, C))
    wq = normal(keys[3], (C, C))
    wv = normal(keys[4], (C, C))

    params = {
        # embeddings (f32; token table lane-padded to V_PAD rows, extras zero)
        "tok_table": jnp.zeros((V_PAD, C), jnp.float32).at[:VOCAB_SIZE].set(
            normal(keys[0], (VOCAB_SIZE, C))),
        "pos_table": normal(keys[1], (BLOCK_SIZE, C)),
        # attention (weights stored transposed (in, out); K/Q/V fused, bf16)
        "wqkv": jnp.concatenate([wk, wq, wv], axis=1).astype(bf16),    # (C, 3C)
        "wproj": normal(keys[5], (C, C)).astype(bf16),
        "bproj": jnp.zeros((1, C), jnp.float32),
        # layernorms (f32)
        "ln1g": jnp.ones((1, C), jnp.float32), "ln1b": jnp.zeros((1, C), jnp.float32),
        "ln2g": jnp.ones((1, C), jnp.float32), "ln2b": jnp.zeros((1, C), jnp.float32),
        "lnfg": jnp.ones((1, C), jnp.float32), "lnfb": jnp.zeros((1, C), jnp.float32),
        # feed-forward (bf16 weights, f32 biases)
        "w1": normal(keys[6], (C, 4 * C)).astype(bf16),
        "b1": jnp.zeros((1, 4 * C), jnp.float32),
        "w2": normal(keys[7], (4 * C, C)).astype(bf16),
        "b2": jnp.zeros((1, C), jnp.float32),
        # lm head lane-padded to V_PAD columns (extras zero, sliced by the consumer)
        "wlm": jnp.zeros((C, V_PAD), jnp.float32).at[:, :VOCAB_SIZE].set(
            normal(keys[8], (C, VOCAB_SIZE))).astype(bf16),
        "blm": jnp.zeros((1, V_PAD), jnp.float32),
    }
    return params


def gpt_forward_ref(index, params):
    """Pure-JAX reference mirroring the kernel's mixed precision
    (bf16 weights + bf16 MXU inputs, f32 accumulation / layernorm / softmax)."""
    B, T = index.shape
    f32, bf16 = jnp.float32, jnp.bfloat16
    C = N_EMBD

    x = params["tok_table"][index] + params["pos_table"][:T][None]       # (B,T,C) f32

    def mm(a, w):
        return jnp.einsum("...c,cd->...d", a.astype(bf16), w,
                          preferred_element_type=f32)

    wk = params["wqkv"][:, :C]
    wq = params["wqkv"][:, C:2 * C]
    wv = params["wqkv"][:, 2 * C:]
    k = mm(x, wk); q = mm(x, wq); v = mm(x, wv)
    wei = jnp.einsum("btc,bsc->bts", q, k, preferred_element_type=f32,
                     precision=jax.lax.Precision.HIGHEST) * (N_EMBD ** -0.5)
    mask = np.tril(np.ones((T, T), bool))
    wei = jnp.where(mask[None], wei, NEG_INF)
    wei = jax.nn.softmax(wei, axis=-1)
    sa = jnp.einsum("bts,bsc->btc", wei, v, preferred_element_type=f32,
                    precision=jax.lax.Precision.HIGHEST)
    y = mm(sa, params["wproj"]) + params["bproj"]

    x = _layernorm(x + y, params["ln1g"], params["ln1b"])
    h = jax.nn.relu(mm(x, params["w1"]) + params["b1"])
    y = mm(h, params["w2"]) + params["b2"]
    x = _layernorm(x + y, params["ln2g"], params["ln2b"])
    x = _layernorm(x, params["lnfg"], params["lnfb"])
    logits = mm(x, params["wlm"]) + params["blm"]
    return logits[:, :, :VOCAB_SIZE]


if __name__ == "__main__":
    key = jax.random.PRNGKey(0)
    pkey, ikey = jax.random.split(key)
    params = make_params(pkey)

    B, T = 2, 8
    index = jax.random.randint(ikey, (B, T), 0, VOCAB_SIZE, dtype=jnp.int32)

    logits_pad = jax.block_until_ready(gpt_forward_padded(index, params))
    ref = jax.block_until_ready(gpt_forward_ref(index, params))

    assert logits_pad.shape == (B, T, V_PAD), logits_pad.shape
    np.testing.assert_allclose(np.asarray(logits_pad)[..., :VOCAB_SIZE],
                               np.asarray(ref), rtol=2e-3, atol=2e-3)
    print("KERNEL_OK")
</pallas_src>

<mosaic_0001>
module attributes {stable_mosaic.version = 11 : i64} {
  func.func @gpt_kernel(%arg0: i32, %arg1: memref<16x1xi32, #tpu.memory_space<vmem>>, %arg2: memref<128x384xf32, #tpu.memory_space<vmem>>, %arg3: memref<16x384xf32, #tpu.memory_space<vmem>>, %arg4: memref<16x16xf32, #tpu.memory_space<vmem>>, %arg5: memref<384x1152xbf16, #tpu.memory_space<vmem>>, %arg6: memref<384x384xbf16, #tpu.memory_space<vmem>>, %arg7: memref<1x384xf32, #tpu.memory_space<vmem>>, %arg8: memref<1x384xf32, #tpu.memory_space<vmem>>, %arg9: memref<1x384xf32, #tpu.memory_space<vmem>>, %arg10: memref<384x1536xbf16, #tpu.memory_space<vmem>>, %arg11: memref<1x1536xf32, #tpu.memory_space<vmem>>, %arg12: memref<1536x384xbf16, #tpu.memory_space<vmem>>, %arg13: memref<1x384xf32, #tpu.memory_space<vmem>>, %arg14: memref<1x384xf32, #tpu.memory_space<vmem>>, %arg15: memref<1x384xf32, #tpu.memory_space<vmem>>, %arg16: memref<1x384xf32, #tpu.memory_space<vmem>>, %arg17: memref<1x384xf32, #tpu.memory_space<vmem>>, %arg18: memref<384x128xbf16, #tpu.memory_space<vmem>>, %arg19: memref<1x128xf32, #tpu.memory_space<vmem>>, %arg20: memref<16x128xf32, #tpu.memory_space<vmem>>) attributes {dimension_semantics = [#tpu.dimension_semantics<parallel>], iteration_bounds = array<i64: 1>, scalar_prefetch = 0 : i64, scratch_operands = 0 : i64, tpu.core_type = #tpu.core_type<tc>, window_params = [{transform_indices = @transform_0, window_bounds = array<i64: 16, 1>}, {pipeline_mode = #tpu.pipeline_mode<synchronous>, transform_indices = @transform_1, window_bounds = array<i64: 128, 384>}, {pipeline_mode = #tpu.pipeline_mode<synchronous>, transform_indices = @transform_2, window_bounds = array<i64: 16, 384>}, {pipeline_mode = #tpu.pipeline_mode<synchronous>, transform_indices = @transform_3, window_bounds = array<i64: 16, 16>}, {pipeline_mode = #tpu.pipeline_mode<synchronous>, transform_indices = @transform_4, window_bounds = array<i64: 384, 1152>}, {pipeline_mode = #tpu.pipeline_mode<synchronous>, transform_indices = @transform_5, window_bounds = array<i64: 384, 384>}, {pipeline_mode = #tpu.pipeline_mode<synchronous>, transform_indices = @transform_6, window_bounds = array<i64: 1, 384>}, {pipeline_mode = #tpu.pipeline_mode<synchronous>, transform_indices = @transform_7, window_bounds = array<i64: 1, 384>}, {pipeline_mode = #tpu.pipeline_mode<synchronous>, transform_indices = @transform_8, window_bounds = array<i64: 1, 384>}, {pipeline_mode = #tpu.pipeline_mode<synchronous>, transform_indices = @transform_9, window_bounds = array<i64: 384, 1536>}, {pipeline_mode = #tpu.pipeline_mode<synchronous>, transform_indices = @transform_10, window_bounds = array<i64: 1, 1536>}, {pipeline_mode = #tpu.pipeline_mode<synchronous>, transform_indices = @transform_11, window_bounds = array<i64: 1536, 384>}, {pipeline_mode = #tpu.pipeline_mode<synchronous>, transform_indices = @transform_12, window_bounds = array<i64: 1, 384>}, {pipeline_mode = #tpu.pipeline_mode<synchronous>, transform_indices = @transform_13, window_bounds = array<i64: 1, 384>}, {pipeline_mode = #tpu.pipeline_mode<synchronous>, transform_indices = @transform_14, window_bounds = array<i64: 1, 384>}, {pipeline_mode = #tpu.pipeline_mode<synchronous>, transform_indices = @transform_15, window_bounds = array<i64: 1, 384>}, {pipeline_mode = #tpu.pipeline_mode<synchronous>, transform_indices = @transform_16, window_bounds = array<i64: 1, 384>}, {pipeline_mode = #tpu.pipeline_mode<synchronous>, transform_indices = @transform_17, window_bounds = array<i64: 384, 128>}, {pipeline_mode = #tpu.pipeline_mode<synchronous>, transform_indices = @transform_18, window_bounds = array<i64: 1, 128>}, {transform_indices = @transform_19, window_bounds = array<i64: 16, 128>}]} {
    %c0 = arith.constant 0 : index
    %c0_0 = arith.constant 0 : index
    %0 = vector.load %arg1[%c0, %c0_0] : memref<16x1xi32, #tpu.memory_space<vmem>>, vector<16x1xi32>
    %1 = tpu.iota {dimensions = array<i32: 1>} : vector<16x128xi32>
    %2 = vector.broadcast %0 : vector<16x1xi32> to vector<16x128xi32>
    %3 = arith.cmpi eq, %1, %2 : vector<16x128xi32>
    %4 = arith.extui %3 : vector<16x128xi1> to vector<16x128xi32>
    %5 = arith.sitofp %4 : vector<16x128xi32> to vector<16x128xf32>
    %c0_1 = arith.constant 0 : index
    %c0_2 = arith.constant 0 : index
    %6 = vector.load %arg2[%c0_1, %c0_2] : memref<128x384xf32, #tpu.memory_space<vmem>>, vector<128x384xf32>
    %cst = arith.constant dense<0.000000e+00> : vector<16x384xf32>
    %7 = tpu.matmul %5, %6, %cst {dimension_numbers = #tpu.dot_dimension_numbers<[1], [0], [0], [1], [0, 0, 1, 1], [], []>} : vector<16x128xf32>, vector<128x384xf32>, vector<16x384xf32> -> vector<16x384xf32>
    %c0_3 = arith.constant 0 : index
    %c0_4 = arith.constant 0 : index
    %8 = vector.load %arg3[%c0_3, %c0_4] : memref<16x384xf32, #tpu.memory_space<vmem>>, vector<16x384xf32>
    %9 = arith.addf %7, %8 : vector<16x384xf32>
    %10 = arith.truncf %9 : vector<16x384xf32> to vector<16x384xbf16>
    %c0_5 = arith.constant 0 : index
    %c0_6 = arith.constant 0 : index
    %11 = vector.load %arg5[%c0_5, %c0_6] : memref<384x1152xbf16, #tpu.memory_space<vmem>>, vector<384x1152xbf16>
    %cst_7 = arith.constant dense<0.000000e+00> : vector<16x1152xf32>
    %12 = tpu.matmul %10, %11, %cst_7 {dimension_numbers = #tpu.dot_dimension_numbers<[1], [0], [0], [1], [0, 0, 1, 1], [], []>} : vector<16x384xbf16>, vector<384x1152xbf16>, vector<16x1152xf32> -> vector<16x1152xf32>
    %13 = vector.extract_strided_slice %12 {offsets = [0, 0], sizes = [16, 384], strides = [1, 1]} : vector<16x1152xf32> to vector<16x384xf32>
    %14 = vector.extract_strided_slice %12 {offsets = [0, 384], sizes = [16, 384], strides = [1, 1]} : vector<16x1152xf32> to vector<16x384xf32>
    %15 = vector.extract_strided_slice %12 {offsets = [0, 768], sizes = [16, 384], strides = [1, 1]} : vector<16x1152xf32> to vector<16x384xf32>
    %cst_8 = arith.constant dense<0.000000e+00> : vector<16x16xf32>
    %16 = tpu.matmul %14, %13, %cst_8 {dimension_numbers = #tpu.dot_dimension_numbers<[1], [1], [0], [0], [0, 0, 1, 0], [], []>} : vector<16x384xf32>, vector<16x384xf32>, vector<16x16xf32> -> vector<16x16xf32>
    %cst_9 = arith.constant 0.0510310382 : f32
    %17 = vector.broadcast %cst_9 : f32 to vector<16x16xf32>
    %18 = arith.mulf %16, %17 : vector<16x16xf32>
    %c0_10 = arith.constant 0 : index
    %c0_11 = arith.constant 0 : index
    %19 = vector.load %arg4[%c0_10, %c0_11] : memref<16x16xf32, #tpu.memory_space<vmem>>, vector<16x16xf32>
    %20 = arith.addf %18, %19 : vector<16x16xf32>
    %cst_12 = arith.constant dense<0xFF800000> : vector<16xf32>
    %21 = vector.multi_reduction <maximumf>, %20, %cst_12 [1] : vector<16x16xf32> to vector<16xf32>
    %22 = vector.shape_cast %21 : vector<16xf32> to vector<16x1xf32>
    %23 = vector.broadcast %22 : vector<16x1xf32> to vector<16x16xf32>
    %24 = arith.subf %20, %23 : vector<16x16xf32>
    %25 = math.exp %24 : vector<16x16xf32>
    %cst_13 = arith.constant dense<0.000000e+00> : vector<16xf32>
    %26 = vector.multi_reduction <add>, %25, %cst_13 [1] : vector<16x16xf32> to vector<16xf32>
    %27 = vector.shape_cast %26 : vector<16xf32> to vector<16x1xf32>
    %28 = tpu.reciprocal %27 : vector<16x1xf32> -> vector<16x1xf32>
    %29 = vector.broadcast %28 : vector<16x1xf32> to vector<16x16xf32>
    %30 = arith.mulf %25, %29 : vector<16x16xf32>
    %cst_14 = arith.constant dense<0.000000e+00> : vector<16x384xf32>
    %31 = tpu.matmul %30, %15, %cst_14 {dimension_numbers = #tpu.dot_dimension_numbers<[1], [0], [0], [1], [0, 0, 1, 1], [], []>} : vector<16x16xf32>, vector<16x384xf32>, vector<16x384xf32> -> vector<16x384xf32>
    %32 = arith.truncf %31 : vector<16x384xf32> to vector<16x384xbf16>
    %c0_15 = arith.constant 0 : index
    %c0_16 = arith.constant 0 : index
    %33 = vector.load %arg6[%c0_15, %c0_16] : memref<384x384xbf16, #tpu.memory_space<vmem>>, vector<384x384xbf16>
    %cst_17 = arith.constant dense<0.000000e+00> : vector<16x384xf32>
    %34 = tpu.matmul %32, %33, %cst_17 {dimension_numbers = #tpu.dot_dimension_numbers<[1], [0], [0], [1], [0, 0, 1, 1], [], []>} : vector<16x384xbf16>, vector<384x384xbf16>, vector<16x384xf32> -> vector<16x384xf32>
    %c0_18 = arith.constant 0 : index
    %c0_19 = arith.constant 0 : index
    %35 = vector.load %arg7[%c0_18, %c0_19] : memref<1x384xf32, #tpu.memory_space<vmem>>, vector<1x384xf32>
    %36 = vector.broadcast %35 : vector<1x384xf32> to vector<16x384xf32>
    %37 = arith.addf %34, %36 : vector<16x384xf32>
    %38 = arith.addf %9, %37 : vector<16x384xf32>
    %c0_20 = arith.constant 0 : index
    %c0_21 = arith.constant 0 : index
    %39 = vector.load %arg8[%c0_20, %c0_21] : memref<1x384xf32, #tpu.memory_space<vmem>>, vector<1x384xf32>
    %c0_22 = arith.constant 0 : index
    %c0_23 = arith.constant 0 : index
    %40 = vector.load %arg9[%c0_22, %c0_23] : memref<1x384xf32, #tpu.memory_space<vmem>>, vector<1x384xf32>
    %cst_24 = arith.constant dense<0.000000e+00> : vector<16xf32>
    %41 = vector.multi_reduction <add>, %38, %cst_24 [1] : vector<16x384xf32> to vector<16xf32>
    %42 = vector.shape_cast %41 : vector<16xf32> to vector<16x1xf32>
    %cst_25 = arith.constant 3.840000e+02 : f32
    %43 = vector.broadcast %cst_25 : f32 to vector<16x1xf32>
    %44 = arith.divf %42, %43 : vector<16x1xf32>
    %45 = vector.broadcast %44 : vector<16x1xf32> to vector<16x384xf32>
    %46 = arith.subf %38, %45 : vector<16x384xf32>
    %47 = arith.mulf %46, %46 : vector<16x384xf32>
    %cst_26 = arith.constant dense<0.000000e+00> : vector<16xf32>
    %48 = vector.multi_reduction <add>, %47, %cst_26 [1] : vector<16x384xf32> to vector<16xf32>
    %49 = vector.shape_cast %48 : vector<16xf32> to vector<16x1xf32>
    %cst_27 = arith.constant 3.840000e+02 : f32
    %50 = vector.broadcast %cst_27 : f32 to vector<16x1xf32>
    %51 = arith.divf %49, %50 : vector<16x1xf32>
    %52 = vector.broadcast %44 : vector<16x1xf32> to vector<16x384xf32>
    %53 = arith.subf %38, %52 : vector<16x384xf32>
    %cst_28 = arith.constant 9.99999974E-6 : f32
    %54 = vector.broadcast %cst_28 : f32 to vector<16x1xf32>
    %55 = arith.addf %51, %54 : vector<16x1xf32>
    %56 = math.rsqrt %55 : vector<16x1xf32>
    %57 = vector.broadcast %56 : vector<16x1xf32> to vector<16x384xf32>
    %58 = arith.mulf %53, %57 : vector<16x384xf32>
    %59 = vector.broadcast %39 : vector<1x384xf32> to vector<16x384xf32>
    %60 = arith.mulf %58, %59 : vector<16x384xf32>
    %61 = vector.broadcast %40 : vector<1x384xf32> to vector<16x384xf32>
    %62 = arith.addf %60, %61 : vector<16x384xf32>
    %63 = arith.truncf %62 : vector<16x384xf32> to vector<16x384xbf16>
    %c0_29 = arith.constant 0 : index
    %c0_30 = arith.constant 0 : index
    %64 = vector.load %arg10[%c0_29, %c0_30] : memref<384x1536xbf16, #tpu.memory_space<vmem>>, vector<384x1536xbf16>
    %cst_31 = arith.constant dense<0.000000e+00> : vector<16x1536xf32>
    %65 = tpu.matmul %63, %64, %cst_31 {dimension_numbers = #tpu.dot_dimension_numbers<[1], [0], [0], [1], [0, 0, 1, 1], [], []>} : vector<16x384xbf16>, vector<384x1536xbf16>, vector<16x1536xf32> -> vector<16x1536xf32>
    %c0_32 = arith.constant 0 : index
    %c0_33 = arith.constant 0 : index
    %66 = vector.load %arg11[%c0_32, %c0_33] : memref<1x1536xf32, #tpu.memory_space<vmem>>, vector<1x1536xf32>
    %67 = vector.broadcast %66 : vector<1x1536xf32> to vector<16x1536xf32>
    %68 = arith.addf %65, %67 : vector<16x1536xf32>
    %cst_34 = arith.constant 0.000000e+00 : f32
    %69 = vector.broadcast %cst_34 : f32 to vector<16x1536xf32>
    %70 = arith.maximumf %68, %69 : vector<16x1536xf32>
    %71 = arith.truncf %70 : vector<16x1536xf32> to vector<16x1536xbf16>
    %c0_35 = arith.constant 0 : index
    %c0_36 = arith.constant 0 : index
    %72 = vector.load %arg12[%c0_35, %c0_36] : memref<1536x384xbf16, #tpu.memory_space<vmem>>, vector<1536x384xbf16>
    %cst_37 = arith.constant dense<0.000000e+00> : vector<16x384xf32>
    %73 = tpu.matmul %71, %72, %cst_37 {dimension_numbers = #tpu.dot_dimension_numbers<[1], [0], [0], [1], [0, 0, 1, 1], [], []>} : vector<16x1536xbf16>, vector<1536x384xbf16>, vector<16x384xf32> -> vector<16x384xf32>
    %c0_38 = arith.constant 0 : index
    %c0_39 = arith.constant 0 : index
    %74 = vector.load %arg13[%c0_38, %c0_39] : memref<1x384xf32, #tpu.memory_space<vmem>>, vector<1x384xf32>
    %75 = vector.broadcast %74 : vector<1x384xf32> to vector<16x384xf32>
    %76 = arith.addf %73, %75 : vector<16x384xf32>
    %77 = arith.addf %62, %76 : vector<16x384xf32>
    %c0_40 = arith.constant 0 : index
    %c0_41 = arith.constant 0 : index
    %78 = vector.load %arg14[%c0_40, %c0_41] : memref<1x384xf32, #tpu.memory_space<vmem>>, vector<1x384xf32>
    %c0_42 = arith.constant 0 : index
    %c0_43 = arith.constant 0 : index
    %79 = vector.load %arg15[%c0_42, %c0_43] : memref<1x384xf32, #tpu.memory_space<vmem>>, vector<1x384xf32>
    %cst_44 = arith.constant dense<0.000000e+00> : vector<16xf32>
    %80 = vector.multi_reduction <add>, %77, %cst_44 [1] : vector<16x384xf32> to vector<16xf32>
    %81 = vector.shape_cast %80 : vector<16xf32> to vector<16x1xf32>
    %cst_45 = arith.constant 3.840000e+02 : f32
    %82 = vector.broadcast %cst_45 : f32 to vector<16x1xf32>
    %83 = arith.divf %81, %82 : vector<16x1xf32>
    %84 = vector.broadcast %83 : vector<16x1xf32> to vector<16x384xf32>
    %85 = arith.subf %77, %84 : vector<16x384xf32>
    %86 = arith.mulf %85, %85 : vector<16x384xf32>
    %cst_46 = arith.constant dense<0.000000e+00> : vector<16xf32>
    %87 = vector.multi_reduction <add>, %86, %cst_46 [1] : vector<16x384xf32> to vector<16xf32>
    %88 = vector.shape_cast %87 : vector<16xf32> to vector<16x1xf32>
    %cst_47 = arith.constant 3.840000e+02 : f32
    %89 = vector.broadcast %cst_47 : f32 to vector<16x1xf32>
    %90 = arith.divf %88, %89 : vector<16x1xf32>
    %91 = vector.broadcast %83 : vector<16x1xf32> to vector<16x384xf32>
    %92 = arith.subf %77, %91 : vector<16x384xf32>
    %cst_48 = arith.constant 9.99999974E-6 : f32
    %93 = vector.broadcast %cst_48 : f32 to vector<16x1xf32>
    %94 = arith.addf %90, %93 : vector<16x1xf32>
    %95 = math.rsqrt %94 : vector<16x1xf32>
    %96 = vector.broadcast %95 : vector<16x1xf32> to vector<16x384xf32>
    %97 = arith.mulf %92, %96 : vector<16x384xf32>
    %98 = vector.broadcast %78 : vector<1x384xf32> to vector<16x384xf32>
    %99 = arith.mulf %97, %98 : vector<16x384xf32>
    %100 = vector.broadcast %79 : vector<1x384xf32> to vector<16x384xf32>
    %101 = arith.addf %99, %100 : vector<16x384xf32>
    %c0_49 = arith.constant 0 : index
    %c0_50 = arith.constant 0 : index
    %102 = vector.load %arg16[%c0_49, %c0_50] : memref<1x384xf32, #tpu.memory_space<vmem>>, vector<1x384xf32>
    %c0_51 = arith.constant 0 : index
    %c0_52 = arith.constant 0 : index
    %103 = vector.load %arg17[%c0_51, %c0_52] : memref<1x384xf32, #tpu.memory_space<vmem>>, vector<1x384xf32>
    %cst_53 = arith.constant dense<0.000000e+00> : vector<16xf32>
    %104 = vector.multi_reduction <add>, %101, %cst_53 [1] : vector<16x384xf32> to vector<16xf32>
    %105 = vector.shape_cast %104 : vector<16xf32> to vector<16x1xf32>
    %cst_54 = arith.constant 3.840000e+02 : f32
    %106 = vector.broadcast %cst_54 : f32 to vector<16x1xf32>
    %107 = arith.divf %105, %106 : vector<16x1xf32>
    %108 = vector.broadcast %107 : vector<16x1xf32> to vector<16x384xf32>
    %109 = arith.subf %101, %108 : vector<16x384xf32>
    %110 = arith.mulf %109, %109 : vector<16x384xf32>
    %cst_55 = arith.constant dense<0.000000e+00> : vector<16xf32>
    %111 = vector.multi_reduction <add>, %110, %cst_55 [1] : vector<16x384xf32> to vector<16xf32>
    %112 = vector.shape_cast %111 : vector<16xf32> to vector<16x1xf32>
    %cst_56 = arith.constant 3.840000e+02 : f32
    %113 = vector.broadcast %cst_56 : f32 to vector<16x1xf32>
    %114 = arith.divf %112, %113 : vector<16x1xf32>
    %115 = vector.broadcast %107 : vector<16x1xf32> to vector<16x384xf32>
    %116 = arith.subf %101, %115 : vector<16x384xf32>
    %cst_57 = arith.constant 9.99999974E-6 : f32
    %117 = vector.broadcast %cst_57 : f32 to vector<16x1xf32>
    %118 = arith.addf %114, %117 : vector<16x1xf32>
    %119 = math.rsqrt %118 : vector<16x1xf32>
    %120 = vector.broadcast %119 : vector<16x1xf32> to vector<16x384xf32>
    %121 = arith.mulf %116, %120 : vector<16x384xf32>
    %122 = vector.broadcast %102 : vector<1x384xf32> to vector<16x384xf32>
    %123 = arith.mulf %121, %122 : vector<16x384xf32>
    %124 = vector.broadcast %103 : vector<1x384xf32> to vector<16x384xf32>
    %125 = arith.addf %123, %124 : vector<16x384xf32>
    %126 = arith.truncf %125 : vector<16x384xf32> to vector<16x384xbf16>
    %c0_58 = arith.constant 0 : index
    %c0_59 = arith.constant 0 : index
    %127 = vector.load %arg18[%c0_58, %c0_59] : memref<384x128xbf16, #tpu.memory_space<vmem>>, vector<384x128xbf16>
    %cst_60 = arith.constant dense<0.000000e+00> : vector<16x128xf32>
    %128 = tpu.matmul %126, %127, %cst_60 {dimension_numbers = #tpu.dot_dimension_numbers<[1], [0], [0], [1], [0, 0, 1, 1], [], []>} : vector<16x384xbf16>, vector<384x128xbf16>, vector<16x128xf32> -> vector<16x128xf32>
    %c0_61 = arith.constant 0 : index
    %c0_62 = arith.constant 0 : index
    %129 = vector.load %arg19[%c0_61, %c0_62] : memref<1x128xf32, #tpu.memory_space<vmem>>, vector<1x128xf32>
    %130 = vector.broadcast %129 : vector<1x128xf32> to vector<16x128xf32>
    %131 = arith.addf %128, %130 : vector<16x128xf32>
    %c0_63 = arith.constant 0 : index
    %c0_64 = arith.constant 0 : index
    %132 = vector.load %arg20[%c0_63, %c0_64] : memref<16x128xf32, #tpu.memory_space<vmem>>, vector<16x128xf32>
    tpu.vector_store %arg20[%c0_63, %c0_64], %131 {strides = array<i32>} : memref<16x128xf32, #tpu.memory_space<vmem>>, vector<16x128xf32>,
    return
  }
  func.func @transform_0(%arg0: i32) -> (i32, i32) {
    %c0_i32 = arith.constant 0 : i32
    %c0_i32_0 = arith.constant 0 : i32
    return %arg0, %c0_i32 : i32, i32
  }
  func.func @transform_1(%arg0: i32) -> (i32, i32) {
    %c0_i32 = arith.constant 0 : i32
    %c0_i32_0 = arith.constant 0 : i32
    %c0_i32_1 = arith.constant 0 : i32
    return %c0_i32, %c0_i32_0 : i32, i32
  }
  func.func @transform_2(%arg0: i32) -> (i32, i32) {
    %c0_i32 = arith.constant 0 : i32
    %c0_i32_0 = arith.constant 0 : i32
    %c0_i32_1 = arith.constant 0 : i32
    return %c0_i32, %c0_i32_0 : i32, i32
  }
  func.func @transform_3(%arg0: i32) -> (i32, i32) {
    %c0_i32 = arith.constant 0 : i32
    %c0_i32_0 = arith.constant 0 : i32
    %c0_i32_1 = arith.constant 0 : i32
    return %c0_i32, %c0_i32_0 : i32, i32
  }
  func.func @transform_4(%arg0: i32) -> (i32, i32) {
    %c0_i32 = arith.constant 0 : i32
    %c0_i32_0 = arith.constant 0 : i32
    %c0_i32_1 = arith.constant 0 : i32
    return %c0_i32, %c0_i32_0 : i32, i32
  }
  func.func @transform_5(%arg0: i32) -> (i32, i32) {
    %c0_i32 = arith.constant 0 : i32
    %c0_i32_0 = arith.constant 0 : i32
    %c0_i32_1 = arith.constant 0 : i32
    return %c0_i32, %c0_i32_0 : i32, i32
  }
  func.func @transform_6(%arg0: i32) -> (i32, i32) {
    %c0_i32 = arith.constant 0 : i32
    %c0_i32_0 = arith.constant 0 : i32
    %c0_i32_1 = arith.constant 0 : i32
    return %c0_i32, %c0_i32_0 : i32, i32
  }
  func.func @transform_7(%arg0: i32) -> (i32, i32) {
    %c0_i32 = arith.constant 0 : i32
    %c0_i32_0 = arith.constant 0 : i32
    %c0_i32_1 = arith.constant 0 : i32
    return %c0_i32, %c0_i32_0 : i32, i32
  }
  func.func @transform_8(%arg0: i32) -> (i32, i32) {
    %c0_i32 = arith.constant 0 : i32
    %c0_i32_0 = arith.constant 0 : i32
    %c0_i32_1 = arith.constant 0 : i32
    return %c0_i32, %c0_i32_0 : i32, i32
  }
  func.func @transform_9(%arg0: i32) -> (i32, i32) {
    %c0_i32 = arith.constant 0 : i32
    %c0_i32_0 = arith.constant 0 : i32
    %c0_i32_1 = arith.constant 0 : i32
    return %c0_i32, %c0_i32_0 : i32, i32
  }
  func.func @transform_10(%arg0: i32) -> (i32, i32) {
    %c0_i32 = arith.constant 0 : i32
    %c0_i32_0 = arith.constant 0 : i32
    %c0_i32_1 = arith.constant 0 : i32
    return %c0_i32, %c0_i32_0 : i32, i32
  }
  func.func @transform_11(%arg0: i32) -> (i32, i32) {
    %c0_i32 = arith.constant 0 : i32
    %c0_i32_0 = arith.constant 0 : i32
    %c0_i32_1 = arith.constant 0 : i32
    return %c0_i32, %c0_i32_0 : i32, i32
  }
  func.func @transform_12(%arg0: i32) -> (i32, i32) {
    %c0_i32 = arith.constant 0 : i32
    %c0_i32_0 = arith.constant 0 : i32
    %c0_i32_1 = arith.constant 0 : i32
    return %c0_i32, %c0_i32_0 : i32, i32
  }
  func.func @transform_13(%arg0: i32) -> (i32, i32) {
    %c0_i32 = arith.constant 0 : i32
    %c0_i32_0 = arith.constant 0 : i32
    %c0_i32_1 = arith.constant 0 : i32
    return %c0_i32, %c0_i32_0 : i32, i32
  }
  func.func @transform_14(%arg0: i32) -> (i32, i32) {
    %c0_i32 = arith.constant 0 : i32
    %c0_i32_0 = arith.constant 0 : i32
    %c0_i32_1 = arith.constant 0 : i32
    return %c0_i32, %c0_i32_0 : i32, i32
  }
  func.func @transform_15(%arg0: i32) -> (i32, i32) {
    %c0_i32 = arith.constant 0 : i32
    %c0_i32_0 = arith.constant 0 : i32
    %c0_i32_1 = arith.constant 0 : i32
    return %c0_i32, %c0_i32_0 : i32, i32
  }
  func.func @transform_16(%arg0: i32) -> (i32, i32) {
    %c0_i32 = arith.constant 0 : i32
    %c0_i32_0 = arith.constant 0 : i32
    %c0_i32_1 = arith.constant 0 : i32
    return %c0_i32, %c0_i32_0 : i32, i32
  }
  func.func @transform_17(%arg0: i32) -> (i32, i32) {
    %c0_i32 = arith.constant 0 : i32
    %c0_i32_0 = arith.constant 0 : i32
    %c0_i32_1 = arith.constant 0 : i32
    return %c0_i32, %c0_i32_0 : i32, i32
  }
  func.func @transform_18(%arg0: i32) -> (i32, i32) {
    %c0_i32 = arith.constant 0 : i32
    %c0_i32_0 = arith.constant 0 : i32
    %c0_i32_1 = arith.constant 0 : i32
    return %c0_i32, %c0_i32_0 : i32, i32
  }
  func.func @transform_19(%arg0: i32) -> (i32, i32) {
    %c0_i32 = arith.constant 0 : i32
    %c0_i32_0 = arith.constant 0 : i32
    return %arg0, %c0_i32 : i32, i32
  }
}

</mosaic_0001>

<bundles_post_ra>
// kernel: tpu_custom_call.1
= control target key start
LH: loop header
LB: loop body
LE: loop exit
PB: predicated region body
PF: predicated region fallthrough
CT: control target
= control target key end

     0   :  { %s12601_s0 = inlined_call_operand.vmem [shape: s32[16,1], index: 0, kind: input, shape index: {}]   ;;  %s12602_s1 = inlined_call_operand.hbm [shape: f32[128,384], index: 1, kind: input, shape index: {}]   ;;  %s12603_s2 = inlined_call_operand.hbm [shape: f32[16,384], index: 2, kind: input, shape index: {}]   ;;  %s12604_s3 = inlined_call_operand.hbm [shape: f32[16,16], index: 3, kind: input, shape index: {}]   ;;  %s12605_s4 = inlined_call_operand.hbm [shape: bf16[384,1152], index: 4, kind: input, shape index: {}]   ;;  %s12606_s5 = inlined_call_operand.hbm [shape: bf16[384,384], index: 5, kind: input, shape index: {}]   ;;  %s12607_s6 = inlined_call_operand.hbm [shape: f32[1,384], index: 6, kind: input, shape index: {}]   ;;  %s12608_s7 = inlined_call_operand.hbm [shape: f32[1,384], index: 7, kind: input, shape index: {}]   ;;  %s12609_s8 = inlined_call_operand.hbm [shape: f32[1,384], index: 8, kind: input, shape index: {}]   ;;  %s12610_s9 = inlined_call_operand.hbm [shape: bf16[384,1536], index: 9, kind: input, shape index: {}]   ;;  %s12611_s10 = inlined_call_operand.hbm [shape: f32[1,1536], index: 10, kind: input, shape index: {}]   ;;  %s12612_s11 = inlined_call_operand.hbm [shape: bf16[1536,384], index: 11, kind: input, shape index: {}]   ;;  %s12613_s12 = inlined_call_operand.hbm [shape: f32[1,384], index: 12, kind: input, shape index: {}]   ;;  %s12614_s13 = inlined_call_operand.hbm [shape: f32[1,384], index: 13, kind: input, shape index: {}]   ;;  %s12615_s14 = inlined_call_operand.hbm [shape: f32[1,384], index: 14, kind: input, shape index: {}]   ;;  %s12616_s15 = inlined_call_operand.hbm [shape: f32[1,384], index: 15, kind: input, shape index: {}]   ;;  %s12617_s16 = inlined_call_operand.hbm [shape: f32[1,384], index: 16, kind: input, shape index: {}]   ;;  %s12618_s17 = inlined_call_operand.hbm [shape: bf16[384,128], index: 17, kind: input, shape index: {}]   ;;  %s12619_s18 = inlined_call_operand.hbm [shape: f32[1,128], index: 18, kind: input, shape index: {}]   ;;  %s12620_s19 = inlined_call_operand.hbm [shape: f32[16,128], index: 19, kind: output, shape index: {}]  }
   0x1   :  { %12628 = sst [smem:[#allocation43_spill]] %s12601_s0 }
   0x2   :  { %12629 = sst [smem:[#allocation44_spill]] %s12602_s1 }
   0x3   :  { %12630 = sst [smem:[#allocation45_spill]] %s12603_s2 }
   0x4   :  { %12631 = sst [smem:[#allocation46_spill]] %s12604_s3 }
   0x5   :  { %12632 = sst [smem:[#allocation47_spill]] %s12620_s19 }
   0x6   :  { %24 = vsyncpa [#allocation3], 0 }
   0x7   :  { %25 = vsyncpa [#allocation6], 0 }
   0x8   :  { %26 = vsyncpa [#allocation9], 0 }
   0x9   :  { %27 = vsyncpa [#allocation12], 0 }
   0xa   :  { %28 = vsyncpa [#allocation15], 0 }
   0xb   :  { %29 = vsyncpa [#allocation18], 0 }
   0xc   :  { %30 = vsyncpa [#allocation21], 0 }
   0xd   :  { %31 = vsyncpa [#allocation24], 0 }
   0xe   :  { %32 = vsyncpa [#allocation27], 0 }
   0xf   :  { %33 = vsyncpa [#allocation30], 0 }
  0x10   :  { %34 = vsyncpa [#allocation4], 0  ;;  %s11844_s0 = smov [#allocation5]   ;;  %s11845_s20 = smov [#allocation8]  }
  0x11   :  { %s54_s30 = sshll.u32 %s11844_s0, 4  ;;  %s78_s21 = sshll.u32 %s11845_s20, 4  ;;  %s55_s30 = int_to_ptr.vmem [resolvable:$true] %s54_s30  ;;  %s11979_s21 = int_to_ptr.vmem [resolvable:$true] %s78_s21 }
  0x12   :  { %s12633_s2 = sld [smem:[#allocation45_spill]] }
  0x18   :  { %s11404_s23 = scalar_lea.hbm %s12633_s2, 768 }
  0x19   :  { %p11405_p0 = scmp.ne.s32.totalorder %s12633_s2, %s11404_s23  ;;  %p11408_p1 = scmp.lt.u32.totalorder %s11404_s23, %s12633_s2 }
  0x1b   :  { %p11410_p2 = pnand %p11408_p1, %p11405_p0 }
  0x1d   :  { %11413 = shalt.err (!%p11410_p2)
}
  0x1e   :  { %s11414_s27 = scalar_lea.vmem %s55_s30, 768  ;;  %p11419_p4 = scmp.lt.s32.totalorder %s55_s30, %s55_s30 }
  0x1f   :  { %p11415_p3 = scmp.ne.s32.totalorder %s55_s30, %s11414_s27  ;;  %p11420_p5 = scmp.lt.s32.totalorder %s11414_s27, %s11414_s27 }
  0x21   :  { %p11421_p6 = por %p11420_p5, %p11419_p4 }
  0x23   :  { %p11422_p7 = pnand %p11421_p6, %p11415_p3 }
  0x25   :  { %11425 = shalt.err (!%p11422_p7)
}
  0x26   :  { %s12625_s28 = smov 384   ;;  %s12626_s29 = smov 24  }
  0x27   :  { %60 = dma.hbm_to_vmem [thread:$0]  %s12633_s2, 768, %s55_s30, [#allocation6], %s12625_s28, %s12625_s28, %s12626_s29  }
  0x28   :  { %s11426_s23 = scalar_lea.hbm %s12605_s4, 27648 }
  0x29   :  { %p11427_p8 = scmp.ne.s32.totalorder %s12605_s4, %s11426_s23  ;;  %p11430_p9 = scmp.lt.u32.totalorder %s11426_s23, %s12605_s4 }
  0x2b   :  { %p11432_p10 = pnand %p11430_p9, %p11427_p8 }
  0x2d   :  { %11435 = shalt.err (!%p11432_p10)
}
  0x2e   :  { %s11436_s27 = scalar_lea.vmem %s11979_s21, 27648  ;;  %p11441_p12 = scmp.lt.s32.totalorder %s11979_s21, %s11979_s21 }
  0x2f   :  { %p11437_p11 = scmp.ne.s32.totalorder %s11979_s21, %s11436_s27  ;;  %p11442_p13 = scmp.lt.s32.totalorder %s11436_s27, %s11436_s27 }
  0x31   :  { %p11443_p0 = por %p11442_p13, %p11441_p12 }
  0x33   :  { %p11444_p1 = pnand %p11443_p0, %p11437_p11 }
  0x35   :  { %11447 = shalt.err (!%p11444_p1)
}
  0x36   :  { %s11848_s30 = smov 576   ;;  %s11849_s2 = smov 36  }
  0x37   :  { %84 = dma.hbm_to_vmem [thread:$0]  %s12605_s4, 27648, %s11979_s21, [#allocation9], %s11848_s30, %s11848_s30, %s11849_s2  }
  0x38   :  { %s11850_s1 = smov [#allocation11]   ;;  %s11851_s23 = smov [#allocation14]  }
  0x39   :  { %s103_s22 = sshll.u32 %s11850_s1, 4  ;;  %s123_s24 = sshll.u32 %s11851_s23, 4  ;;  %s104_s22 = int_to_ptr.vmem [resolvable:$true] %s103_s22  ;;  %s124_s24 = int_to_ptr.vmem [resolvable:$true] %s123_s24 }
  0x3a   :  { %s11448_s26 = scalar_lea.hbm %s12607_s6, 48 }
  0x3b   :  { %p11449_p2 = scmp.ne.s32.totalorder %s12607_s6, %s11448_s26  ;;  %p11452_p3 = scmp.lt.u32.totalorder %s11448_s26, %s12607_s6 }
  0x3d   :  { %p11454_p4 = pnand %p11452_p3, %p11449_p2 }
  0x3f   :  { %11457 = shalt.err (!%p11454_p4)
}
  0x40   :  { %s11458_s4 = scalar_lea.vmem %s104_s22, 48  ;;  %s11462_s21 = scalar_lea.vmem %s104_s22, 64 }
  0x41   :  { %p11459_p5 = scmp.ne.s32.totalorder %s104_s22, %s11458_s4  ;;  %p11463_p6 = scmp.lt.s32.totalorder %s104_s22, %s104_s22 }
  0x42   :  { %p11464_p7 = scmp.lt.s32.totalorder %s11462_s21, %s11458_s4 }
  0x44   :  { %p11465_p8 = por %p11464_p7, %p11463_p6 }
  0x46   :  { %p11466_p9 = pnand %p11465_p8, %p11459_p5 }
  0x48   :  { %11469 = shalt.err (!%p11466_p9)
}
  0x49   :  { %106 = dma.hbm_to_vmem [thread:$0]  %s12607_s6, 48, %s104_s22, [#allocation12]  }
  0x4a   :  { %s11470_s20 = scalar_lea.hbm %s12609_s8, 48 }
  0x4b   :  { %p11471_p10 = scmp.ne.s32.totalorder %s12609_s8, %s11470_s20  ;;  %p11474_p11 = scmp.lt.u32.totalorder %s11470_s20, %s12609_s8 }
  0x4d   :  { %p11476_p12 = pnand %p11474_p11, %p11471_p10 }
  0x4f   :  { %11479 = shalt.err (!%p11476_p12)
}
  0x50   :  { %s11480_s25 = scalar_lea.vmem %s124_s24, 48  ;;  %s11484_s3 = scalar_lea.vmem %s124_s24, 64 }
  0x51   :  { %p11481_p13 = scmp.ne.s32.totalorder %s124_s24, %s11480_s25  ;;  %p11485_p0 = scmp.lt.s32.totalorder %s124_s24, %s124_s24 }
  0x52   :  { %p11486_p1 = scmp.lt.s32.totalorder %s11484_s3, %s11480_s25 }
  0x54   :  { %p11487_p2 = por %p11486_p1, %p11485_p0 }
  0x56   :  { %p11488_p3 = pnand %p11487_p2, %p11481_p13 }
  0x58   :  { %11491 = shalt.err (!%p11488_p3)
}
  0x59   :  { %126 = dma.hbm_to_vmem [thread:$0]  %s12609_s8, 48, %s124_s24, [#allocation15]  }
  0x5a   :  { %s11852_s26 = smov [#allocation17]   ;;  %s11853_s4 = smov [#allocation20]  }
  0x5b   :  { %s145_s27 = sshll.u32 %s11852_s26, 4  ;;  %s167_s21 = sshll.u32 %s11853_s4, 4  ;;  %s146_s27 = int_to_ptr.vmem [resolvable:$true] %s145_s27  ;;  %s168_s21 = int_to_ptr.vmem [resolvable:$true] %s167_s21 }
  0x5c   :  { %s11492_s28 = scalar_lea.hbm %s12611_s10, 192 }
  0x5d   :  { %p11493_p4 = scmp.ne.s32.totalorder %s12611_s10, %s11492_s28  ;;  %p11496_p5 = scmp.lt.u32.totalorder %s11492_s28, %s12611_s10 }
  0x5f   :  { %p11498_p6 = pnand %p11496_p5, %p11493_p4 }
  0x61   :  { %11501 = shalt.err (!%p11498_p6)
}
  0x62   :  { %s11502_s8 = scalar_lea.vmem %s146_s27, 192  ;;  %p11507_p8 = scmp.lt.s32.totalorder %s146_s27, %s146_s27 }
  0x63   :  { %p11503_p7 = scmp.ne.s32.totalorder %s146_s27, %s11502_s8  ;;  %p11508_p9 = scmp.lt.s32.totalorder %s11502_s8, %s11502_s8 }
  0x65   :  { %p11509_p10 = por %p11508_p9, %p11507_p8 }
  0x67   :  { %p11510_p11 = pnand %p11509_p10, %p11503_p7 }
  0x69   :  { %11513 = shalt.err (!%p11510_p11)
}
  0x6a   :  { %148 = dma.hbm_to_vmem [thread:$0]  %s12611_s10, 192, %s146_s27, [#allocation18]  }
  0x6b   :  { %s11514_s3 = scalar_lea.hbm %s12613_s12, 48 }
  0x6c   :  { %p11515_p12 = scmp.ne.s32.totalorder %s12613_s12, %s11514_s3  ;;  %p11518_p13 = scmp.lt.u32.totalorder %s11514_s3, %s12613_s12 }
  0x6e   :  { %p11520_p0 = pnand %p11518_p13, %p11515_p12 }
  0x70   :  { %11523 = shalt.err (!%p11520_p0)
}
  0x71   :  { %s11524_s30 = scalar_lea.vmem %s168_s21, 48  ;;  %s11528_s2 = scalar_lea.vmem %s168_s21, 64 }
  0x72   :  { %p11525_p1 = scmp.ne.s32.totalorder %s168_s21, %s11524_s30  ;;  %p11529_p2 = scmp.lt.s32.totalorder %s168_s21, %s168_s21 }
  0x73   :  { %p11530_p3 = scmp.lt.s32.totalorder %s11528_s2, %s11524_s30 }
  0x75   :  { %p11531_p4 = por %p11530_p3, %p11529_p2 }
  0x77   :  { %p11532_p5 = pnand %p11531_p4, %p11525_p1 }
  0x79   :  { %11535 = shalt.err (!%p11532_p5)
}
  0x7a   :  { %170 = dma.hbm_to_vmem [thread:$0]  %s12613_s12, 48, %s168_s21, [#allocation21]  }
  0x7b   :  { %s11854_s28 = smov [#allocation23]   ;;  %s11855_s20 = smov [#allocation26]  }
  0x7c   :  { %s187_s0 = sshll.u32 %s11854_s28, 4  ;;  %s207_s19 = sshll.u32 %s11855_s20, 4  ;;  %s188_s0 = int_to_ptr.vmem [resolvable:$true] %s187_s0  ;;  %s208_s19 = int_to_ptr.vmem [resolvable:$true] %s207_s19 }
  0x7d   :  { %s11536_s24 = scalar_lea.hbm %s12615_s14, 48 }
  0x7e   :  { %p11537_p6 = scmp.ne.s32.totalorder %s12615_s14, %s11536_s24  ;;  %p11540_p7 = scmp.lt.u32.totalorder %s11536_s24, %s12615_s14 }
  0x80   :  { %p11542_p8 = pnand %p11540_p7, %p11537_p6 }
  0x82   :  { %11545 = shalt.err (!%p11542_p8)
}
  0x83   :  { %s11546_s12 = scalar_lea.vmem %s188_s0, 48  ;;  %s11550_s21 = scalar_lea.vmem %s188_s0, 64 }
  0x84   :  { %p11547_p9 = scmp.ne.s32.totalorder %s188_s0, %s11546_s12  ;;  %p11551_p10 = scmp.lt.s32.totalorder %s188_s0, %s188_s0 }
  0x85   :  { %p11552_p11 = scmp.lt.s32.totalorder %s11550_s21, %s11546_s12 }
  0x87   :  { %p11553_p12 = por %p11552_p11, %p11551_p10 }
  0x89   :  { %p11554_p13 = pnand %p11553_p12, %p11547_p9 }
  0x8b   :  { %11557 = shalt.err (!%p11554_p13)
}
  0x8c   :  { %190 = dma.hbm_to_vmem [thread:$0]  %s12615_s14, 48, %s188_s0, [#allocation24]  }
  0x8d   :  { %s11558_s30 = scalar_lea.hbm %s12617_s16, 48 }
  0x8e   :  { %p11559_p0 = scmp.ne.s32.totalorder %s12617_s16, %s11558_s30  ;;  %p11562_p1 = scmp.lt.u32.totalorder %s11558_s30, %s12617_s16 }
  0x90   :  { %p11564_p2 = pnand %p11562_p1, %p11559_p0 }
  0x92   :  { %11567 = shalt.err (!%p11564_p2)
}
  0x93   :  { %s11568_s20 = scalar_lea.vmem %s208_s19, 48  ;;  %s11572_s29 = scalar_lea.vmem %s208_s19, 64 }
  0x94   :  { %p11569_p3 = scmp.ne.s32.totalorder %s208_s19, %s11568_s20  ;;  %p11573_p4 = scmp.lt.s32.totalorder %s208_s19, %s208_s19 }
  0x95   :  { %p11574_p5 = scmp.lt.s32.totalorder %s11572_s29, %s11568_s20 }
  0x97   :  { %p11575_p6 = por %p11574_p5, %p11573_p4 }
  0x99   :  { %p11576_p7 = pnand %p11575_p6, %p11569_p3 }
  0x9b   :  { %11579 = shalt.err (!%p11576_p7)
}
  0x9c   :  { %210 = dma.hbm_to_vmem [thread:$0]  %s12617_s16, 48, %s208_s19, [#allocation27]  }
  0x9d   :  { %s11856_s8 = smov [#allocation2]   ;;  %s11857_s1 = smov [#allocation7]  }
  0x9e   :  { %s42_s24 = sshll.u32 %s11856_s8, 4  ;;  %s66_s23 = sshll.u32 %s11857_s1, 4  ;;  %s43_s24 = int_to_ptr.vmem [resolvable:$true] %s42_s24  ;;  %s12085_s23 = int_to_ptr.vmem [resolvable:$true] %s66_s23 }
  0x9f   :  { %s12634_s12 = sld [smem:[#allocation44_spill]] }
  0xa5   :  { %s11580_s21 = scalar_lea.hbm %s12634_s12, 6144 }
  0xa6   :  { %p11581_p8 = scmp.ne.s32.totalorder %s12634_s12, %s11580_s21  ;;  %p11584_p9 = scmp.lt.u32.totalorder %s11580_s21, %s12634_s12 }
  0xa8   :  { %p11586_p10 = pnand %p11584_p9, %p11581_p8 }
  0xaa   :  { %11589 = shalt.err (!%p11586_p10)
}
  0xab   :  { %s11590_s16 = scalar_lea.vmem %s43_s24, 6144  ;;  %p11595_p12 = scmp.lt.s32.totalorder %s43_s24, %s43_s24 }
  0xac   :  { %p11591_p11 = scmp.ne.s32.totalorder %s43_s24, %s11590_s16  ;;  %p11596_p13 = scmp.lt.s32.totalorder %s11590_s16, %s11590_s16 }
  0xae   :  { %p11597_p0 = por %p11596_p13, %p11595_p12 }
  0xb0   :  { %p11598_p1 = pnand %p11597_p0, %p11591_p11 }
  0xb2   :  { %11601 = shalt.err (!%p11598_p1)
}
  0xb3   :  { %s12635_s19 = smov 24   ;;  %s12636_s30 = smov 384  }
  0xb4   :  { %48 = dma.hbm_to_vmem [thread:$0]  %s12634_s12, 6144, %s43_s24, [#allocation3], %s12636_s30, %s12636_s30, %s12635_s19  }
  0xb5   :  { %s12637_s20 = sld [smem:[#allocation46_spill]] }
  0xbb   :  { %s11602_s29 = scalar_lea.hbm %s12637_s20, 256 }
  0xbc   :  { %p11603_p2 = scmp.ne.s32.totalorder %s12637_s20, %s11602_s29  ;;  %p11606_p3 = scmp.lt.u32.totalorder %s11602_s29, %s12637_s20 }
  0xbe   :  { %p11608_p4 = pnand %p11606_p3, %p11603_p2 }
  0xc0   :  { %11611 = shalt.err (!%p11608_p4)
}
  0xc1   :  { %s11612_s25 = scalar_lea.vmem %s12085_s23, 256  ;;  %p11617_p6 = scmp.lt.s32.totalorder %s12085_s23, %s12085_s23 }
  0xc2   :  { %p11613_p5 = scmp.ne.s32.totalorder %s12085_s23, %s11612_s25  ;;  %p11618_p7 = scmp.lt.s32.totalorder %s11612_s25, %s11612_s25 }
  0xc4   :  { %p11619_p8 = por %p11618_p7, %p11617_p6 }
  0xc6   :  { %p11620_p9 = pnand %p11619_p8, %p11613_p5 }
  0xc8   :  { %11623 = shalt.err (!%p11620_p9)
}
  0xc9   :  { %s11858_s24 = smov 128   ;;  %s11859_s3 = smov 8  }
  0xca   :  { %72 = dma.hbm_to_vmem [thread:$0]  %s12637_s20, 256, %s12085_s23, [#allocation6], %s11858_s24, %s11858_s24, %s11859_s3  }
  0xcb   :  { %s11860_s6 = smov [#allocation10]   ;;  %s11624_s16 = scalar_lea.hbm %s12606_s5, 9216 }
  0xcc   :  { %s90_s22 = sshll.u32 %s11860_s6, 4  ;;  %p11625_p10 = scmp.ne.s32.totalorder %s12606_s5, %s11624_s16  ;;  %s91_s22 = int_to_ptr.vmem [resolvable:$true] %s90_s22 }
  0xcd   :  { %p11628_p11 = scmp.lt.u32.totalorder %s11624_s16, %s12606_s5 }
  0xcf   :  { %p11630_p12 = pnand %p11628_p11, %p11625_p10 }
  0xd1   :  { %11633 = shalt.err (!%p11630_p12)
}
  0xd2   :  { %s11634_s27 = scalar_lea.vmem %s91_s22, 9216  ;;  %p11639_p0 = scmp.lt.s32.totalorder %s91_s22, %s91_s22 }
  0xd3   :  { %p11635_p13 = scmp.ne.s32.totalorder %s91_s22, %s11634_s27  ;;  %p11640_p1 = scmp.lt.s32.totalorder %s11634_s27, %s11634_s27 }
  0xd5   :  { %p11641_p2 = por %p11640_p1, %p11639_p0 }
  0xd7   :  { %p11642_p3 = pnand %p11641_p2, %p11635_p13 }
  0xd9   :  { %11645 = shalt.err (!%p11642_p3)
}
  0xda   :  { %s11861_s23 = smov 192   ;;  %s11862_s28 = smov 12  }
  0xdb   :  { %96 = dma.hbm_to_vmem [thread:$0]  %s12606_s5, 9216, %s91_s22, [#allocation9], %s11861_s23, %s11861_s23, %s11862_s28  }
  0xdc   :  { %s11863_s14 = smov [#allocation13]   ;;  %s11864_s8 = smov [#allocation16]  }
  0xdd   :  { %s113_s0 = sshll.u32 %s11863_s14, 4  ;;  %s132_s1 = sshll.u32 %s11864_s8, 4  ;;  %s114_s0 = int_to_ptr.vmem [resolvable:$true] %s113_s0  ;;  %s133_s1 = int_to_ptr.vmem [resolvable:$true] %s132_s1 }
  0xde   :  { %s11646_s21 = scalar_lea.hbm %s12608_s7, 48 }
  0xdf   :  { %p11647_p4 = scmp.ne.s32.totalorder %s12608_s7, %s11646_s21  ;;  %p11650_p5 = scmp.lt.u32.totalorder %s11646_s21, %s12608_s7 }
  0xe1   :  { %p11652_p6 = pnand %p11650_p5, %p11647_p4 }
  0xe3   :  { %11655 = shalt.err (!%p11652_p6)
}
  0xe4   :  { %s11656_s5 = scalar_lea.vmem %s114_s0, 48  ;;  %s11660_s22 = scalar_lea.vmem %s114_s0, 64 }
  0xe5   :  { %p11657_p7 = scmp.ne.s32.totalorder %s114_s0, %s11656_s5  ;;  %p11661_p8 = scmp.lt.s32.totalorder %s114_s0, %s114_s0 }
  0xe6   :  { %p11662_p9 = scmp.lt.s32.totalorder %s11660_s22, %s11656_s5 }
  0xe8   :  { %p11663_p10 = por %p11662_p9, %p11661_p8 }
  0xea   :  { %p11664_p11 = pnand %p11663_p10, %p11657_p7 }
  0xec   :  { %11667 = shalt.err (!%p11664_p11)
}
  0xed   :  { %116 = dma.hbm_to_vmem [thread:$0]  %s12608_s7, 48, %s114_s0, [#allocation12]  }
  0xee   :  { %s11668_s27 = scalar_lea.hbm %s12610_s9, 36864 }
  0xef   :  { %p11669_p12 = scmp.ne.s32.totalorder %s12610_s9, %s11668_s27  ;;  %p11672_p13 = scmp.lt.u32.totalorder %s11668_s27, %s12610_s9 }
  0xf1   :  { %p11674_p0 = pnand %p11672_p13, %p11669_p12 }
  0xf3   :  { %11677 = shalt.err (!%p11674_p0)
}
  0xf4   :  { %s11678_s25 = scalar_lea.vmem %s133_s1, 36864  ;;  %p11683_p2 = scmp.lt.s32.totalorder %s133_s1, %s133_s1 }
  0xf5   :  { %p11679_p1 = scmp.ne.s32.totalorder %s133_s1, %s11678_s25  ;;  %p11684_p3 = scmp.lt.s32.totalorder %s11678_s25, %s11678_s25 }
  0xf7   :  { %p11685_p4 = por %p11684_p3, %p11683_p2 }
  0xf9   :  { %p11686_p5 = pnand %p11685_p4, %p11679_p1 }
  0xfb   :  { %11689 = shalt.err (!%p11686_p5)
}
  0xfc   :  { %s11865_s7 = smov 768   ;;  %s11866_s0 = smov 48  }
  0xfd   :  { %138 = dma.hbm_to_vmem [thread:$0]  %s12610_s9, 36864, %s133_s1, [#allocation15], %s11865_s7, %s11865_s7, %s11866_s0  }
  0xfe   :  { %s11867_s6 = smov [#allocation19]   ;;  %s11868_s4 = smov [#allocation22]  }
  0xff   :  { %s154_s26 = sshll.u32 %s11867_s6, 4  ;;  %s177_s16 = sshll.u32 %s11868_s4, 4  ;;  %s155_s26 = int_to_ptr.vmem [resolvable:$true] %s154_s26  ;;  %s178_s16 = int_to_ptr.vmem [resolvable:$true] %s177_s16 }
 0x100   :  { %s11690_s19 = scalar_lea.hbm %s12612_s11, 36864 }
 0x101   :  { %p11691_p6 = scmp.ne.s32.totalorder %s12612_s11, %s11690_s19  ;;  %p11694_p7 = scmp.lt.u32.totalorder %s11690_s19, %s12612_s11 }
 0x103   :  { %p11696_p8 = pnand %p11694_p7, %p11691_p6 }
 0x105   :  { %11699 = shalt.err (!%p11696_p8)
}
 0x106   :  { %s11700_s9 = scalar_lea.vmem %s155_s26, 36864  ;;  %p11705_p10 = scmp.lt.s32.totalorder %s155_s26, %s155_s26 }
 0x107   :  { %p11701_p9 = scmp.ne.s32.totalorder %s155_s26, %s11700_s9  ;;  %p11706_p11 = scmp.lt.s32.totalorder %s11700_s9, %s11700_s9 }
 0x109   :  { %p11707_p12 = por %p11706_p11, %p11705_p10 }
 0x10b   :  { %p11708_p13 = pnand %p11707_p12, %p11701_p9 }
 0x10d   :  { %11711 = shalt.err (!%p11708_p13)
}
 0x10e   :  { %160 = dma.hbm_to_vmem [thread:$0]  %s12612_s11, 36864, %s155_s26, [#allocation18], %s11861_s23, %s11861_s23, %s11862_s28  }
 0x10f   :  { %s11712_s8 = scalar_lea.hbm %s12614_s13, 48 }
 0x110   :  { %p11713_p0 = scmp.ne.s32.totalorder %s12614_s13, %s11712_s8  ;;  %p11716_p1 = scmp.lt.u32.totalorder %s11712_s8, %s12614_s13 }
 0x112   :  { %p11718_p2 = pnand %p11716_p1, %p11713_p0 }
 0x114   :  { %11721 = shalt.err (!%p11718_p2)
}
 0x115   :  { %s11722_s21 = scalar_lea.vmem %s178_s16, 48  ;;  %s11726_s6 = scalar_lea.vmem %s178_s16, 64 }
 0x116   :  { %p11723_p3 = scmp.ne.s32.totalorder %s178_s16, %s11722_s21  ;;  %p11727_p4 = scmp.lt.s32.totalorder %s178_s16, %s178_s16 }
 0x117   :  { %p11728_p5 = scmp.lt.s32.totalorder %s11726_s6, %s11722_s21 }
 0x119   :  { %p11729_p6 = por %p11728_p5, %p11727_p4 }
 0x11b   :  { %p11730_p7 = pnand %p11729_p6, %p11723_p3 }
 0x11d   :  { %11733 = shalt.err (!%p11730_p7)
}
 0x11e   :  { %180 = dma.hbm_to_vmem [thread:$0]  %s12614_s13, 48, %s178_s16, [#allocation21]  }
 0x11f   :  { %s11869_s28 = smov [#allocation25]   ;;  %s11870_s4 = smov [#allocation28]  }
 0x120   :  { %s197_s26 = sshll.u32 %s11869_s28, 4  ;;  %s216_s5 = sshll.u32 %s11870_s4, 4  ;;  %s198_s26 = int_to_ptr.vmem [resolvable:$true] %s197_s26  ;;  %s217_s5 = int_to_ptr.vmem [resolvable:$true] %s216_s5 }
 0x121   :  { %s11734_s30 = scalar_lea.hbm %s12616_s15, 48 }
 0x122   :  { %p11735_p8 = scmp.ne.s32.totalorder %s12616_s15, %s11734_s30  ;;  %p11738_p9 = scmp.lt.u32.totalorder %s11734_s30, %s12616_s15 }
 0x124   :  { %p11740_p10 = pnand %p11738_p9, %p11735_p8 }
 0x126   :  { %11743 = shalt.err (!%p11740_p10)
}
 0x127   :  { %s11744_s13 = scalar_lea.vmem %s198_s26, 48  ;;  %s11748_s16 = scalar_lea.vmem %s198_s26, 64 }
 0x128   :  { %p11745_p11 = scmp.ne.s32.totalorder %s198_s26, %s11744_s13  ;;  %p11749_p12 = scmp.lt.s32.totalorder %s198_s26, %s198_s26 }
 0x129   :  { %p11750_p13 = scmp.lt.s32.totalorder %s11748_s16, %s11744_s13 }
 0x12b   :  { %p11751_p0 = por %p11750_p13, %p11749_p12 }
 0x12d   :  { %p11752_p1 = pnand %p11751_p0, %p11745_p11 }
 0x12f   :  { %11755 = shalt.err (!%p11752_p1)
}
 0x130   :  { %200 = dma.hbm_to_vmem [thread:$0]  %s12616_s15, 48, %s198_s26, [#allocation24]  }
 0x131   :  { %s11756_s8 = scalar_lea.hbm %s12618_s17, 3072 }
 0x132   :  { %p11757_p2 = scmp.ne.s32.totalorder %s12618_s17, %s11756_s8  ;;  %p11760_p3 = scmp.lt.u32.totalorder %s11756_s8, %s12618_s17 }
 0x134   :  { %p11762_p4 = pnand %p11760_p3, %p11757_p2 }
 0x136   :  { %11765 = shalt.err (!%p11762_p4)
}
 0x137   :  { %s11766_s21 = scalar_lea.vmem %s217_s5, 3072  ;;  %p11771_p6 = scmp.lt.s32.totalorder %s217_s5, %s217_s5 }
 0x138   :  { %p11767_p5 = scmp.ne.s32.totalorder %s217_s5, %s11766_s21  ;;  %p11772_p7 = scmp.lt.s32.totalorder %s11766_s21, %s11766_s21 }
 0x13a   :  { %p11773_p8 = por %p11772_p7, %p11771_p6 }
 0x13c   :  { %p11774_p9 = pnand %p11773_p8, %p11767_p5 }
 0x13e   :  { %11777 = shalt.err (!%p11774_p9)
}
 0x13f   :  { %s11871_s15 = smov 64   ;;  %s11872_s6 = smov 4  }
 0x140   :  { %222 = dma.hbm_to_vmem [thread:$0]  %s12618_s17, 3072, %s217_s5, [#allocation27], %s11871_s15, %s11871_s15, %s11872_s6  }
 0x141   :  { %s11873_s28 = smov [#allocation29]   ;;  %s11778_s19 = scalar_lea.hbm %s12619_s18, 16 }
 0x142   :  { %s229_s26 = sshll.u32 %s11873_s28, 4  ;;  %p11779_p10 = scmp.ne.s32.totalorder %s12619_s18, %s11778_s19  ;;  %s230_s26 = int_to_ptr.vmem [resolvable:$true] %s229_s26 }
 0x143   :  { %p11782_p11 = scmp.lt.u32.totalorder %s11778_s19, %s12619_s18 }
 0x145   :  { %p11784_p12 = pnand %p11782_p11, %p11779_p10 }
 0x147   :  { %11787 = shalt.err (!%p11784_p12)
}
 0x148   :  { %s11788_s9 = scalar_lea.vmem %s230_s26, 16  ;;  %s11792_s17 = scalar_lea.vmem %s230_s26, 32 }
 0x149   :  { %p11789_p13 = scmp.ne.s32.totalorder %s230_s26, %s11788_s9  ;;  %p11793_p0 = scmp.lt.s32.totalorder %s230_s26, %s230_s26 }
 0x14a   :  { %p11794_p1 = scmp.lt.s32.totalorder %s11792_s17, %s11788_s9 }
 0x14c   :  { %p11795_p2 = por %p11794_p1, %p11793_p0 }
 0x14e   :  { %p11796_p3 = pnand %p11795_p2, %p11789_p13 }
 0x150   :  { %11799 = shalt.err (!%p11796_p3)
}
 0x151   :  { %232 = dma.hbm_to_vmem [thread:$0]  %s12619_s18, 16, %s230_s26, [#allocation30]  }
 0x152   :  { %11822 = dma.done.wait [#allocation3], 6144  }
 0x153   :  { %11823 = vsyncadd [#allocation3], 4294961152 }
 0x154   :  { %11824 = dma.done.wait [#allocation6], 1024  }
 0x155   :  { %11825 = vsyncadd [#allocation6], 4294966272 }
 0x156   :  { %11826 = dma.done.wait [#allocation9], 36864  }
 0x157   :  { %11827 = vsyncadd [#allocation9], 4294930432 }
 0x158   :  { %11828 = dma.done.wait [#allocation12], 96  }
 0x159   :  { %11829 = vsyncadd [#allocation12], 4294967200 }
 0x15a   :  { %11830 = dma.done.wait [#allocation15], 36912  }
 0x15b   :  { %11831 = vsyncadd [#allocation15], 4294930384 }
 0x15c   :  { %11832 = dma.done.wait [#allocation18], 37056  }
 0x15d   :  { %11833 = vsyncadd [#allocation18], 4294930240 }
 0x15e   :  { %11834 = dma.done.wait [#allocation21], 96  }
 0x15f   :  { %11835 = vsyncadd [#allocation21], 4294967200 }
 0x160   :  { %11836 = dma.done.wait [#allocation24], 96  }
 0x161   :  { %11837 = vsyncadd [#allocation24], 4294967200 }
 0x162   :  { %11838 = dma.done.wait [#allocation27], 3120  }
 0x163   :  { %11839 = vsyncadd [#allocation27], 4294964176 }
 0x164   :  { %11840 = dma.done.wait [#allocation30], 16  }
 0x165   :  { %11841 = vsyncadd [#allocation30], 4294967280  ;;  %v11874_v0 = vmov 0   ;;  %s12638_s1 = sld [smem:[#allocation43_spill]]  ;;  %v305_v3 = vld [vmem:[#allocation2 + $0x8] sm:$0xff]  ;;  %v308_v4 = vld [vmem:[#allocation2 + $0x20] sm:$0xff] }
 0x166   :  { %10135 = vset.pattern.permute.xlu0 %v11874_v0  ;;  %v304_v5 = vld [vmem:[#allocation2] sm:$0xff]  ;;  %v307_v6 = vld [vmem:[#allocation2 + $0x18] sm:$0xff]  ;;  %v11875_v7 = vmov 0.0   ;;  %v9924_v8 = vpack.c.bf16 %v308_v4, %v305_v3  ;;  %v314_v11 = vld [vmem:[#allocation2 + $0x50] sm:$0xff]  ;;  %vm11877_vm2 = vmmov 0   ;;  %vm2439_vm3 = vcmask 130048  }
 0x167   :  { %422 = vmatprep.mubr.f32.mxu0 %v11875_v7  ;;  %v9926_v9 = vpack.c.bf16 %v307_v6, %v304_v5  ;;  %v311_v10 = vld [vmem:[#allocation2 + $0x38] sm:$0xff]  ;;  %v306_v12 = vld [vmem:[#allocation2 + $0x10] sm:$0xff]  ;;  %v309_v14 = vld [vmem:[#allocation2 + $0x28] sm:$0xff]  ;;  %s11878_s14 = smov [#allocation31]  }
 0x168   :  { %v9928_v13 = vpack.c.bf16 %v314_v11, %v311_v10  ;;  %v310_v15 = vld [vmem:[#allocation2 + $0x30] sm:$0xff]  ;;  %v313_v16 = vld [vmem:[#allocation2 + $0x48] sm:$0xff]  ;;  %9925 = vmatprep.subr.bf16.mxu0 %v9924_v8  ;;  %v9956_v17 = vpack.c.bf16 %v309_v14, %v306_v12  ;;  %v320_v19 = vld [vmem:[#allocation2 + $0x80] sm:$0xff]  ;;  %s8644_s8 = sshll.u32 %s11878_s14, 4  ;;  %s8645_s8 = int_to_ptr.vmem [resolvable:$true] %s8644_s8 }
 0x169   :  { %v317_v18 = vld [vmem:[#allocation2 + $0x68] sm:$0xff]  ;;  %v312_v20 = vld [vmem:[#allocation2 + $0x40] sm:$0xff]  ;;  %9927 = vmatpush1.bf16.msra.mxu0 %v9926_v9  ;;  %v9930_v21 = vpack.c.bf16 %v313_v16, %v310_v15  ;;  %v315_v22 = vld [vmem:[#allocation2 + $0x58] sm:$0xff]  ;;  %v290_v16 = vlaneseq  ;;  %s11800_s25 = scalar_lea.vmem %s8645_s8, 256  ;;  %p11805_p5 = scmp.lt.s32.totalorder %s8645_s8, %s8645_s8 }
 0x16a   :  { %9929 = vmatprep.subr.bf16.mxu0 %v9928_v13  ;;  %9957 = vmatprep.subr.bf16.mxu1 %v9956_v17  ;;  %v9932_v23 = vpack.c.bf16 %v320_v19, %v317_v18  ;;  %v9960_v24 = vpack.c.bf16 %v315_v22, %v312_v20  ;;  %v316_v25 = vld [vmem:[#allocation2 + $0x60] sm:$0xff]  ;;  %v319_v26 = vld [vmem:[#allocation2 + $0x78] sm:$0xff]  ;;  %v318_v27 = vld [vmem:[#allocation2 + $0x70] sm:$0xff]  ;;  %p11801_p4 = scmp.ne.s32.totalorder %s8645_s8, %s11800_s25  ;;  %p11806_p6 = scmp.lt.s32.totalorder %s11800_s25, %s11800_s25 }
 0x16b   :  { %v288_v1 = vld [vmem:[%s12638_s1] sm:$0xff]  ;;  %v289_v2 = vld [vmem:[%s12638_s1 + $0x8] sm:$0xff]  ;;  %9959 = vmatpush3.bf16.msra.mxu1 %v9956_v17  ;;  %v323_v28 = vld [vmem:[#allocation2 + $0x98] sm:$0xff]  ;;  %v9934_v32 = vpack.c.bf16 %v319_v26, %v316_v25  ;;  %v291_v17 = vand.u32 127, %v290_v16 }
 0x16c   :  { %293 = vperm.xlu0 %10135, %v288_v1   ;;  %v326_v29 = vld [vmem:[#allocation2 + $0xb0] sm:$0xff]  ;;  %v321_v30 = vld [vmem:[#allocation2 + $0x88] sm:$0xff]  ;;  %9961 = vmatprep.subr.bf16.mxu1 %v9960_v24  ;;  %v324_v33 = vld [vmem:[#allocation2 + $0xa0] sm:$0xff]  ;;  %p11807_p7 = por %p11806_p6, %p11805_p5 }
 0x16d   :  { %v9964_v31 = vpack.c.bf16 %v321_v30, %v318_v27  ;;  %9931 = vmatpush1.bf16.msra.mxu0 %v9930_v21  ;;  %v327_v34 = vld [vmem:[#allocation2 + $0xb8] sm:$0xff]  ;;  %v9936_v35 = vpack.c.bf16 %v326_v29, %v323_v28  ;;  %v322_v36 = vld [vmem:[#allocation2 + $0x90] sm:$0xff]  ;;  %v325_v37 = vld [vmem:[#allocation2 + $0xa8] sm:$0xff] }
 0x16e   :  { %9933 = vmatprep.subr.bf16.mxu0 %v9932_v23  ;;  %v329_v38 = vld [vmem:[#allocation2 + $0xc8] sm:$0xff]  ;;  %v332_v39 = vld [vmem:[#allocation2 + $0xe0] sm:$0xff]  ;;  %v9968_v40 = vpack.c.bf16 %v327_v34, %v324_v33  ;;  %v9938_v41 = vpack.c.bf16 %v325_v37, %v322_v36  ;;  %v330_v42 = vld [vmem:[#allocation2 + $0xd0] sm:$0xff]  ;;  %v11876_v23 = vmov 1.0   ;;  %p11808_p8 = pnand %p11807_p7, %p11801_p4 }
 0x16f   :  { %9963 = vmatpush3.bf16.msra.mxu1 %v9960_v24  ;;  %v333_v43 = vld [vmem:[#allocation2 + $0xe8] sm:$0xff]  ;;  %v9940_v44 = vpack.c.bf16 %v332_v39, %v329_v38  ;;  %v328_v45 = vld [vmem:[#allocation2 + $0xc0] sm:$0xff]  ;;  %v331_v46 = vld [vmem:[#allocation2 + $0xd8] sm:$0xff] }
 0x170   :  { %296 = vperm.xlu0 %10135, %v289_v2   ;;  %9965 = vmatprep.subr.bf16.mxu1 %v9964_v31  ;;  %v335_v47 = vld [vmem:[#allocation2 + $0xf8] sm:$0xff]  ;;  %v338_v48 = vld [vmem:[#allocation2 + $0x110] sm:$0xff]  ;;  %v9972_v49 = vpack.c.bf16 %v333_v43, %v330_v42  ;;  %v337_v51 = vld [vmem:[#allocation2 + $0x108] sm:$0xff]  ;;  %v9942_v52 = vpack.c.bf16 %v331_v46, %v328_v45 }
 0x171   :  { %9935 = vmatpush1.bf16.msra.mxu0 %v9934_v32  ;;  %v334_v50 = vld [vmem:[#allocation2 + $0xf0] sm:$0xff]  ;;  %v336_v53 = vld [vmem:[#allocation2 + $0x100] sm:$0xff]  ;;  %v339_v54 = vld [vmem:[#allocation2 + $0x118] sm:$0xff]  ;;  %v9944_v55 = vpack.c.bf16 %v338_v48, %v335_v47 }
 0x172   :  { %9937 = vmatprep.subr.bf16.mxu0 %v9936_v35  ;;  %v341_v56 = vld [vmem:[#allocation2 + $0x128] sm:$0xff]  ;;  %v344_v57 = vld [vmem:[#allocation2 + $0x140] sm:$0xff]  ;;  %v9976_v58 = vpack.c.bf16 %v339_v54, %v336_v53  ;;  %v343_v60 = vld [vmem:[#allocation2 + $0x138] sm:$0xff]  ;;  %v9946_v61 = vpack.c.bf16 %v337_v51, %v334_v50 }
 0x173   :  { %9967 = vmatpush3.bf16.msra.mxu1 %v9964_v31  ;;  %v340_v59 = vld [vmem:[#allocation2 + $0x120] sm:$0xff]  ;;  %v342_v62 = vld [vmem:[#allocation2 + $0x130] sm:$0xff]  ;;  %v345_v63 = vld [vmem:[#allocation2 + $0x148] sm:$0xff]  ;;  %v9948_v1 = vpack.c.bf16 %v344_v57, %v341_v56 }
 0x174   :  { %9969 = vmatprep.subr.bf16.mxu1 %v9968_v40  ;;  %v347_v2 = vld [vmem:[#allocation2 + $0x158] sm:$0xff]  ;;  %v350_v3 = vld [vmem:[#allocation2 + $0x170] sm:$0xff]  ;;  %v9980_v4 = vpack.c.bf16 %v345_v63, %v342_v62  ;;  %v349_v6 = vld [vmem:[#allocation2 + $0x168] sm:$0xff]  ;;  %v9950_v10 = vpack.c.bf16 %v343_v60, %v340_v59 }
 0x175   :  { %9939 = vmatpush1.bf16.msra.mxu0 %v9938_v41  ;;  %v346_v5 = vld [vmem:[#allocation2 + $0x150] sm:$0xff]  ;;  %v348_v8 = vld [vmem:[#allocation2 + $0x160] sm:$0xff]  ;;  %v351_v9 = vld [vmem:[#allocation2 + $0x178] sm:$0xff]  ;;  %v9952_v11 = vpack.c.bf16 %v350_v3, %v347_v2 }
 0x176   :  { %9941 = vmatprep.subr.bf16.mxu0 %v9940_v44  ;;  %v9984_v12 = vpack.c.bf16 %v351_v9, %v348_v8  ;;  %v9954_v13 = vpack.c.bf16 %v349_v6, %v346_v5  ;;  %v10138_v14 = vld [vmem:[#allocation8 + $0x4] ss:$36 sps:$4 sm:$0xff]   ;;  %v10168_v19 = vld [vmem:[#allocation8 + $0x4cc] ss:$36 sps:$4 sm:$0xff]   ;;  %v10174_v25 = vld [vmem:[#allocation8 + $0x514] ss:$36 sps:$4 sm:$0xff]  }
 0x177   :  { %9971 = vmatpush3.bf16.msra.mxu1 %v9968_v40  ;;  %v10162_v15 = vld [vmem:[#allocation8 + $0x484] ss:$36 sps:$4 sm:$0xff]   ;;  %v10141_v24 = vld [vmem:[#allocation8 + $0x4c] ss:$36 sps:$4 sm:$0xff]   ;;  %v10144_v29 = vld [vmem:[#allocation8 + $0x94] ss:$36 sps:$4 sm:$0xff]  }
 0x178   :  { %9973 = vmatprep.subr.bf16.mxu1 %v9972_v49  ;;  %v10160_v18 = vld [vmem:[#allocation8 + $0x480] ss:$36 sps:$4 sm:$0xff]   ;;  %v10166_v22 = vld [vmem:[#allocation8 + $0x4c8] ss:$36 sps:$4 sm:$0xff]   ;;  %v10172_v28 = vld [vmem:[#allocation8 + $0x510] ss:$36 sps:$4 sm:$0xff]  }
 0x179   :  { %9943 = vmatpush1.bf16.msra.mxu0 %v9942_v52  ;;  %v10136_v21 = vld [vmem:[#allocation8] ss:$36 sps:$4 sm:$0xff]   ;;  %v10139_v27 = vld [vmem:[#allocation8 + $0x48] ss:$36 sps:$4 sm:$0xff]   ;;  %v10142_v31 = vld [vmem:[#allocation8 + $0x90] ss:$36 sps:$4 sm:$0xff]  }
 0x17a   :  { %9945 = vmatprep.subr.bf16.mxu0 %v9944_v55  ;;  %v10180_v30 = vld [vmem:[#allocation8 + $0x55c] ss:$36 sps:$4 sm:$0xff]   ;;  %v10186_v34 = vld [vmem:[#allocation8 + $0x5a4] ss:$36 sps:$4 sm:$0xff]   ;;  %v10192_v38 = vld [vmem:[#allocation8 + $0x5ec] ss:$36 sps:$4 sm:$0xff]  }
 0x17b   :  { %9975 = vmatpush3.bf16.msra.mxu1 %v9972_v49  ;;  %v10178_v32 = vld [vmem:[#allocation8 + $0x558] ss:$36 sps:$4 sm:$0xff]   ;;  %v10184_v36 = vld [vmem:[#allocation8 + $0x5a0] ss:$36 sps:$4 sm:$0xff]   ;;  %v10190_v40 = vld [vmem:[#allocation8 + $0x5e8] ss:$36 sps:$4 sm:$0xff]  }
 0x17c   :  { %9977 = vmatprep.subr.bf16.mxu1 %v9976_v58  ;;  %v10147_v33 = vld [vmem:[#allocation8 + $0xdc] ss:$36 sps:$4 sm:$0xff]   ;;  %v10150_v37 = vld [vmem:[#allocation8 + $0x124] ss:$36 sps:$4 sm:$0xff]   ;;  %v10153_v41 = vld [vmem:[#allocation8 + $0x16c] ss:$36 sps:$4 sm:$0xff]  }
 0x17d   :  { %9947 = vmatpush1.bf16.msra.mxu0 %v9946_v61  ;;  %v10145_v35 = vld [vmem:[#allocation8 + $0xd8] ss:$36 sps:$4 sm:$0xff]   ;;  %v10148_v39 = vld [vmem:[#allocation8 + $0x120] ss:$36 sps:$4 sm:$0xff]   ;;  %v10151_v42 = vld [vmem:[#allocation8 + $0x168] ss:$36 sps:$4 sm:$0xff]  }
 0x17e   :  { %9949 = vmatprep.subr.bf16.mxu0 %v9948_v1  ;;  %v10156_v43 = vld [vmem:[#allocation8 + $0x1b4] ss:$36 sps:$4 sm:$0xff]   ;;  %v10159_v45 = vld [vmem:[#allocation8 + $0x1fc] ss:$36 sps:$4 sm:$0xff]   ;;  %v10165_v47 = vld [vmem:[#allocation8 + $0x244] ss:$36 sps:$4 sm:$0xff]  }
 0x17f   :  { %9979 = vmatpush3.bf16.msra.mxu1 %v9976_v58  ;;  %v10154_v44 = vld [vmem:[#allocation8 + $0x1b0] ss:$36 sps:$4 sm:$0xff]   ;;  %v10157_v46 = vld [vmem:[#allocation8 + $0x1f8] ss:$36 sps:$4 sm:$0xff]   ;;  %v10163_v48 = vld [vmem:[#allocation8 + $0x240] ss:$36 sps:$4 sm:$0xff]  }
 0x180   :  { %9981 = vmatprep.subr.bf16.mxu1 %v9980_v4  ;;  %v10171_v49 = vld [vmem:[#allocation8 + $0x28c] ss:$36 sps:$4 sm:$0xff]   ;;  %v10177_v51 = vld [vmem:[#allocation8 + $0x2d4] ss:$36 sps:$4 sm:$0xff]   ;;  %v10183_v53 = vld [vmem:[#allocation8 + $0x31c] ss:$36 sps:$4 sm:$0xff]  }
 0x181   :  { %9951 = vmatpush1.bf16.msra.mxu0 %v9950_v10  ;;  %v10169_v50 = vld [vmem:[#allocation8 + $0x288] ss:$36 sps:$4 sm:$0xff]   ;;  %v10175_v52 = vld [vmem:[#allocation8 + $0x2d0] ss:$36 sps:$4 sm:$0xff]   ;;  %v10181_v54 = vld [vmem:[#allocation8 + $0x318] ss:$36 sps:$4 sm:$0xff]  }
 0x182   :  { %9953 = vmatprep.subr.bf16.mxu0 %v9952_v11  ;;  %v10189_v55 = vld [vmem:[#allocation8 + $0x364] ss:$36 sps:$4 sm:$0xff]   ;;  %v10195_v57 = vld [vmem:[#allocation8 + $0x3ac] ss:$36 sps:$4 sm:$0xff]   ;;  %v10198_v59 = vld [vmem:[#allocation8 + $0x634] ss:$36 sps:$4 sm:$0xff]  }
 0x183   :  { %9983 = vmatpush3.bf16.msra.mxu1 %v9980_v4  ;;  %v10187_v56 = vld [vmem:[#allocation8 + $0x360] ss:$36 sps:$4 sm:$0xff]   ;;  %v10193_v58 = vld [vmem:[#allocation8 + $0x3a8] ss:$36 sps:$4 sm:$0xff]   ;;  %v10196_v60 = vld [vmem:[#allocation8 + $0x630] ss:$36 sps:$4 sm:$0xff]  }
 0x184   :  { %9985 = vmatprep.subr.bf16.mxu1 %v9984_v12  ;;  %v10201_v61 = vld [vmem:[#allocation8 + $0x3f4] ss:$36 sps:$4 sm:$0xff]   ;;  %v10204_v63 = vld [vmem:[#allocation8 + $0x67c] ss:$36 sps:$4 sm:$0xff]   ;;  %v10213_v5 = vld [vmem:[#allocation8 + $0xc] ss:$36 sps:$4 sm:$0xff]  }
 0x185   :  { %9955 = vmatpush1.bf16.msra.mxu0 %v9954_v13  ;;  %v10199_v62 = vld [vmem:[#allocation8 + $0x3f0] ss:$36 sps:$4 sm:$0xff]   ;;  %v10202_v1 = vld [vmem:[#allocation8 + $0x678] ss:$36 sps:$4 sm:$0xff]   ;;  %v357_v9 = vld [vmem:[#allocation5 + $0x28] sm:$0xff] }
 0x186   :  { %1900 = vmatprep.subr.bf16.mxu0 %v10162_v15  ;;  %v10207_v2 = vld [vmem:[#allocation8 + $0x43c] ss:$36 sps:$4 sm:$0xff]   ;;  %v10210_v4 = vld [vmem:[#allocation8 + $0x14] ss:$36 sps:$4 sm:$0xff]   ;;  %v353_v10 = vld [vmem:[#allocation5 + $0x8] sm:$0xff] }
 0x187   :  { %9987 = vmatpush3.bf16.msra.mxu1 %v9984_v12  ;;  %v10205_v3 = vld [vmem:[#allocation8 + $0x438] ss:$36 sps:$4 sm:$0xff]   ;;  %v356_v12 = vld [vmem:[#allocation5 + $0x20] sm:$0xff]  ;;  %v354_v13 = vld [vmem:[#allocation5 + $0x10] sm:$0xff] }
 0x188   :  { %1857 = vmatprep.subr.bf16.mxu1 %v10138_v14  ;;  %v355_v8 = vld [vmem:[#allocation5 + $0x18] sm:$0xff]  ;;  %v352_v14 = vld [vmem:[#allocation5] sm:$0xff] }
 0x1eb   :  { %v294_v20 = vpop.permute.xlu0 %293 }
 0x1ec   :  { %vm298_vm0 = vcmp.eq.s32.totalorder %v291_v17, %v294_v20 }
 0x1ed   :  { %8667 = vmatmul.mubr.msk.f32.vlgmr.msra.gmra.mrb[0].mxu0 %vm298_vm0, %v11876_v23  ;;  %9847 = vmatprep.mubr.msk.f32.mxu1 %vm298_vm0, %v11876_v23 }
 0x1ee   :  { %428 = vmatprep.mubr.f32.mxu0 %v11875_v7  ;;  %1901 = vmatpush1.bf16.msra.mxu0 %v10160_v18 }
 0x1ef   :  { %v297_v26 = vpop.permute.xlu0 %296  ;;  %1902 = vmatprep.subr.bf16.mxu0 %v10168_v19 }
 0x1f0   :  { %vm299_vm1 = vcmp.eq.s32.totalorder %v291_v17, %v297_v26  ;;  %v10211_v26 = vld [vmem:[#allocation8 + $0x8] ss:$36 sps:$4 sm:$0xff]  }
 0x1f1   :  { %8668 = vmatmul.mubr.msk.f32.gmra.mrb[2].mxu0 %vm299_vm1, %v11876_v23  ;;  %9848 = vmatmul.mubr.msk.f32.vlgmr.msra.gmra.mrb[0].mxu1 %vm299_vm1, %v11876_v23 }
 0x1f2   :  { %1858 = vmatpush1.bf16.msra.mxu1 %v10136_v21  ;;  %1903 = vmatpush1.bf16.msra.mxu0 %v10166_v22  ;;  %v10208_v22 = vld [vmem:[#allocation8 + $0x10] ss:$36 sps:$4 sm:$0xff]  }
 0x1f3   :  { %1859 = vmatprep.subr.bf16.mxu1 %v10141_v24  ;;  %1904 = vmatprep.subr.bf16.mxu0 %v10174_v25 }
 0x1f4   :  { %1932 = vmatprep.mubr.bf16.mxu0 %v11874_v0 }
 0x1f6   :  { %1860 = vmatpush1.bf16.msra.mxu1 %v10139_v27  ;;  %1905 = vmatpush1.bf16.msra.mxu0 %v10172_v28  ;;  %v10216_v28 = vld [vmem:[#allocation8 + $0x5c] ss:$36 sps:$4 sm:$0xff]  }
 0x1f7   :  { %1861 = vmatprep.subr.bf16.mxu1 %v10144_v29  ;;  %1906 = vmatprep.subr.bf16.mxu0 %v10180_v30 }
 0x1fa   :  { %1862 = vmatpush1.bf16.msra.mxu1 %v10142_v31  ;;  %1907 = vmatpush1.bf16.msra.mxu0 %v10178_v32  ;;  %v10214_v32 = vld [vmem:[#allocation8 + $0x58] ss:$36 sps:$4 sm:$0xff]  }
 0x1fb   :  { %1863 = vmatprep.subr.bf16.mxu1 %v10147_v33  ;;  %1908 = vmatprep.subr.bf16.mxu0 %v10186_v34  ;;  %v10217_v33 = vld [vmem:[#allocation8 + $0x50] ss:$36 sps:$4 sm:$0xff]  }
 0x1fc   :  { %v10219_v34 = vld [vmem:[#allocation8 + $0x54] ss:$36 sps:$4 sm:$0xff]  }
 0x1fe   :  { %1864 = vmatpush1.bf16.msra.mxu1 %v10145_v35  ;;  %1909 = vmatpush1.bf16.msra.mxu0 %v10184_v36  ;;  %v10222_v35 = vld [vmem:[#allocation8 + $0xa4] ss:$36 sps:$4 sm:$0xff]   ;;  %v10225_v36 = vld [vmem:[#allocation8 + $0x9c] ss:$36 sps:$4 sm:$0xff]  }
 0x1ff   :  { %1865 = vmatprep.subr.bf16.mxu1 %v10150_v37  ;;  %1910 = vmatprep.subr.bf16.mxu0 %v10192_v38  ;;  %v10220_v37 = vld [vmem:[#allocation8 + $0xa0] ss:$36 sps:$4 sm:$0xff]   ;;  %v10223_v38 = vld [vmem:[#allocation8 + $0x98] ss:$36 sps:$4 sm:$0xff]  }
 0x202   :  { %1866 = vmatpush1.bf16.msra.mxu1 %v10148_v39  ;;  %1911 = vmatpush1.bf16.msra.mxu0 %v10190_v40  ;;  %v10228_v39 = vld [vmem:[#allocation8 + $0xec] ss:$36 sps:$4 sm:$0xff]   ;;  %v10231_v40 = vld [vmem:[#allocation8 + $0xe4] ss:$36 sps:$4 sm:$0xff]  }
 0x203   :  { %1867 = vmatprep.subr.bf16.mxu1 %v10153_v41  ;;  %1912 = vmatprep.subr.bf16.mxu0 %v10198_v59  ;;  %v10226_v41 = vld [vmem:[#allocation8 + $0xe8] ss:$36 sps:$4 sm:$0xff]   ;;  %v10258_v59 = vld [vmem:[#allocation8 + $0x254] ss:$36 sps:$4 sm:$0xff]  }
 0x206   :  { %1868 = vmatpush1.bf16.msra.mxu1 %v10151_v42  ;;  %1913 = vmatpush1.bf16.msra.mxu0 %v10196_v60  ;;  %v10229_v42 = vld [vmem:[#allocation8 + $0xe0] ss:$36 sps:$4 sm:$0xff]   ;;  %v10261_v60 = vld [vmem:[#allocation8 + $0x24c] ss:$36 sps:$4 sm:$0xff]  }
 0x207   :  { %1869 = vmatprep.subr.bf16.mxu1 %v10156_v43  ;;  %1914 = vmatprep.subr.bf16.mxu0 %v10204_v63  ;;  %v10234_v43 = vld [vmem:[#allocation8 + $0x134] ss:$36 sps:$4 sm:$0xff]   ;;  %v10264_v63 = vld [vmem:[#allocation8 + $0x29c] ss:$36 sps:$4 sm:$0xff]  }
 0x20a   :  { %1870 = vmatpush1.bf16.msra.mxu1 %v10154_v44  ;;  %1915 = vmatpush1.bf16.msra.mxu0 %v10202_v1  ;;  %v10237_v44 = vld [vmem:[#allocation8 + $0x12c] ss:$36 sps:$4 sm:$0xff]   ;;  %v10267_v1 = vld [vmem:[#allocation8 + $0x294] ss:$36 sps:$4 sm:$0xff]  }
 0x20b   :  { %1871 = vmatprep.subr.bf16.mxu1 %v10159_v45  ;;  %2029 = vmatprep.subr.bf16.mxu0 %v10210_v4  ;;  %v10232_v45 = vld [vmem:[#allocation8 + $0x130] ss:$36 sps:$4 sm:$0xff]   ;;  %v10270_v4 = vld [vmem:[#allocation8 + $0x2e4] ss:$36 sps:$4 sm:$0xff]  }
 0x20e   :  { %1872 = vmatpush1.bf16.msra.mxu1 %v10157_v46  ;;  %v10235_v46 = vld [vmem:[#allocation8 + $0x128] ss:$36 sps:$4 sm:$0xff]  }
 0x20f   :  { %1873 = vmatprep.subr.bf16.mxu1 %v10165_v47  ;;  %v10240_v47 = vld [vmem:[#allocation8 + $0x17c] ss:$36 sps:$4 sm:$0xff]  }
 0x212   :  { %1874 = vmatpush1.bf16.msra.mxu1 %v10163_v48  ;;  %v10243_v48 = vld [vmem:[#allocation8 + $0x174] ss:$36 sps:$4 sm:$0xff]  }
 0x213   :  { %1875 = vmatprep.subr.bf16.mxu1 %v10171_v49  ;;  %v10238_v49 = vld [vmem:[#allocation8 + $0x178] ss:$36 sps:$4 sm:$0xff]  }
 0x216   :  { %1876 = vmatpush1.bf16.msra.mxu1 %v10169_v50  ;;  %v10241_v50 = vld [vmem:[#allocation8 + $0x170] ss:$36 sps:$4 sm:$0xff]  }
 0x217   :  { %1877 = vmatprep.subr.bf16.mxu1 %v10177_v51  ;;  %v10246_v51 = vld [vmem:[#allocation8 + $0x1c4] ss:$36 sps:$4 sm:$0xff]  }
 0x21a   :  { %1878 = vmatpush1.bf16.msra.mxu1 %v10175_v52  ;;  %v10249_v52 = vld [vmem:[#allocation8 + $0x1bc] ss:$36 sps:$4 sm:$0xff]  }
 0x21b   :  { %1879 = vmatprep.subr.bf16.mxu1 %v10183_v53  ;;  %v10244_v53 = vld [vmem:[#allocation8 + $0x1c0] ss:$36 sps:$4 sm:$0xff]  }
 0x21e   :  { %1880 = vmatpush1.bf16.msra.mxu1 %v10181_v54  ;;  %v10247_v54 = vld [vmem:[#allocation8 + $0x1b8] ss:$36 sps:$4 sm:$0xff]  }
 0x21f   :  { %1881 = vmatprep.subr.bf16.mxu1 %v10189_v55  ;;  %v10252_v55 = vld [vmem:[#allocation8 + $0x20c] ss:$36 sps:$4 sm:$0xff]  }
 0x222   :  { %1882 = vmatpush1.bf16.msra.mxu1 %v10187_v56  ;;  %v10255_v56 = vld [vmem:[#allocation8 + $0x204] ss:$36 sps:$4 sm:$0xff]  }
 0x223   :  { %1883 = vmatprep.subr.bf16.mxu1 %v10195_v57  ;;  %v10250_v57 = vld [vmem:[#allocation8 + $0x208] ss:$36 sps:$4 sm:$0xff]  }
 0x226   :  { %1884 = vmatpush1.bf16.msra.mxu1 %v10193_v58  ;;  %v10253_v58 = vld [vmem:[#allocation8 + $0x200] ss:$36 sps:$4 sm:$0xff]  }
 0x227   :  { %1885 = vmatprep.subr.bf16.mxu1 %v10201_v61  ;;  %v10256_v61 = vld [vmem:[#allocation8 + $0x250] ss:$36 sps:$4 sm:$0xff]  }
 0x22a   :  { %1886 = vmatpush1.bf16.msra.mxu1 %v10199_v62  ;;  %v10259_v62 = vld [vmem:[#allocation8 + $0x248] ss:$36 sps:$4 sm:$0xff]  }
 0x22b   :  { %1887 = vmatprep.subr.bf16.mxu1 %v10207_v2  ;;  %v10262_v2 = vld [vmem:[#allocation8 + $0x298] ss:$36 sps:$4 sm:$0xff]  }
 0x22e   :  { %1888 = vmatpush1.bf16.msra.mxu1 %v10205_v3  ;;  %v10265_v3 = vld [vmem:[#allocation8 + $0x290] ss:$36 sps:$4 sm:$0xff]  }
 0x22f   :  { %1943 = vmatprep.subr.bf16.mxu1 %v10213_v5  ;;  %v10273_v5 = vld [vmem:[#allocation8 + $0x2dc] ss:$36 sps:$4 sm:$0xff]  }
 0x2c0   :  { %v424_v6 = vpop.f32.mrb[0].mxu0 }
 0x2c1   :  { %v426_v11 = vpop.f32.mrb[1].mxu0  ;;  %v12245_v27 = vadd.f32 %v424_v6, %v352_v14  ;;  %v10268_v6 = vld [vmem:[#allocation8 + $0x2e0] ss:$36 sps:$4 sm:$0xff]   ;;  %v10285_v14 = vld [vmem:[#allocation8 + $0x36c] ss:$36 sps:$4 sm:$0xff]  }
 0x2c2   :  { %v12239_v23 = vadd.f32 %v426_v11, %v353_v10  ;;  %v10279_v10 = vld [vmem:[#allocation8 + $0x324] ss:$36 sps:$4 sm:$0xff]  }
 0x2c3   :  { %v10274_v11 = vld [vmem:[#allocation8 + $0x328] ss:$36 sps:$4 sm:$0xff]  }
 0x2c4   :  { %v430_v15 = vpop.f32.mrb[2].mxu0  ;;  %v9849_v17 = vpop.f32.mrb[0].mxu1 }
 0x2c5   :  { %v12235_v18 = vadd.f32 %v430_v15, %v355_v8  ;;  %v12237_v19 = vadd.f32 %v9849_v17, %v357_v9  ;;  %v432_v20 = vpop.f32.mrb[3].mxu0  ;;  %v501_v21 = vpop.f32.mrb[1].mxu1  ;;  %v10271_v8 = vld [vmem:[#allocation8 + $0x2d8] ss:$36 sps:$4 sm:$0xff]   ;;  %v10276_v9 = vld [vmem:[#allocation8 + $0x32c] ss:$36 sps:$4 sm:$0xff]  }
 0x2c6   :  { %v12241_v24 = vadd.f32 %v432_v20, %v356_v12  ;;  %v12243_v25 = vadd.f32 %v501_v21, %v354_v13  ;;  %v10277_v12 = vld [vmem:[#allocation8 + $0x320] ss:$36 sps:$4 sm:$0xff]   ;;  %v10282_v13 = vld [vmem:[#allocation8 + $0x374] ss:$36 sps:$4 sm:$0xff]   ;;  %v10283_v17 = vld [vmem:[#allocation8 + $0x368] ss:$36 sps:$4 sm:$0xff]  }
 0x2c7   :  { %v12257_v31 = vpack.c.bf16 %v12235_v18, %v12245_v27  ;;  %v10280_v15 = vld [vmem:[#allocation8 + $0x370] ss:$36 sps:$4 sm:$0xff]   ;;  %v10288_v20 = vld [vmem:[#allocation8 + $0x3bc] ss:$36 sps:$4 sm:$0xff]  }
 0x2c8   :  { %v12249_v29 = vpack.c.bf16 %v12241_v24, %v12239_v23  ;;  %v12253_v30 = vpack.c.bf16 %v12237_v19, %v12243_v25  ;;  %v10291_v21 = vld [vmem:[#allocation8 + $0x3b4] ss:$36 sps:$4 sm:$0xff]  }
 0x2ca   :  { %1889 = vmatprep.mubr.bf16.mxu1 %v12249_v29  ;;  %1933 = vmatmul.mubr.bf16.vlgmr.msra.gmra.mrb[4].mxu0 %v12253_v30 }
 0x2cb   :  { %2030 = vmatpush1.bf16.msra.mxu0 %v10208_v22  ;;  %1890 = vmatmul.mubr.bf16.vlgmr.msra.gmra.mrb[4].mxu1 %v12257_v31  ;;  %v10286_v22 = vld [vmem:[#allocation8 + $0x3b8] ss:$36 sps:$4 sm:$0xff]  }
 0x2cc   :  { %1944 = vmatpush1.bf16.msra.mxu1 %v10211_v26  ;;  %2061 = vmatprep.mubr.bf16.mxu0 %v12249_v29  ;;  %v10289_v26 = vld [vmem:[#allocation8 + $0x3b0] ss:$36 sps:$4 sm:$0xff]  }
 0x2cd   :  { %1975 = vmatprep.mubr.bf16.mxu1 %v12249_v29  ;;  %2031 = vmatprep.subr.bf16.mxu0 %v10216_v28  ;;  %v10294_v28 = vld [vmem:[#allocation8 + $0x404] ss:$36 sps:$4 sm:$0xff]  }
 0x2ce   :  { %1945 = vmatprep.subr.bf16.mxu1 %v10219_v34  ;;  %v10295_v34 = vld [vmem:[#allocation8 + $0x3f8] ss:$36 sps:$4 sm:$0xff]  }
 0x2cf   :  { %2032 = vmatpush1.bf16.msra.mxu0 %v10214_v32  ;;  %v10297_v32 = vld [vmem:[#allocation8 + $0x3fc] ss:$36 sps:$4 sm:$0xff]  }
 0x2d0   :  { %1946 = vmatpush1.bf16.msra.mxu1 %v10217_v33  ;;  %2033 = vmatprep.subr.bf16.mxu0 %v10222_v35  ;;  %v10292_v33 = vld [vmem:[#allocation8 + $0x400] ss:$36 sps:$4 sm:$0xff]   ;;  %v10300_v35 = vld [vmem:[#allocation8 + $0x44c] ss:$36 sps:$4 sm:$0xff]  }
 0x2d1   :  { %1947 = vmatprep.subr.bf16.mxu1 %v10225_v36  ;;  %v10303_v36 = vld [vmem:[#allocation8 + $0x444] ss:$36 sps:$4 sm:$0xff]  }
 0x2d3   :  { %2034 = vmatpush1.bf16.msra.mxu0 %v10220_v37  ;;  %v10298_v37 = vld [vmem:[#allocation8 + $0x448] ss:$36 sps:$4 sm:$0xff]  }
 0x2d4   :  { %1948 = vmatpush1.bf16.msra.mxu1 %v10223_v38  ;;  %2035 = vmatprep.subr.bf16.mxu0 %v10228_v39  ;;  %v10301_v38 = vld [vmem:[#allocation8 + $0x440] ss:$36 sps:$4 sm:$0xff]   ;;  %v10306_v39 = vld [vmem:[#allocation8 + $0x494] ss:$36 sps:$4 sm:$0xff]  }
 0x2d5   :  { %1949 = vmatprep.subr.bf16.mxu1 %v10231_v40  ;;  %v10309_v40 = vld [vmem:[#allocation8 + $0x48c] ss:$36 sps:$4 sm:$0xff]  }
 0x2d7   :  { %2036 = vmatpush1.bf16.msra.mxu0 %v10226_v41  ;;  %v10304_v41 = vld [vmem:[#allocation8 + $0x490] ss:$36 sps:$4 sm:$0xff]  }
 0x2d8   :  { %1950 = vmatpush1.bf16.msra.mxu1 %v10229_v42  ;;  %2037 = vmatprep.subr.bf16.mxu0 %v10234_v43  ;;  %v10307_v42 = vld [vmem:[#allocation8 + $0x488] ss:$36 sps:$4 sm:$0xff]   ;;  %v10312_v43 = vld [vmem:[#allocation8 + $0x4dc] ss:$36 sps:$4 sm:$0xff]  }
 0x2d9   :  { %1951 = vmatprep.subr.bf16.mxu1 %v10237_v44  ;;  %v10315_v44 = vld [vmem:[#allocation8 + $0x4d4] ss:$36 sps:$4 sm:$0xff]  }
 0x2db   :  { %2038 = vmatpush1.bf16.msra.mxu0 %v10232_v45  ;;  %v10310_v45 = vld [vmem:[#allocation8 + $0x4d8] ss:$36 sps:$4 sm:$0xff]  }
 0x2dc   :  { %1952 = vmatpush1.bf16.msra.mxu1 %v10235_v46  ;;  %2039 = vmatprep.subr.bf16.mxu0 %v10240_v47  ;;  %v10313_v46 = vld [vmem:[#allocation8 + $0x4d0] ss:$36 sps:$4 sm:$0xff]   ;;  %v10318_v47 = vld [vmem:[#allocation8 + $0x524] ss:$36 sps:$4 sm:$0xff]  }
 0x2dd   :  { %1953 = vmatprep.subr.bf16.mxu1 %v10243_v48  ;;  %v10316_v48 = vld [vmem:[#allocation8 + $0x520] ss:$36 sps:$4 sm:$0xff]  }
 0x2df   :  { %2040 = vmatpush1.bf16.msra.mxu0 %v10238_v49  ;;  %v10321_v49 = vld [vmem:[#allocation8 + $0x51c] ss:$36 sps:$4 sm:$0xff]  }
 0x2e0   :  { %1954 = vmatpush1.bf16.msra.mxu1 %v10241_v50  ;;  %2041 = vmatprep.subr.bf16.mxu0 %v10246_v51  ;;  %v10319_v50 = vld [vmem:[#allocation8 + $0x518] ss:$36 sps:$4 sm:$0xff]   ;;  %v10324_v51 = vld [vmem:[#allocation8 + $0x56c] ss:$36 sps:$4 sm:$0xff]  }
 0x2e1   :  { %1955 = vmatprep.subr.bf16.mxu1 %v10249_v52  ;;  %v10322_v52 = vld [vmem:[#allocation8 + $0x568] ss:$36 sps:$4 sm:$0xff]  }
 0x2e3   :  { %2042 = vmatpush1.bf16.msra.mxu0 %v10244_v53  ;;  %v10327_v53 = vld [vmem:[#allocation8 + $0x564] ss:$36 sps:$4 sm:$0xff]  }
 0x2e4   :  { %1956 = vmatpush1.bf16.msra.mxu1 %v10247_v54  ;;  %2043 = vmatprep.subr.bf16.mxu0 %v10252_v55  ;;  %v10325_v54 = vld [vmem:[#allocation8 + $0x560] ss:$36 sps:$4 sm:$0xff]   ;;  %v10330_v55 = vld [vmem:[#allocation8 + $0x5b4] ss:$36 sps:$4 sm:$0xff]  }
 0x2e5   :  { %1957 = vmatprep.subr.bf16.mxu1 %v10255_v56  ;;  %v10328_v56 = vld [vmem:[#allocation8 + $0x5b0] ss:$36 sps:$4 sm:$0xff]  }
 0x2e7   :  { %2044 = vmatpush1.bf16.msra.mxu0 %v10250_v57  ;;  %v10333_v57 = vld [vmem:[#allocation8 + $0x5ac] ss:$36 sps:$4 sm:$0xff]  }
 0x2e8   :  { %1958 = vmatpush1.bf16.msra.mxu1 %v10253_v58  ;;  %2045 = vmatprep.subr.bf16.mxu0 %v10258_v59  ;;  %v10331_v58 = vld [vmem:[#allocation8 + $0x5a8] ss:$36 sps:$4 sm:$0xff]   ;;  %v10336_v59 = vld [vmem:[#allocation8 + $0x5fc] ss:$36 sps:$4 sm:$0xff]  }
 0x2e9   :  { %1959 = vmatprep.subr.bf16.mxu1 %v10261_v60  ;;  %v10334_v60 = vld [vmem:[#allocation8 + $0x5f8] ss:$36 sps:$4 sm:$0xff]  }
 0x2eb   :  { %2046 = vmatpush1.bf16.msra.mxu0 %v10256_v61  ;;  %v10339_v61 = vld [vmem:[#allocation8 + $0x5f4] ss:$36 sps:$4 sm:$0xff]  }
 0x2ec   :  { %1960 = vmatpush1.bf16.msra.mxu1 %v10259_v62  ;;  %2047 = vmatprep.subr.bf16.mxu0 %v10264_v63  ;;  %v10337_v62 = vld [vmem:[#allocation8 + $0x5f0] ss:$36 sps:$4 sm:$0xff]   ;;  %v10342_v63 = vld [vmem:[#allocation8 + $0x644] ss:$36 sps:$4 sm:$0xff]  }
 0x2ed   :  { %1961 = vmatprep.subr.bf16.mxu1 %v10267_v1  ;;  %v10345_v1 = vld [vmem:[#allocation8 + $0x63c] ss:$36 sps:$4 sm:$0xff]  }
 0x2ef   :  { %2048 = vmatpush1.bf16.msra.mxu0 %v10262_v2  ;;  %v10340_v2 = vld [vmem:[#allocation8 + $0x640] ss:$36 sps:$4 sm:$0xff]  }
 0x2f0   :  { %1962 = vmatpush1.bf16.msra.mxu1 %v10265_v3  ;;  %2049 = vmatprep.subr.bf16.mxu0 %v10270_v4  ;;  %v10343_v3 = vld [vmem:[#allocation8 + $0x638] ss:$36 sps:$4 sm:$0xff]   ;;  %v10348_v4 = vld [vmem:[#allocation8 + $0x68c] ss:$36 sps:$4 sm:$0xff]  }
 0x2f1   :  { %1963 = vmatprep.subr.bf16.mxu1 %v10273_v5  ;;  %v10351_v5 = vld [vmem:[#allocation8 + $0x684] ss:$36 sps:$4 sm:$0xff]  }
 0x2f3   :  { %2050 = vmatpush1.bf16.msra.mxu0 %v10268_v6  ;;  %v10346_v6 = vld [vmem:[#allocation8 + $0x688] ss:$36 sps:$4 sm:$0xff]  }
 0x2f4   :  { %1964 = vmatpush1.bf16.msra.mxu1 %v10271_v8  ;;  %2051 = vmatprep.subr.bf16.mxu0 %v10276_v9  ;;  %v10349_v8 = vld [vmem:[#allocation8 + $0x680] ss:$36 sps:$4 sm:$0xff]  }
 0x2f5   :  { %1965 = vmatprep.subr.bf16.mxu1 %v10279_v10  ;;  %v10352_v9 = vld [vmem:[#allocation8 + $0x260] ss:$36 sps:$4 sm:$0xff]  }
 0x2f6   :  { %v10355_v10 = vld [vmem:[#allocation8 + $0x1c] ss:$36 sps:$4 sm:$0xff]  }
 0x2f7   :  { %2052 = vmatpush1.bf16.msra.mxu0 %v10274_v11  ;;  %v10356_v11 = vld [vmem:[#allocation8 + $0x20] ss:$36 sps:$4 sm:$0xff]  }
 0x2f8   :  { %1966 = vmatpush1.bf16.msra.mxu1 %v10277_v12  ;;  %2053 = vmatprep.subr.bf16.mxu0 %v10282_v13  ;;  %v10353_v12 = vld [vmem:[#allocation8 + $0x18] ss:$36 sps:$4 sm:$0xff]   ;;  %v10357_v13 = vld [vmem:[#allocation8 + $0x2a8] ss:$36 sps:$4 sm:$0xff]  }
 0x2f9   :  { %1967 = vmatprep.subr.bf16.mxu1 %v10285_v14  ;;  %v10360_v14 = vld [vmem:[#allocation8 + $0x64] ss:$36 sps:$4 sm:$0xff]  }
 0x2fb   :  { %2054 = vmatpush1.bf16.msra.mxu0 %v10280_v15  ;;  %v10361_v15 = vld [vmem:[#allocation8 + $0x68] ss:$36 sps:$4 sm:$0xff]  }
 0x2fc   :  { %1968 = vmatpush1.bf16.msra.mxu1 %v10283_v17  ;;  %2055 = vmatprep.subr.bf16.mxu0 %v10288_v20  ;;  %v10358_v17 = vld [vmem:[#allocation8 + $0x60] ss:$36 sps:$4 sm:$0xff]   ;;  %v10362_v20 = vld [vmem:[#allocation8 + $0x2f0] ss:$36 sps:$4 sm:$0xff]  }
 0x2fd   :  { %1969 = vmatprep.subr.bf16.mxu1 %v10291_v21  ;;  %v10365_v21 = vld [vmem:[#allocation8 + $0xac] ss:$36 sps:$4 sm:$0xff]  }
 0x2ff   :  { %2056 = vmatpush1.bf16.msra.mxu0 %v10286_v22  ;;  %v10366_v22 = vld [vmem:[#allocation8 + $0xb0] ss:$36 sps:$4 sm:$0xff]  }
 0x300   :  { %1970 = vmatpush1.bf16.msra.mxu1 %v10289_v26  ;;  %2057 = vmatprep.subr.bf16.mxu0 %v10294_v28  ;;  %v10363_v26 = vld [vmem:[#allocation8 + $0xa8] ss:$36 sps:$4 sm:$0xff]   ;;  %v10367_v28 = vld [vmem:[#allocation8 + $0x338] ss:$36 sps:$4 sm:$0xff]  }
 0x301   :  { %1971 = vmatprep.subr.bf16.mxu1 %v10297_v32  ;;  %v10370_v32 = vld [vmem:[#allocation8 + $0xf4] ss:$36 sps:$4 sm:$0xff]  }
 0x303   :  { %2058 = vmatpush1.bf16.msra.mxu0 %v10292_v33  ;;  %v10371_v33 = vld [vmem:[#allocation8 + $0xf8] ss:$36 sps:$4 sm:$0xff]  }
 0x304   :  { %1972 = vmatpush1.bf16.msra.mxu1 %v10295_v34  ;;  %2059 = vmatprep.subr.bf16.mxu0 %v10300_v35  ;;  %v10368_v34 = vld [vmem:[#allocation8 + $0xf0] ss:$36 sps:$4 sm:$0xff]   ;;  %v10372_v35 = vld [vmem:[#allocation8 + $0x380] ss:$36 sps:$4 sm:$0xff]  }
 0x305   :  { %1973 = vmatprep.subr.bf16.mxu1 %v10303_v36  ;;  %v10375_v36 = vld [vmem:[#allocation8 + $0x13c] ss:$36 sps:$4 sm:$0xff]  }
 0x307   :  { %2060 = vmatpush1.bf16.msra.mxu0 %v10298_v37  ;;  %v10373_v37 = vld [vmem:[#allocation8 + $0x138] ss:$36 sps:$4 sm:$0xff]  }
 0x308   :  { %1974 = vmatpush1.bf16.msra.mxu1 %v10301_v38  ;;  %2072 = vmatprep.subr.bf16.mxu0 %v10306_v39  ;;  %v10377_v38 = vld [vmem:[#allocation8 + $0x3c8] ss:$36 sps:$4 sm:$0xff]  }
 0x309   :  { %1986 = vmatprep.subr.bf16.mxu1 %v10309_v40  ;;  %v10380_v39 = vld [vmem:[#allocation8 + $0x184] ss:$36 sps:$4 sm:$0xff]  }
 0x30a   :  { %2062 = vmatmul.mubr.bf16.vlgmr.msra.gmra.mrb[8].mxu0 %v12257_v31  ;;  %v10381_v40 = vld [vmem:[#allocation8 + $0x188] ss:$36 sps:$4 sm:$0xff]  }
 0x30b   :  { %1976 = vmatmul.mubr.bf16.vlgmr.msra.gmra.mrb[8].mxu1 %v12257_v31  ;;  %2073 = vmatpush1.bf16.msra.mxu0 %v10304_v41  ;;  %v10378_v41 = vld [vmem:[#allocation8 + $0x180] ss:$36 sps:$4 sm:$0xff]  }
 0x30c   :  { %1987 = vmatpush1.bf16.msra.mxu1 %v10307_v42  ;;  %2074 = vmatprep.subr.bf16.mxu0 %v10312_v43  ;;  %v10382_v42 = vld [vmem:[#allocation8 + $0x410] ss:$36 sps:$4 sm:$0xff]  }
 0x30d   :  { %1988 = vmatprep.subr.bf16.mxu1 %v10315_v44  ;;  %2104 = vmatprep.mubr.bf16.mxu0 %v11874_v0  ;;  %v10385_v43 = vld [vmem:[#allocation8 + $0x1cc] ss:$36 sps:$4 sm:$0xff]  }
 0x30e   :  { %2018 = vmatprep.mubr.bf16.mxu1 %v11874_v0  ;;  %v10386_v44 = vld [vmem:[#allocation8 + $0x1d0] ss:$36 sps:$4 sm:$0xff]  }
 0x30f   :  { %2075 = vmatpush1.bf16.msra.mxu0 %v10310_v45  ;;  %v10383_v45 = vld [vmem:[#allocation8 + $0x1c8] ss:$36 sps:$4 sm:$0xff]  }
 0x310   :  { %1989 = vmatpush1.bf16.msra.mxu1 %v10313_v46  ;;  %2076 = vmatprep.subr.bf16.mxu0 %v10318_v47  ;;  %v10387_v46 = vld [vmem:[#allocation8 + $0x458] ss:$36 sps:$4 sm:$0xff]  }
 0x311   :  { %1990 = vmatprep.subr.bf16.mxu1 %v10321_v49  ;;  %v10390_v47 = vld [vmem:[#allocation8 + $0x214] ss:$36 sps:$4 sm:$0xff]  }
 0x312   :  { %v10388_v49 = vld [vmem:[#allocation8 + $0x210] ss:$36 sps:$4 sm:$0xff]  }
 0x313   :  { %2077 = vmatpush1.bf16.msra.mxu0 %v10316_v48  ;;  %v10391_v48 = vld [vmem:[#allocation8 + $0x218] ss:$36 sps:$4 sm:$0xff]  }
 0x314   :  { %1991 = vmatpush1.bf16.msra.mxu1 %v10319_v50  ;;  %2078 = vmatprep.subr.bf16.mxu0 %v10324_v51  ;;  %v10394_v50 = vld [vmem:[#allocation8 + $0x25c] ss:$36 sps:$4 sm:$0xff]  }
 0x315   :  { %1992 = vmatprep.subr.bf16.mxu1 %v10327_v53  ;;  %v10392_v51 = vld [vmem:[#allocation8 + $0x258] ss:$36 sps:$4 sm:$0xff]   ;;  %v10395_v53 = vld [vmem:[#allocation8 + $0x2a0] ss:$36 sps:$4 sm:$0xff]  }
 0x317   :  { %2079 = vmatpush1.bf16.msra.mxu0 %v10322_v52  ;;  %v10397_v52 = vld [vmem:[#allocation8 + $0x2a4] ss:$36 sps:$4 sm:$0xff]  }
 0x318   :  { %1993 = vmatpush1.bf16.msra.mxu1 %v10325_v54  ;;  %2080 = vmatprep.subr.bf16.mxu0 %v10330_v55  ;;  %v10400_v54 = vld [vmem:[#allocation8 + $0x2ec] ss:$36 sps:$4 sm:$0xff]  }
 0x319   :  { %1994 = vmatprep.subr.bf16.mxu1 %v10333_v57  ;;  %v10398_v55 = vld [vmem:[#allocation8 + $0x2e8] ss:$36 sps:$4 sm:$0xff]   ;;  %v10401_v57 = vld [vmem:[#allocation8 + $0x330] ss:$36 sps:$4 sm:$0xff]  }
 0x31b   :  { %2081 = vmatpush1.bf16.msra.mxu0 %v10328_v56  ;;  %v10403_v56 = vld [vmem:[#allocation8 + $0x334] ss:$36 sps:$4 sm:$0xff]  }
 0x31c   :  { %1995 = vmatpush1.bf16.msra.mxu1 %v10331_v58  ;;  %2082 = vmatprep.subr.bf16.mxu0 %v10336_v59  ;;  %v10406_v58 = vld [vmem:[#allocation8 + $0x37c] ss:$36 sps:$4 sm:$0xff]  }
 0x31d   :  { %1996 = vmatprep.subr.bf16.mxu1 %v10339_v61  ;;  %v10404_v59 = vld [vmem:[#allocation8 + $0x378] ss:$36 sps:$4 sm:$0xff]   ;;  %v10407_v61 = vld [vmem:[#allocation8 + $0x3c0] ss:$36 sps:$4 sm:$0xff]  }
 0x31f   :  { %2083 = vmatpush1.bf16.msra.mxu0 %v10334_v60  ;;  %v10409_v60 = vld [vmem:[#allocation8 + $0x3c4] ss:$36 sps:$4 sm:$0xff]  }
 0x320   :  { %1997 = vmatpush1.bf16.msra.mxu1 %v10337_v62  ;;  %2084 = vmatprep.subr.bf16.mxu0 %v10342_v63  ;;  %v10412_v62 = vld [vmem:[#allocation8 + $0x40c] ss:$36 sps:$4 sm:$0xff]  }
 0x321   :  { %1998 = vmatprep.subr.bf16.mxu1 %v10345_v1  ;;  %v10410_v63 = vld [vmem:[#allocation8 + $0x408] ss:$36 sps:$4 sm:$0xff]   ;;  %v10415_v1 = vld [vmem:[#allocation8 + $0x454] ss:$36 sps:$4 sm:$0xff]  }
 0x323   :  { %2085 = vmatpush1.bf16.msra.mxu0 %v10340_v2  ;;  %v10413_v2 = vld [vmem:[#allocation8 + $0x450] ss:$36 sps:$4 sm:$0xff]  }
 0x324   :  { %1999 = vmatpush1.bf16.msra.mxu1 %v10343_v3  ;;  %2086 = vmatprep.subr.bf16.mxu0 %v10348_v4  ;;  %v10418_v3 = vld [vmem:[#allocation8 + $0x49c] ss:$36 sps:$4 sm:$0xff]  }
 0x325   :  { %2000 = vmatprep.subr.bf16.mxu1 %v10351_v5  ;;  %v10416_v4 = vld [vmem:[#allocation8 + $0x498] ss:$36 sps:$4 sm:$0xff]   ;;  %v10421_v5 = vld [vmem:[#allocation8 + $0x4e4] ss:$36 sps:$4 sm:$0xff]  }
 0x327   :  { %2087 = vmatpush1.bf16.msra.mxu0 %v10346_v6  ;;  %v10419_v6 = vld [vmem:[#allocation8 + $0x4e0] ss:$36 sps:$4 sm:$0xff]  }
 0x328   :  { %2001 = vmatpush1.bf16.msra.mxu1 %v10349_v8  ;;  %9582 = vmatprep.subr.bf16.mxu0 %v10352_v9  ;;  %v10424_v8 = vld [vmem:[#allocation8 + $0x52c] ss:$36 sps:$4 sm:$0xff]  }
 0x329   :  { %2115 = vmatprep.subr.bf16.mxu1 %v10355_v10  ;;  %v10422_v9 = vld [vmem:[#allocation8 + $0x528] ss:$36 sps:$4 sm:$0xff]   ;;  %v10427_v10 = vld [vmem:[#allocation8 + $0x574] ss:$36 sps:$4 sm:$0xff]  }
 0x32a   :  { %2105 = vmatmul.mubr.bf16.vlgmr.msra.gmra.mrb[8].mxu0 %v12253_v30 }
 0x32b   :  { %2019 = vmatmul.mubr.bf16.vlgmr.msra.gmra.mrb[8].mxu1 %v12253_v30  ;;  %9583 = vmatpush3.bf16.msra.mxu0 %v10356_v11  ;;  %v10425_v11 = vld [vmem:[#allocation8 + $0x570] ss:$36 sps:$4 sm:$0xff]  }
 0x32c   :  { %2233 = vmatprep.mubr.bf16.mxu0 %v12249_v29  ;;  %2116 = vmatpush1.bf16.msra.mxu1 %v10353_v12  ;;  %v10430_v12 = vld [vmem:[#allocation8 + $0x5bc] ss:$36 sps:$4 sm:$0xff]  }
 0x32d   :  { %2147 = vmatprep.mubr.bf16.mxu1 %v12249_v29  ;;  %9584 = vmatprep.subr.bf16.mxu0 %v10357_v13  ;;  %v10376_v29 = vld [vmem:[#allocation8 + $0x140] ss:$36 sps:$4 sm:$0xff]   ;;  %v10428_v13 = vld [vmem:[#allocation8 + $0x5b8] ss:$36 sps:$4 sm:$0xff]  }
 0x32e   :  { %2117 = vmatprep.subr.bf16.mxu1 %v10360_v14  ;;  %v10433_v14 = vld [vmem:[#allocation8 + $0x604] ss:$36 sps:$4 sm:$0xff]  }
 0x32f   :  { %9585 = vmatpush3.bf16.msra.mxu0 %v10361_v15  ;;  %v10436_v15 = vld [vmem:[#allocation8 + $0x64c] ss:$36 sps:$4 sm:$0xff]  }
 0x330   :  { %2118 = vmatpush1.bf16.msra.mxu1 %v10358_v17  ;;  %9586 = vmatprep.subr.bf16.mxu0 %v10362_v20  ;;  %v10434_v17 = vld [vmem:[#allocation8 + $0x648] ss:$36 sps:$4 sm:$0xff]   ;;  %v10439_v20 = vld [vmem:[#allocation8 + $0x694] ss:$36 sps:$4 sm:$0xff]  }
 0x331   :  { %2119 = vmatprep.subr.bf16.mxu1 %v10365_v21  ;;  %v10437_v21 = vld [vmem:[#allocation8 + $0x690] ss:$36 sps:$4 sm:$0xff]  }
 0x333   :  { %9587 = vmatpush3.bf16.msra.mxu0 %v10366_v22  ;;  %v10440_v22 = vld [vmem:[#allocation8 + $0x4a0] ss:$36 sps:$4 sm:$0xff]  }
 0x334   :  { %2120 = vmatpush1.bf16.msra.mxu1 %v10363_v26  ;;  %9588 = vmatprep.subr.bf16.mxu0 %v10367_v28  ;;  %v10441_v26 = vld [vmem:[#allocation8 + $0x4e8] ss:$36 sps:$4 sm:$0xff]   ;;  %v10442_v28 = vld [vmem:[#allocation8 + $0x530] ss:$36 sps:$4 sm:$0xff]  }
 0x335   :  { %2121 = vmatprep.subr.bf16.mxu1 %v10370_v32  ;;  %v10443_v32 = vld [vmem:[#allocation8 + $0x578] ss:$36 sps:$4 sm:$0xff]  }
 0x337   :  { %9589 = vmatpush3.bf16.msra.mxu0 %v10371_v33  ;;  %v10444_v33 = vld [vmem:[#allocation8 + $0x5c0] ss:$36 sps:$4 sm:$0xff]  }
 0x338   :  { %2122 = vmatpush1.bf16.msra.mxu1 %v10368_v34  ;;  %9590 = vmatprep.subr.bf16.mxu0 %v10372_v35  ;;  %v10445_v34 = vld [vmem:[#allocation8 + $0x608] ss:$36 sps:$4 sm:$0xff]  }
 0x339   :  { %2123 = vmatprep.subr.bf16.mxu1 %v10375_v36 }
 0x33b   :  { %9591 = vmatpush3.bf16.msra.mxu0 %v10376_v29 }
 0x33c   :  { %2124 = vmatpush1.bf16.msra.mxu1 %v10373_v37  ;;  %9592 = vmatprep.subr.bf16.mxu0 %v10377_v38 }
 0x33d   :  { %2125 = vmatprep.subr.bf16.mxu1 %v10380_v39 }
 0x33f   :  { %9593 = vmatpush3.bf16.msra.mxu0 %v10381_v40 }
 0x340   :  { %2126 = vmatpush1.bf16.msra.mxu1 %v10378_v41  ;;  %9594 = vmatprep.subr.bf16.mxu0 %v10382_v42 }
 0x341   :  { %2127 = vmatprep.subr.bf16.mxu1 %v10385_v43  ;;  %v10446_v43 = vld [vmem:[#allocation8 + $0x650] ss:$36 sps:$4 sm:$0xff]  }
 0x343   :  { %9595 = vmatpush3.bf16.msra.mxu0 %v10386_v44 }
 0x344   :  { %2128 = vmatpush1.bf16.msra.mxu1 %v10383_v45  ;;  %9596 = vmatprep.subr.bf16.mxu0 %v10387_v46 }
 0x345   :  { %2129 = vmatprep.subr.bf16.mxu1 %v10390_v47 }
 0x347   :  { %9597 = vmatpush3.bf16.msra.mxu0 %v10391_v48 }
 0x348   :  { %2130 = vmatpush1.bf16.msra.mxu1 %v10388_v49  ;;  %v10447_v49 = vld [vmem:[#allocation8 + $0x698] ss:$36 sps:$4 sm:$0xff]  }
 0x349   :  { %2131 = vmatprep.subr.bf16.mxu1 %v10394_v50 }
 0x34a   :  { %2234 = vmatmul.mubr.bf16.vlgmr.msra.gmra.mrb[12].mxu0 %v12257_v31 }
 0x34c   :  { %2132 = vmatpush1.bf16.msra.mxu1 %v10392_v51 }
 0x34d   :  { %2133 = vmatprep.subr.bf16.mxu1 %v10397_v52 }
 0x350   :  { %2134 = vmatpush1.bf16.msra.mxu1 %v10395_v53 }
 0x351   :  { %2135 = vmatprep.subr.bf16.mxu1 %v10400_v54 }
 0x354   :  { %2136 = vmatpush1.bf16.msra.mxu1 %v10398_v55 }
 0x355   :  { %2137 = vmatprep.subr.bf16.mxu1 %v10403_v56 }
 0x358   :  { %2138 = vmatpush1.bf16.msra.mxu1 %v10401_v57 }
 0x359   :  { %2139 = vmatprep.subr.bf16.mxu1 %v10406_v58 }
 0x35c   :  { %2140 = vmatpush1.bf16.msra.mxu1 %v10404_v59 }
 0x35d   :  { %2141 = vmatprep.subr.bf16.mxu1 %v10409_v60 }
 0x360   :  { %2142 = vmatpush1.bf16.msra.mxu1 %v10407_v61 }
 0x361   :  { %2143 = vmatprep.subr.bf16.mxu1 %v10412_v62 }
 0x364   :  { %2144 = vmatpush1.bf16.msra.mxu1 %v10410_v63 }
 0x365   :  { %2145 = vmatprep.subr.bf16.mxu1 %v10415_v1 }
 0x368   :  { %2146 = vmatpush1.bf16.msra.mxu1 %v10413_v2 }
 0x369   :  { %2158 = vmatprep.subr.bf16.mxu1 %v10418_v3 }
 0x36b   :  { %2148 = vmatmul.mubr.bf16.vlgmr.msra.gmra.mrb[12].mxu1 %v12257_v31  ;;  %v10431_v31 = vld [vmem:[#allocation8 + $0x600] ss:$36 sps:$4 sm:$0xff]  }
 0x36c   :  { %2159 = vmatpush1.bf16.msra.mxu1 %v10416_v4  ;;  %2190 = vmatprep.mubr.bf16.mxu1 %v11874_v0 }
 0x36d   :  { %2160 = vmatprep.subr.bf16.mxu1 %v10421_v5 }
 0x370   :  { %2161 = vmatpush1.bf16.msra.mxu1 %v10419_v6 }
 0x371   :  { %2162 = vmatprep.subr.bf16.mxu1 %v10424_v8 }
 0x374   :  { %2163 = vmatpush1.bf16.msra.mxu1 %v10422_v9 }
 0x375   :  { %2164 = vmatprep.subr.bf16.mxu1 %v10427_v10 }
 0x378   :  { %2165 = vmatpush1.bf16.msra.mxu1 %v10425_v11 }
 0x379   :  { %2166 = vmatprep.subr.bf16.mxu1 %v10430_v12 }
 0x37c   :  { %2167 = vmatpush1.bf16.msra.mxu1 %v10428_v13 }
 0x37d   :  { %2168 = vmatprep.subr.bf16.mxu1 %v10433_v14 }
 0x380   :  { %2169 = vmatpush1.bf16.msra.mxu1 %v10431_v31 }
 0x381   :  { %2170 = vmatprep.subr.bf16.mxu1 %v10436_v15 }
 0x384   :  { %2171 = vmatpush1.bf16.msra.mxu1 %v10434_v17 }
 0x385   :  { %2172 = vmatprep.subr.bf16.mxu1 %v10439_v20 }
 0x388   :  { %2173 = vmatpush1.bf16.msra.mxu1 %v10437_v21 }
 0x389   :  { %9850 = vmatprep.subr.bf16.mxu1 %v11875_v7 }
 0x38b   :  { %2191 = vmatmul.mubr.bf16.vlgmr.msra.gmra.mrb[12].mxu1 %v12253_v30 }
 0x38c   :  { %9851 = vmatpush3.bf16.msra.mxu1 %v10440_v22  ;;  %9866 = vmatprep.mubr.msk.bf16.mxu1 %vm11877_vm2, %v11875_v7 }
 0x38d   :  { %9852 = vmatprep.subr.bf16.mxu1 %v11875_v7 }
 0x390   :  { %9853 = vmatpush3.bf16.msra.mxu1 %v10441_v26 }
 0x391   :  { %9854 = vmatprep.subr.bf16.mxu1 %v11875_v7 }
 0x394   :  { %9855 = vmatpush3.bf16.msra.mxu1 %v10442_v28 }
 0x395   :  { %9856 = vmatprep.subr.bf16.mxu1 %v11875_v7 }
 0x398   :  { %9857 = vmatpush3.bf16.msra.mxu1 %v10443_v32  ;;  %v2435_v32 = vld [vmem:[#allocation7] sm:$0xff] }
 0x399   :  { %9858 = vmatprep.subr.bf16.mxu1 %v11875_v7 }
 0x39c   :  { %9859 = vmatpush3.bf16.msra.mxu1 %v10444_v33 }
 0x39d   :  { %v1934_v35 = vpop.f32.mrb[4].mxu0  ;;  %9860 = vmatprep.subr.bf16.mxu1 %v11875_v7 }
 0x39e   :  { %v1891_v36 = vpop.f32.mrb[4].mxu1  ;;  %v1936_v29 = vpop.f32.mrb[5].mxu0 }
 0x39f   :  { %v1935_v37 = vadd.f32 %v1934_v35, %v1891_v36  ;;  %v1893_v38 = vpop.f32.mrb[5].mxu1  ;;  %v1938_v39 = vpop.f32.mrb[6].mxu0  ;;  %v2436_v35 = vld [vmem:[#allocation7 + $0x8] sm:$0xff] }
 0x3a0   :  { %v1937_v40 = vadd.f32 %v1936_v29, %v1893_v38  ;;  %9861 = vmatpush3.bf16.msra.mxu1 %v10445_v34  ;;  %v1895_v41 = vpop.f32.mrb[6].mxu1  ;;  %v1940_v42 = vpop.f32.mrb[7].mxu0 }
 0x3a1   :  { %v1939_v44 = vadd.f32 %v1938_v39, %v1895_v41  ;;  %v1897_v45 = vpop.f32.mrb[7].mxu1  ;;  %9862 = vmatprep.subr.bf16.mxu1 %v11875_v7 }
 0x3a2   :  { %v1941_v46 = vadd.f32 %v1940_v42, %v1897_v45 }
 0x3a3   :  { %v9990_v47 = vpack.c.bf16 %v1939_v44, %v1935_v37 }
 0x3a4   :  { %v9988_v48 = vpack.c.bf16 %v1941_v46, %v1937_v40  ;;  %9863 = vmatpush3.bf16.msra.mxu1 %v10446_v43 }
 0x3a5   :  { %9864 = vmatprep.subr.bf16.mxu1 %v11875_v7 }
 0x3a6   :  { %9989 = vmatprep.subr.bf16.mxu0 %v9988_v48 }
 0x3a7   :  { %9991 = vmatpush1.bf16.xpose.msra.mxu0 %v9990_v47 }
 0x3a8   :  { %9865 = vmatpush3.bf16.msra.mxu1 %v10447_v49  ;;  %v10448_v49 = vld [vmem:[#allocation10] ss:$12 sps:$4 sm:$0xff]  }
 0x3ab   :  { %9867 = vmatmul.mubr.bf16.vlgmr.msra.gmra.mrb[16].mxu1 %v12253_v30 }
 0x3fd   :  { %v2106_v50 = vpop.f32.mrb[8].mxu0 }
 0x3fe   :  { %v2020_v51 = vpop.f32.mrb[8].mxu1  ;;  %v2108_v52 = vpop.f32.mrb[9].mxu0  ;;  %2347 = vmatprep.mubr.f32.mxu0 %v2106_v50  ;;  %v10450_v50 = vld [vmem:[#allocation10 + $0x4] ss:$12 sps:$4 sm:$0xff]  }
 0x3ff   :  { %v2022_v53 = vpop.f32.mrb[9].mxu1  ;;  %v2110_v54 = vpop.f32.mrb[10].mxu0  ;;  %3120 = vmatprep.subr.bf16.mxu1 %v10450_v50 }
 0x400   :  { %v2024_v55 = vpop.f32.mrb[10].mxu1  ;;  %v2112_v56 = vpop.f32.mrb[11].mxu0  ;;  %2348 = vmatmul.mubr.f32.vlgmr.msra.gmra.mrb[16].mxu0 %v2022_v53  ;;  %3121 = vmatpush1.bf16.msra.mxu1 %v10448_v49  ;;  %v10456_v53 = vld [vmem:[#allocation10 + $0x34] ss:$12 sps:$4 sm:$0xff]  }
 0x401   :  { %v9992_v57 = vpack.c.bf16 %v2024_v55, %v2020_v51  ;;  %v2026_v58 = vpop.f32.mrb[11].mxu1  ;;  %2352 = vmatprep.mubr.f32.mxu0 %v2110_v54  ;;  %v10453_v51 = vld [vmem:[#allocation10 + $0x1c] ss:$12 sps:$4 sm:$0xff]   ;;  %v10459_v55 = vld [vmem:[#allocation10 + $0x4c] ss:$12 sps:$4 sm:$0xff]  }
 0x402   :  { %3122 = vmatprep.subr.bf16.mxu1 %v10453_v51  ;;  %v10454_v54 = vld [vmem:[#allocation10 + $0x30] ss:$12 sps:$4 sm:$0xff]  }
 0x403   :  { %9993 = vmatprep.subr.bf16.mxu0 %v9992_v57 }
 0x404   :  { %2353 = vmatmul.mubr.f32.gmra.mrb[18].mxu0 %v2026_v58  ;;  %v10460_v58 = vld [vmem:[#allocation10 + $0x60] ss:$12 sps:$4 sm:$0xff]  }
 0x405   :  { %9995 = vmatpush3.bf16.xpose.msra.mxu0 %v9992_v57  ;;  %9874 = vmatprep.mubr.f32.mxu0 %v2108_v52  ;;  %v10451_v52 = vld [vmem:[#allocation10 + $0x18] ss:$12 sps:$4 sm:$0xff]  }
 0x406   :  { %3123 = vmatpush1.bf16.msra.mxu1 %v10451_v52  ;;  %v10462_v57 = vld [vmem:[#allocation10 + $0x64] ss:$12 sps:$4 sm:$0xff]  }
 0x407   :  { %3124 = vmatprep.subr.bf16.mxu1 %v10456_v53 }
 0x40a   :  { %3125 = vmatpush1.bf16.msra.mxu1 %v10454_v54 }
 0x40b   :  { %3126 = vmatprep.subr.bf16.mxu1 %v10459_v55  ;;  %v10512_v55 = vld [vmem:[#allocation10 + $0x180] ss:$12 sps:$4 sm:$0xff]  }
 0x40c   :  { %9875 = vmatmul.mubr.f32.vlgmr.msra.gmra.mrb[20].mxu0 %v2112_v56  ;;  %v10457_v56 = vld [vmem:[#allocation10 + $0x48] ss:$12 sps:$4 sm:$0xff]  }
 0x40d   :  { %2532 = vmatprep.mubr.f32.mxu0 %v11875_v7 }
 0x40e   :  { %3127 = vmatpush1.bf16.msra.mxu1 %v10457_v56  ;;  %v10515_v56 = vld [vmem:[#allocation10 + $0x188] ss:$12 sps:$4 sm:$0xff]  }
 0x40f   :  { %3128 = vmatprep.subr.bf16.mxu1 %v10462_v57  ;;  %v10518_v57 = vld [vmem:[#allocation10 + $0x19c] ss:$12 sps:$4 sm:$0xff]  }
 0x412   :  { %3129 = vmatpush1.bf16.msra.mxu1 %v10460_v58 }
 0x41d   :  { %v9598_v30 = vpop.f32.mrb[12].mxu0 }
 0x41e   :  { %v9599_v59 = vpop.f32.mrb[13].mxu0 }
 0x41f   :  { %v9600_v60 = vadd.f32 %v9599_v59, %v9598_v30  ;;  %v9601_v61 = vpop.f32.mrb[14].mxu0  ;;  %v10465_v30 = vld [vmem:[#allocation10 + $0x7c] ss:$12 sps:$4 sm:$0xff]   ;;  %v10463_v59 = vld [vmem:[#allocation10 + $0x78] ss:$12 sps:$4 sm:$0xff]  }
 0x420   :  { %v9602_v62 = vpop.f32.mrb[15].mxu0  ;;  %3130 = vmatprep.subr.bf16.mxu1 %v10465_v30 }
 0x421   :  { %v9603_v63 = vadd.f32 %v9602_v62, %v9601_v61  ;;  %3131 = vmatpush1.bf16.msra.mxu1 %v10463_v59  ;;  %v10466_v61 = vld [vmem:[#allocation10 + $0x90] ss:$12 sps:$4 sm:$0xff]   ;;  %v10471_v62 = vld [vmem:[#allocation10 + $0xac] ss:$12 sps:$4 sm:$0xff]  }
 0x45e   :  { %v2192_v1 = vpop.f32.mrb[12].mxu1 }
 0x45f   :  { %v2194_v2 = vpop.f32.mrb[13].mxu1 }
 0x460   :  { %v2196_v3 = vpop.f32.mrb[14].mxu1 }
 0x461   :  { %v9998_v4 = vpack.c.bf16 %v2196_v3, %v2192_v1  ;;  %v2198_v5 = vpop.f32.mrb[15].mxu1  ;;  %v10474_v1 = vld [vmem:[#allocation10 + $0xc4] ss:$12 sps:$4 sm:$0xff]   ;;  %v10479_v3 = vld [vmem:[#allocation10 + $0xdc] ss:$12 sps:$4 sm:$0xff]  }
 0x462   :  { %v9996_v6 = vpack.c.bf16 %v2198_v5, %v2194_v2  ;;  %v10472_v2 = vld [vmem:[#allocation10 + $0xc0] ss:$12 sps:$4 sm:$0xff]  }
 0x463   :  { %v10484_v5 = vld [vmem:[#allocation10 + $0xf4] ss:$12 sps:$4 sm:$0xff]  }
 0x464   :  { %9997 = vmatprep.subr.bf16.mxu0 %v9996_v6  ;;  %v10482_v6 = vld [vmem:[#allocation10 + $0xf0] ss:$12 sps:$4 sm:$0xff]  }
 0x465   :  { %9999 = vmatpush1.bf16.msra.mxu0 %v9998_v4  ;;  %v10477_v4 = vld [vmem:[#allocation10 + $0xd8] ss:$12 sps:$4 sm:$0xff]  }
 0x47e   :  { %v2276_v8 = vpop.f32.mrb[16].mxu1 }
 0x47f   :  { %v2277_v9 = vadd.f32 %v9600_v60, %v2276_v8  ;;  %v9868_v10 = vpop.f32.mrb[17].mxu1  ;;  %v10468_v60 = vld [vmem:[#allocation10 + $0x94] ss:$12 sps:$4 sm:$0xff]   ;;  %v10489_v8 = vld [vmem:[#allocation10 + $0x10c] ss:$12 sps:$4 sm:$0xff]  }
 0x480   :  { %v2279_v11 = vpop.f32.mrb[18].mxu1  ;;  %3132 = vmatprep.subr.bf16.mxu1 %v10468_v60  ;;  %v10494_v10 = vld [vmem:[#allocation10 + $0x124] ss:$12 sps:$4 sm:$0xff]  }
 0x481   :  { %v2280_v12 = vadd.f32 %v9603_v63, %v2279_v11  ;;  %v9869_v13 = vpop.f32.mrb[19].mxu1  ;;  %3133 = vmatpush1.bf16.msra.mxu1 %v10466_v61  ;;  %v10469_v63 = vld [vmem:[#allocation10 + $0xa8] ss:$12 sps:$4 sm:$0xff]   ;;  %v10492_v11 = vld [vmem:[#allocation10 + $0x120] ss:$12 sps:$4 sm:$0xff]  }
 0x482   :  { %3134 = vmatprep.subr.bf16.mxu1 %v10471_v62  ;;  %v10497_v13 = vld [vmem:[#allocation10 + $0x138] ss:$12 sps:$4 sm:$0xff]   ;;  %v10519_v61 = vld [vmem:[#allocation10 + $0x1a0] ss:$12 sps:$4 sm:$0xff]  }
 0x483   :  { %v12288_v14 = vpack.c.bf16 %v2280_v12, %v2277_v9  ;;  %v10487_v9 = vld [vmem:[#allocation10 + $0x108] ss:$12 sps:$4 sm:$0xff]   ;;  %v10516_v60 = vld [vmem:[#allocation10 + $0x198] ss:$12 sps:$4 sm:$0xff]  }
 0x484   :  { %v10499_v12 = vld [vmem:[#allocation10 + $0x13c] ss:$12 sps:$4 sm:$0xff]   ;;  %v10522_v62 = vld [vmem:[#allocation10 + $0x1b4] ss:$12 sps:$4 sm:$0xff]  }
 0x485   :  { %10001 = vmatprep.subr.bf16.mxu0 %v12288_v14  ;;  %3135 = vmatpush1.bf16.msra.mxu1 %v10469_v63  ;;  %v10520_v63 = vld [vmem:[#allocation10 + $0x1b0] ss:$12 sps:$4 sm:$0xff]  }
 0x486   :  { %3136 = vmatprep.subr.bf16.mxu1 %v10474_v1  ;;  %v10523_v1 = vld [vmem:[#allocation10 + $0x1b8] ss:$12 sps:$4 sm:$0xff]  }
 0x489   :  { %3137 = vmatpush1.bf16.msra.mxu1 %v10472_v2  ;;  %v10526_v2 = vld [vmem:[#allocation10 + $0x1cc] ss:$12 sps:$4 sm:$0xff]  }
 0x48a   :  { %3138 = vmatprep.subr.bf16.mxu1 %v10479_v3  ;;  %v10524_v3 = vld [vmem:[#allocation10 + $0x1c8] ss:$12 sps:$4 sm:$0xff]  }
 0x48d   :  { %3139 = vmatpush1.bf16.msra.mxu1 %v10477_v4  ;;  %v10527_v4 = vld [vmem:[#allocation10 + $0x1d0] ss:$12 sps:$4 sm:$0xff]  }
 0x48e   :  { %3140 = vmatprep.subr.bf16.mxu1 %v10484_v5  ;;  %v10530_v5 = vld [vmem:[#allocation10 + $0x1e4] ss:$12 sps:$4 sm:$0xff]  }
 0x491   :  { %3141 = vmatpush1.bf16.msra.mxu1 %v10482_v6  ;;  %v10528_v6 = vld [vmem:[#allocation10 + $0x1e0] ss:$12 sps:$4 sm:$0xff]  }
 0x492   :  { %3142 = vmatprep.subr.bf16.mxu1 %v10489_v8  ;;  %v10531_v8 = vld [vmem:[#allocation10 + $0x1e8] ss:$12 sps:$4 sm:$0xff]  }
 0x495   :  { %3143 = vmatpush1.bf16.msra.mxu1 %v10487_v9  ;;  %v10534_v9 = vld [vmem:[#allocation10 + $0x1fc] ss:$12 sps:$4 sm:$0xff]  }
 0x496   :  { %3144 = vmatprep.subr.bf16.mxu1 %v10494_v10  ;;  %v10532_v10 = vld [vmem:[#allocation10 + $0x1f8] ss:$12 sps:$4 sm:$0xff]  }
 0x499   :  { %3145 = vmatpush1.bf16.msra.mxu1 %v10492_v11  ;;  %v10535_v11 = vld [vmem:[#allocation10 + $0x200] ss:$12 sps:$4 sm:$0xff]  }
 0x49a   :  { %3146 = vmatprep.subr.bf16.mxu1 %v10499_v12  ;;  %v10538_v12 = vld [vmem:[#allocation10 + $0x214] ss:$12 sps:$4 sm:$0xff]  }
 0x49d   :  { %3147 = vmatpush1.bf16.msra.mxu1 %v10497_v13  ;;  %v10536_v13 = vld [vmem:[#allocation10 + $0x210] ss:$12 sps:$4 sm:$0xff]  }
 0x4d3   :  { %v2349_v31 = vpop.f32.mrb[16].mxu0 }
 0x4d4   :  { %v2351_v15 = vpop.f32.mrb[17].mxu0 }
 0x4d7   :  { %v2354_v17 = vpop.f32.mrb[18].mxu0 }
 0x4d8   :  { %v2356_v20 = vpop.f32.mrb[19].mxu0 }
 0x4df   :  { %v9876_v21 = vpop.f32.mrb[20].mxu0 }
 0x4e0   :  { %v2430_v22 = vadd.f32 %v9876_v21, %v2354_v17  ;;  %v2424_v26 = vpop.f32.mrb[21].mxu0  ;;  %v10475_v21 = vld [vmem:[#allocation10 + $0xc8] ss:$12 sps:$4 sm:$0xff]  }
 0x4e1   :  { %v2425_v28 = vadd.f32 %v2424_v26, %v2349_v31 }
 0x4e2   :  { %v2434_v33 = vmul.f32 0.05103104, %v2430_v22 }
 0x4e3   :  { %v2433_v34 = vmul.f32 0.05103104, %v2425_v28  ;;  %v10476_v28 = vld [vmem:[#allocation10 + $0x8] ss:$12 sps:$4 sm:$0xff]  }
 0x4e4   :  { %v2438_v37 = vadd.f32 %v2436_v35, %v2434_v33  ;;  %v10481_v33 = vld [vmem:[#allocation10 + $0x20] ss:$12 sps:$4 sm:$0xff]   ;;  %v10486_v35 = vld [vmem:[#allocation10 + $0x38] ss:$12 sps:$4 sm:$0xff]  }
 0x4e5   :  { %v2437_v36 = vadd.f32 %v2435_v32, %v2433_v34  ;;  %v10480_v32 = vld [vmem:[#allocation10 + $0xe0] ss:$12 sps:$4 sm:$0xff]   ;;  %v10485_v34 = vld [vmem:[#allocation10 + $0xf8] ss:$12 sps:$4 sm:$0xff]  }
 0x4e6   :  { %v2443_v38 = vsel %vm2439_vm3, %v2438_v37, -inf }
 0x4e7   :  { %v2440_v29 = vsel %vm2439_vm3, %v2437_v36, -inf }
 0x4e8   :  { %2441 = vmax.xlane.f32.xlu1 %v2440_v29  ;;  %v10495_v29 = vld [vmem:[#allocation10 + $0x128] ss:$12 sps:$4 sm:$0xff]  }
 0x4ec   :  { %2444 = vmax.xlane.f32.xlu1 %v2443_v38  ;;  %v10500_v38 = vld [vmem:[#allocation10 + $0x140] ss:$12 sps:$4 sm:$0xff]  }
 0x575   :  { %v2442_v39 = vpop.xlane.xlu1 %2441 }
 0x576   :  { %v2446_v40 = vsub.f32 %v2437_v36, %v2442_v39  ;;  %v10491_v36 = vld [vmem:[#allocation10 + $0x50] ss:$12 sps:$4 sm:$0xff]   ;;  %v10501_v39 = vld [vmem:[#allocation10 + $0x80] ss:$12 sps:$4 sm:$0xff]  }
 0x578   :  { %v2448_v41 = vmul.f32 1.442695, %v2446_v40  ;;  %v10504_v40 = vld [vmem:[#allocation10 + $0x154] ss:$12 sps:$4 sm:$0xff]  }
 0x579   :  { %v2445_v42 = vpop.xlane.xlu1 %2444  ;;  %3148 = vmatprep.subr.bf16.mxu1 %v10504_v40 }
 0x57a   :  { %11384 = vpow2.f32 %v2448_v41  ;;  %v2447_v43 = vsub.f32 %v2438_v37, %v2445_v42  ;;  %v10496_v37 = vld [vmem:[#allocation10 + $0x68] ss:$12 sps:$4 sm:$0xff]   ;;  %v10505_v41 = vld [vmem:[#allocation10 + $0x158] ss:$12 sps:$4 sm:$0xff]   ;;  %v10502_v42 = vld [vmem:[#allocation10 + $0x150] ss:$12 sps:$4 sm:$0xff]  }
 0x57b   :  { %3149 = vmatpush1.bf16.msra.mxu1 %v10502_v42 }
 0x57c   :  { %v2450_v44 = vmul.f32 1.442695, %v2447_v43  ;;  %v10506_v43 = vld [vmem:[#allocation10 + $0x98] ss:$12 sps:$4 sm:$0xff]  }
 0x57e   :  { %11386 = vpow2.f32 %v2450_v44  ;;  %v10509_v44 = vld [vmem:[#allocation10 + $0x16c] ss:$12 sps:$4 sm:$0xff]  }
 0x57f   :  { %3150 = vmatprep.subr.bf16.mxu1 %v10509_v44 }
 0x584   :  { %v12293_v45 = vpop.eup %11384 }
 0x585   :  { %v2452_v46 = vsel %vm2439_vm3, %v12293_v45, 0.0 }
 0x586   :  { %2453 = vadd.xlane.f32.xlu0 %v2452_v46  ;;  %v10507_v46 = vld [vmem:[#allocation10 + $0x168] ss:$12 sps:$4 sm:$0xff]  }
 0x587   :  { %3151 = vmatpush1.bf16.msra.mxu1 %v10507_v46 }
 0x588   :  { %v12297_v47 = vpop.eup %11386 }
 0x589   :  { %v2455_v48 = vsel %vm2439_vm3, %v12297_v47, 0.0 }
 0x58a   :  { %2456 = vadd.xlane.f32.xlu1 %v2455_v48  ;;  %v10514_v48 = vld [vmem:[#allocation10 + $0x184] ss:$12 sps:$4 sm:$0xff]  }
 0x58b   :  { %3163 = vmatprep.subr.bf16.mxu1 %v10514_v48 }
 0x613   :  { %v2454_v31 = vpop.xlane.xlu0 %2453 }
 0x614   :  { %11388 = vrcp.f32 %v2454_v31  ;;  %v10539_v31 = vld [vmem:[#allocation10 + $0x218] ss:$12 sps:$4 sm:$0xff]  }
 0x617   :  { %v2457_v15 = vpop.xlane.xlu1 %2456 }
 0x618   :  { %11390 = vrcp.f32 %v2457_v15  ;;  %v10542_v15 = vld [vmem:[#allocation10 + $0x22c] ss:$12 sps:$4 sm:$0xff]  }
 0x61e   :  { %v11389_v17 = vpop.eup %11388 }
 0x61f   :  { %v2460_v20 = vmul.f32 %v11389_v17, %v12293_v45  ;;  %v10510_v45 = vld [vmem:[#allocation10 + $0x170] ss:$12 sps:$4 sm:$0xff]   ;;  %v10540_v17 = vld [vmem:[#allocation10 + $0x228] ss:$12 sps:$4 sm:$0xff]  }
 0x621   :  { %8887 = vmatmul.mubr.msk.f32.vlgmr.msra.gmra.mrb[22].mxu0 %vm2439_vm3, %v2460_v20 }
 0x622   :  { %v11391_v22 = vpop.eup %11390  ;;  %10003 = vmatpush3.bf16.msra.mxu0 %v12288_v14  ;;  %2538 = vmatprep.mubr.f32.mxu0 %v11875_v7  ;;  %v10490_v14 = vld [vmem:[#allocation10 + $0x110] ss:$12 sps:$4 sm:$0xff]  }
 0x623   :  { %v2461_v26 = vmul.f32 %v11391_v22, %v12297_v47  ;;  %9621 = vmatprep.subr.bf16.mxu0 %v10475_v21  ;;  %v10511_v47 = vld [vmem:[#allocation10 + $0xb0] ss:$12 sps:$4 sm:$0xff]  }
 0x625   :  { %8888 = vmatmul.mubr.msk.f32.gmra.mrb[24].mxu0 %vm2439_vm3, %v2461_v26 }
 0x626   :  { %9881 = vmatprep.mubr.msk.f32.mxu0 %vm2439_vm3, %v2460_v20  ;;  %v10543_v20 = vld [vmem:[#allocation10 + $0x230] ss:$12 sps:$4 sm:$0xff]  }
 0x629   :  { %9882 = vmatmul.mubr.msk.f32.vlgmr.msra.gmra.mrb[26].mxu0 %vm2439_vm3, %v2461_v26 }
 0x62a   :  { %9622 = vmatpush3.bf16.msra.mxu0 %v10476_v28 }
 0x62b   :  { %9623 = vmatprep.subr.bf16.mxu0 %v10480_v32 }
 0x62e   :  { %9624 = vmatpush3.bf16.msra.mxu0 %v10481_v33 }
 0x62f   :  { %9625 = vmatprep.subr.bf16.mxu0 %v10485_v34  ;;  %v12321_v34 = vshrl.u32 %v290_v16, 7 }
 0x632   :  { %9626 = vmatpush3.bf16.msra.mxu0 %v10486_v35  ;;  %v12324_v35 = vsub.s32 2, %v12321_v34 }
 0x633   :  { %9627 = vmatprep.subr.bf16.mxu0 %v10490_v14  ;;  %v2719_v14 = vld [vmem:[#allocation11] sm:$0x7] }
 0x636   :  { %9628 = vmatpush3.bf16.msra.mxu0 %v10491_v36  ;;  %v12327_v36 = vsub.s32 0, %v12321_v34 }
 0x637   :  { %9629 = vmatprep.subr.bf16.mxu0 %v10495_v29  ;;  %v12330_v29 = vsub.s32 1, %v12321_v34 }
 0x63a   :  { %9630 = vmatpush3.bf16.msra.mxu0 %v10496_v37  ;;  %v2732_v37 = vrot.slane %v2719_v14, %v12324_v35 }
 0x63b   :  { %9631 = vmatprep.subr.bf16.mxu0 %v10500_v38  ;;  %v2724_v38 = vrot.slane %v2719_v14, %v12327_v36 }
 0x63e   :  { %9632 = vmatpush3.bf16.msra.mxu0 %v10501_v39  ;;  %v2728_v39 = vrot.slane %v2719_v14, %v12330_v29  ;;  %v10588_v14 = vld [vmem:[#allocation16 + $0x2a4] ss:$48 sps:$4 sm:$0xff]  }
 0x63f   :  { %9633 = vmatprep.subr.bf16.mxu0 %v10505_v41 }
 0x642   :  { %9634 = vmatpush3.bf16.msra.mxu0 %v10506_v43 }
 0x643   :  { %9635 = vmatprep.subr.bf16.mxu0 %v10510_v45 }
 0x646   :  { %9636 = vmatpush3.bf16.msra.mxu0 %v10511_v47 }
 0x647   :  { %9884 = vmatprep.subr.bf16.mxu0 %v11875_v7 }
 0x6f4   :  { %v2534_v49 = vpop.f32.mrb[22].mxu0 }
 0x6f5   :  { %v2536_v50 = vpop.f32.mrb[23].mxu0 }
 0x6f8   :  { %v2540_v51 = vpop.f32.mrb[24].mxu0 }
 0x6f9   :  { %v2620_v52 = vpack.c.bf16 %v2540_v51, %v2534_v49  ;;  %v2542_v53 = vpop.f32.mrb[25].mxu0 }
 0x6fa   :  { %v2621_v54 = vpack.c.bf16 %v2542_v53, %v2536_v50 }
 0x6fc   :  { %v9883_v58 = vpop.f32.mrb[26].mxu0  ;;  %3152 = vmatprep.mubr.bf16.mxu1 %v2621_v54  ;;  %3238 = vmatprep.mubr.bf16.mxu0 %v2621_v54 }
 0x6fd   :  { %v2611_v30 = vpop.f32.mrb[27].mxu0  ;;  %3153 = vmatmul.mubr.bf16.vlgmr.msra.gmra.mrb[20].mxu1 %v2620_v52  ;;  %3239 = vmatmul.mubr.bf16.vlgmr.msra.gmra.mrb[28].mxu0 %v2620_v52 }
 0x6fe   :  { %v2622_v59 = vpack.c.bf16 %v9883_v58, %v2611_v30  ;;  %3164 = vmatpush1.bf16.msra.mxu1 %v10512_v55  ;;  %9885 = vmatpush3.bf16.msra.mxu0 %v10515_v56 }
 0x6ff   :  { %3165 = vmatprep.subr.bf16.mxu1 %v10518_v57  ;;  %9886 = vmatprep.subr.bf16.mxu0 %v11875_v7 }
 0x700   :  { %3195 = vmatprep.mubr.bf16.mxu1 %v11874_v0  ;;  %9900 = vmatprep.mubr.msk.bf16.mxu0 %vm11877_vm2, %v11875_v7 }
 0x702   :  { %3166 = vmatpush1.bf16.msra.mxu1 %v10516_v60  ;;  %9887 = vmatpush3.bf16.msra.mxu0 %v10519_v61  ;;  %v10546_v61 = vld [vmem:[#allocation16 + $0x4] ss:$48 sps:$4 sm:$0xff]  }
 0x703   :  { %3167 = vmatprep.subr.bf16.mxu1 %v10522_v62  ;;  %9888 = vmatprep.subr.bf16.mxu0 %v11875_v7  ;;  %v10547_v62 = vld [vmem:[#allocation16 + $0x8] ss:$48 sps:$4 sm:$0xff]  }
 0x706   :  { %3168 = vmatpush1.bf16.msra.mxu1 %v10520_v63  ;;  %9889 = vmatpush3.bf16.msra.mxu0 %v10523_v1  ;;  %v10552_v63 = vld [vmem:[#allocation16 + $0x64] ss:$48 sps:$4 sm:$0xff]   ;;  %v10555_v1 = vld [vmem:[#allocation16 + $0x6c] ss:$48 sps:$4 sm:$0xff]  }
 0x707   :  { %3169 = vmatprep.subr.bf16.mxu1 %v10526_v2  ;;  %9890 = vmatprep.subr.bf16.mxu0 %v11875_v7  ;;  %v10550_v2 = vld [vmem:[#allocation16 + $0x60] ss:$48 sps:$4 sm:$0xff]  }
 0x70a   :  { %3170 = vmatpush1.bf16.msra.mxu1 %v10524_v3  ;;  %9891 = vmatpush3.bf16.msra.mxu0 %v10527_v4  ;;  %v10553_v3 = vld [vmem:[#allocation16 + $0x68] ss:$48 sps:$4 sm:$0xff]   ;;  %v10558_v4 = vld [vmem:[#allocation16 + $0xc4] ss:$48 sps:$4 sm:$0xff]  }
 0x70b   :  { %3171 = vmatprep.subr.bf16.mxu1 %v10530_v5  ;;  %9892 = vmatprep.subr.bf16.mxu0 %v11875_v7  ;;  %v10556_v5 = vld [vmem:[#allocation16 + $0xc0] ss:$48 sps:$4 sm:$0xff]  }
 0x70e   :  { %3172 = vmatpush1.bf16.msra.mxu1 %v10528_v6  ;;  %9893 = vmatpush3.bf16.msra.mxu0 %v10531_v8  ;;  %v10559_v6 = vld [vmem:[#allocation16 + $0xc8] ss:$48 sps:$4 sm:$0xff]   ;;  %v10564_v8 = vld [vmem:[#allocation16 + $0x124] ss:$48 sps:$4 sm:$0xff]  }
 0x70f   :  { %3173 = vmatprep.subr.bf16.mxu1 %v10534_v9  ;;  %9894 = vmatprep.subr.bf16.mxu0 %v11875_v7  ;;  %v10567_v9 = vld [vmem:[#allocation16 + $0x12c] ss:$48 sps:$4 sm:$0xff]  }
 0x712   :  { %3174 = vmatpush1.bf16.msra.mxu1 %v10532_v10  ;;  %9895 = vmatpush3.bf16.msra.mxu0 %v10535_v11  ;;  %v10562_v10 = vld [vmem:[#allocation16 + $0x120] ss:$48 sps:$4 sm:$0xff]   ;;  %v10565_v11 = vld [vmem:[#allocation16 + $0x128] ss:$48 sps:$4 sm:$0xff]  }
 0x713   :  { %3175 = vmatprep.subr.bf16.mxu1 %v10538_v12  ;;  %9896 = vmatprep.subr.bf16.mxu0 %v11875_v7  ;;  %v10570_v12 = vld [vmem:[#allocation16 + $0x184] ss:$48 sps:$4 sm:$0xff]  }
 0x716   :  { %3176 = vmatpush1.bf16.msra.mxu1 %v10536_v13  ;;  %9897 = vmatpush3.bf16.msra.mxu0 %v10539_v31  ;;  %v10573_v13 = vld [vmem:[#allocation16 + $0x18c] ss:$48 sps:$4 sm:$0xff]   ;;  %v10568_v31 = vld [vmem:[#allocation16 + $0x180] ss:$48 sps:$4 sm:$0xff]  }
 0x717   :  { %3177 = vmatprep.subr.bf16.mxu1 %v10542_v15  ;;  %9898 = vmatprep.subr.bf16.mxu0 %v11875_v7  ;;  %v10571_v15 = vld [vmem:[#allocation16 + $0x188] ss:$48 sps:$4 sm:$0xff]  }
 0x71a   :  { %3178 = vmatpush1.bf16.msra.mxu1 %v10540_v17  ;;  %9899 = vmatpush3.bf16.msra.mxu0 %v10543_v20  ;;  %v10576_v17 = vld [vmem:[#allocation16 + $0x1e4] ss:$48 sps:$4 sm:$0xff]   ;;  %v10579_v20 = vld [vmem:[#allocation16 + $0x1ec] ss:$48 sps:$4 sm:$0xff]  }
 0x71b   :  { %5178 = vmatprep.subr.bf16.mxu0 %v10546_v61 }
 0x71d   :  { %3196 = vmatmul.mubr.bf16.vlgmr.msra.gmra.mrb[20].mxu1 %v2622_v59  ;;  %9901 = vmatmul.mubr.bf16.vlgmr.msra.gmra.mrb[32].mxu0 %v2622_v59 }
 0x7d0   :  { %v9637_v21 = vpop.f32.mrb[28].mxu0 }
 0x7d1   :  { %v9638_v22 = vpop.f32.mrb[29].mxu0 }
 0x7d2   :  { %v9639_v26 = vadd.f32 %v9638_v22, %v9637_v21  ;;  %v9640_v28 = vpop.f32.mrb[30].mxu0  ;;  %v10574_v21 = vld [vmem:[#allocation16 + $0x1e0] ss:$48 sps:$4 sm:$0xff]   ;;  %v10577_v22 = vld [vmem:[#allocation16 + $0x1e8] ss:$48 sps:$4 sm:$0xff]  }
 0x7d3   :  { %v9641_v32 = vpop.f32.mrb[31].mxu0 }
 0x7d4   :  { %v9642_v33 = vadd.f32 %v9641_v32, %v9640_v28  ;;  %v3241_v40 = vadd.f32 %v9639_v26, %v2732_v37  ;;  %v10582_v26 = vld [vmem:[#allocation16 + $0x244] ss:$48 sps:$4 sm:$0xff]   ;;  %v10585_v28 = vld [vmem:[#allocation16 + $0x24c] ss:$48 sps:$4 sm:$0xff]   ;;  %v10580_v32 = vld [vmem:[#allocation16 + $0x240] ss:$48 sps:$4 sm:$0xff]  }
 0x7d6   :  { %v3244_v46 = vadd.f32 %v9642_v33, %v2732_v37  ;;  %v10583_v33 = vld [vmem:[#allocation16 + $0x248] ss:$48 sps:$4 sm:$0xff]   ;;  %v10591_v37 = vld [vmem:[#allocation16 + $0x2ac] ss:$48 sps:$4 sm:$0xff]  }
 0x7f0   :  { %v3197_v41 = vpop.f32.mrb[20].mxu1  ;;  %v3281_v16 = vpop.f32.mrb[32].mxu0 }
 0x7f1   :  { %v10008_v42 = vadd.f32 %v3197_v41, %v2724_v38  ;;  %v3282_v43 = vadd.f32 %v3281_v16, %v3241_v40  ;;  %v3199_v44 = vpop.f32.mrb[21].mxu1  ;;  %v9902_v45 = vpop.f32.mrb[33].mxu0  ;;  %v10594_v40 = vld [vmem:[#allocation16 + $0x304] ss:$48 sps:$4 sm:$0xff]   ;;  %v10597_v41 = vld [vmem:[#allocation16 + $0x30c] ss:$48 sps:$4 sm:$0xff]  }
 0x7f2   :  { %v10009_v47 = vadd.f32 %v3199_v44, %v2728_v39  ;;  %v3201_v48 = vpop.f32.mrb[22].mxu1  ;;  %v3284_v49 = vpop.f32.mrb[34].mxu0  ;;  %v10592_v16 = vld [vmem:[#allocation16 + $0x300] ss:$48 sps:$4 sm:$0xff]   ;;  %v10603_v44 = vld [vmem:[#allocation16 + $0x36c] ss:$48 sps:$4 sm:$0xff]  }
 0x7f3   :  { %v12336_v50 = vadd.f32 %v10008_v42, %v12245_v27  ;;  %v10010_v51 = vadd.f32 %v3201_v48, %v2724_v38  ;;  %v3285_v52 = vadd.f32 %v3284_v49, %v3244_v46  ;;  %v3203_v53 = vpop.f32.mrb[23].mxu1  ;;  %v9903_v54 = vpop.f32.mrb[35].mxu0  ;;  %v12345_v58 = vadd.f32 %v3282_v43, %v12243_v25  ;;  %v10544_v25 = vld [vmem:[#allocation16] ss:$48 sps:$4 sm:$0xff]   ;;  %v10595_v42 = vld [vmem:[#allocation16 + $0x308] ss:$48 sps:$4 sm:$0xff]  }
 0x7f4   :  { %v12339_v55 = vadd.f32 %v10009_v47, %v12239_v23  ;;  %v10011_v56 = vadd.f32 %v3203_v53, %v2728_v39  ;;  %5179 = vmatpush1.bf16.msra.mxu0 %v10544_v25  ;;  %v10586_v38 = vld [vmem:[#allocation16 + $0x2a0] ss:$48 sps:$4 sm:$0xff]   ;;  %v10589_v39 = vld [vmem:[#allocation16 + $0x2a8] ss:$48 sps:$4 sm:$0xff]   ;;  %v10600_v43 = vld [vmem:[#allocation16 + $0x364] ss:$48 sps:$4 sm:$0xff]  }
 0x7f5   :  { %v12342_v57 = vadd.f32 %v10010_v51, %v12235_v18  ;;  %v12356_v23 = vadd.f32 %v3285_v52, %v12237_v19  ;;  %5180 = vmatprep.subr.bf16.mxu0 %v10552_v63  ;;  %v10561_v19 = vld [vmem:[#allocation16 + $0xcc] ss:$48 sps:$4 sm:$0xff]   ;;  %v10598_v45 = vld [vmem:[#allocation16 + $0x360] ss:$48 sps:$4 sm:$0xff]   ;;  %v10601_v46 = vld [vmem:[#allocation16 + $0x368] ss:$48 sps:$4 sm:$0xff]  }
 0x7f6   :  { %v12348_v30 = vadd.f32 %v10011_v56, %v12241_v24  ;;  %v3296_v27 = vadd.f32 %v12339_v55, %v12336_v50  ;;  %v10549_v24 = vld [vmem:[#allocation16 + $0xc] ss:$48 sps:$4 sm:$0xff]  }
 0x7f7   :  { %5264 = vmatprep.subr.bf16.mxu1 %v10549_v24  ;;  %v10609_v63 = vld [vmem:[#allocation16 + $0x3cc] ss:$48 sps:$4 sm:$0xff]  }
 0x7f8   :  { %v3297_v59 = vadd.f32 %v3296_v27, %v12345_v58  ;;  %v3300_v60 = vadd.f32 %v12348_v30, %v12342_v57  ;;  %5265 = vmatpush1.bf16.msra.mxu1 %v10547_v62  ;;  %5181 = vmatpush1.bf16.msra.mxu0 %v10550_v2  ;;  %v10612_v2 = vld [vmem:[#allocation16 + $0x424] ss:$48 sps:$4 sm:$0xff]  }
 0x7f9   :  { %5266 = vmatprep.subr.bf16.mxu1 %v10555_v1  ;;  %5182 = vmatprep.subr.bf16.mxu0 %v10558_v4  ;;  %v10604_v1 = vld [vmem:[#allocation16 + $0x3c0] ss:$48 sps:$4 sm:$0xff]  }
 0x7fa   :  { %3298 = vadd.xlane.f32.xlu1 %v3297_v59  ;;  %v3301_v18 = vadd.f32 %v3300_v60, %v12356_v23  ;;  %v10610_v4 = vld [vmem:[#allocation16 + $0x420] ss:$48 sps:$4 sm:$0xff]  }
 0x7fc   :  { %5267 = vmatpush1.bf16.msra.mxu1 %v10553_v3  ;;  %5183 = vmatpush1.bf16.msra.mxu0 %v10556_v5  ;;  %v10615_v3 = vld [vmem:[#allocation16 + $0x42c] ss:$48 sps:$4 sm:$0xff]   ;;  %v10616_v5 = vld [vmem:[#allocation16 + $0x480] ss:$48 sps:$4 sm:$0xff]  }
 0x7fd   :  { %5268 = vmatprep.subr.bf16.mxu1 %v10561_v19  ;;  %5184 = vmatprep.subr.bf16.mxu0 %v10564_v8  ;;  %v10613_v19 = vld [vmem:[#allocation16 + $0x428] ss:$48 sps:$4 sm:$0xff]  }
 0x7fe   :  { %3302 = vadd.xlane.f32.xlu1 %v3301_v18  ;;  %v10619_v8 = vld [vmem:[#allocation16 + $0x488] ss:$48 sps:$4 sm:$0xff]  }
 0x800   :  { %5269 = vmatpush1.bf16.msra.mxu1 %v10559_v6  ;;  %5185 = vmatpush1.bf16.msra.mxu0 %v10562_v10  ;;  %v10618_v6 = vld [vmem:[#allocation16 + $0x484] ss:$48 sps:$4 sm:$0xff]  }
 0x801   :  { %5270 = vmatprep.subr.bf16.mxu1 %v10567_v9  ;;  %5186 = vmatprep.subr.bf16.mxu0 %v10570_v12  ;;  %v10621_v9 = vld [vmem:[#allocation16 + $0x48c] ss:$48 sps:$4 sm:$0xff]   ;;  %v10624_v10 = vld [vmem:[#allocation16 + $0x4e4] ss:$48 sps:$4 sm:$0xff]   ;;  %v10622_v12 = vld [vmem:[#allocation16 + $0x4e0] ss:$48 sps:$4 sm:$0xff]  }
 0x804   :  { %5271 = vmatpush1.bf16.msra.mxu1 %v10565_v11  ;;  %5187 = vmatpush1.bf16.msra.mxu0 %v10568_v31  ;;  %v10627_v11 = vld [vmem:[#allocation16 + $0x4ec] ss:$48 sps:$4 sm:$0xff]   ;;  %v10630_v31 = vld [vmem:[#allocation16 + $0x544] ss:$48 sps:$4 sm:$0xff]  }
 0x805   :  { %5272 = vmatprep.subr.bf16.mxu1 %v10573_v13  ;;  %5188 = vmatprep.subr.bf16.mxu0 %v10576_v17  ;;  %v10625_v13 = vld [vmem:[#allocation16 + $0x4e8] ss:$48 sps:$4 sm:$0xff]   ;;  %v10628_v17 = vld [vmem:[#allocation16 + $0x540] ss:$48 sps:$4 sm:$0xff]  }
 0x808   :  { %5273 = vmatpush1.bf16.msra.mxu1 %v10571_v15  ;;  %5189 = vmatpush1.bf16.msra.mxu0 %v10574_v21  ;;  %v10633_v15 = vld [vmem:[#allocation16 + $0x54c] ss:$48 sps:$4 sm:$0xff]   ;;  %v10636_v21 = vld [vmem:[#allocation16 + $0x5a4] ss:$48 sps:$4 sm:$0xff]  }
 0x809   :  { %5274 = vmatprep.subr.bf16.mxu1 %v10579_v20  ;;  %5190 = vmatprep.subr.bf16.mxu0 %v10582_v26  ;;  %v10631_v20 = vld [vmem:[#allocation16 + $0x548] ss:$48 sps:$4 sm:$0xff]   ;;  %v10634_v26 = vld [vmem:[#allocation16 + $0x5a0] ss:$48 sps:$4 sm:$0xff]  }
 0x80c   :  { %5275 = vmatpush1.bf16.msra.mxu1 %v10577_v22  ;;  %5191 = vmatpush1.bf16.msra.mxu0 %v10580_v32  ;;  %v10639_v22 = vld [vmem:[#allocation16 + $0x5ac] ss:$48 sps:$4 sm:$0xff]   ;;  %v10642_v32 = vld [vmem:[#allocation16 + $0x604] ss:$48 sps:$4 sm:$0xff]  }
 0x80d   :  { %5276 = vmatprep.subr.bf16.mxu1 %v10585_v28  ;;  %5192 = vmatprep.subr.bf16.mxu0 %v10588_v14  ;;  %v10637_v28 = vld [vmem:[#allocation16 + $0x5a8] ss:$48 sps:$4 sm:$0xff]  }
 0x810   :  { %5277 = vmatpush1.bf16.msra.mxu1 %v10583_v33  ;;  %5193 = vmatpush1.bf16.msra.mxu0 %v10586_v38  ;;  %v10645_v33 = vld [vmem:[#allocation16 + $0x60c] ss:$48 sps:$4 sm:$0xff]  }
 0x811   :  { %5278 = vmatprep.subr.bf16.mxu1 %v10591_v37  ;;  %5194 = vmatprep.subr.bf16.mxu0 %v10594_v40 }
 0x814   :  { %5279 = vmatpush1.bf16.msra.mxu1 %v10589_v39  ;;  %5195 = vmatpush1.bf16.msra.mxu0 %v10592_v16  ;;  %v12389_v16 = vld [vmem:[#allocation13] sm:$0x7] }
 0x815   :  { %5280 = vmatprep.subr.bf16.mxu1 %v10597_v41  ;;  %5196 = vmatprep.subr.bf16.mxu0 %v10600_v43  ;;  %v12393_v43 = vld [vmem:[#allocation14] sm:$0x7] }
 0x818   :  { %5281 = vmatpush1.bf16.msra.mxu1 %v10595_v42  ;;  %5197 = vmatpush1.bf16.msra.mxu0 %v10598_v45  ;;  %v3347_v45 = vrot.slane %v12389_v16, %v12330_v29 }
 0x819   :  { %5282 = vmatprep.subr.bf16.mxu1 %v10603_v44 }
 0x81c   :  { %5283 = vmatpush1.bf16.msra.mxu1 %v10601_v46 }
 0x81d   :  { %5284 = vmatprep.subr.bf16.mxu1 %v10609_v63  ;;  %v10651_v63 = vld [vmem:[#allocation16 + $0x66c] ss:$48 sps:$4 sm:$0xff]  }
 0x887   :  { %v3299_v47 = vpop.xlane.xlu1 %3298 }
 0x888   :  { %v3305_v48 = vmul.f32 0.0026041667, %v3299_v47  ;;  %v3343_v47 = vrot.slane %v12389_v16, %v12327_v36 }
 0x88a   :  { %v12360_v49 = vsub.f32 %v12336_v50, %v3305_v48  ;;  %v12363_v51 = vsub.f32 %v12339_v55, %v3305_v48  ;;  %v12366_v52 = vsub.f32 %v12345_v58, %v3305_v48 }
 0x88b   :  { %v3303_v53 = vpop.xlane.xlu1 %3302 }
 0x88c   :  { %v3306_v54 = vmul.f32 0.0026041667, %v3303_v53  ;;  %v3313_v56 = vmul.f32 %v12360_v49, %v12360_v49  ;;  %v3314_v27 = vmul.f32 %v12363_v51, %v12363_v51  ;;  %v3315_v59 = vmul.f32 %v12366_v52, %v12366_v52 }
 0x88d   :  { %v3369_v53 = vrot.slane %v12393_v43, %v12330_v29 }
 0x88e   :  { %v12375_v50 = vsub.f32 %v12342_v57, %v3306_v54  ;;  %v12378_v55 = vsub.f32 %v12348_v30, %v3306_v54  ;;  %v12381_v58 = vsub.f32 %v12356_v23, %v3306_v54  ;;  %v3319_v60 = vadd.f32 %v3314_v27, %v3313_v56  ;;  %v10606_v30 = vld [vmem:[#allocation16 + $0x3c4] ss:$48 sps:$4 sm:$0xff]   ;;  %v10607_v23 = vld [vmem:[#allocation16 + $0x3c8] ss:$48 sps:$4 sm:$0xff]  }
 0x88f   :  { %5198 = vmatprep.subr.bf16.mxu0 %v10606_v30  ;;  %5285 = vmatpush1.bf16.msra.mxu1 %v10607_v23  ;;  %v3365_v54 = vrot.slane %v12393_v43, %v12327_v36  ;;  %v10648_v30 = vld [vmem:[#allocation16 + $0x664] ss:$48 sps:$4 sm:$0xff]   ;;  %v10649_v23 = vld [vmem:[#allocation16 + $0x668] ss:$48 sps:$4 sm:$0xff]  }
 0x890   :  { %v3320_v18 = vadd.f32 %v3319_v60, %v3315_v59  ;;  %v3316_v25 = vmul.f32 %v12375_v50, %v12375_v50  ;;  %v3317_v61 = vmul.f32 %v12378_v55, %v12378_v55  ;;  %v3318_v62 = vmul.f32 %v12381_v58, %v12381_v58  ;;  %5199 = vmatpush1.bf16.msra.mxu0 %v10604_v1  ;;  %v10646_v1 = vld [vmem:[#allocation16 + $0x660] ss:$48 sps:$4 sm:$0xff]  }
 0x891   :  { %5200 = vmatprep.subr.bf16.mxu0 %v10612_v2  ;;  %5286 = vmatprep.subr.bf16.mxu1 %v10615_v3  ;;  %v10654_v2 = vld [vmem:[#allocation16 + $0x6c4] ss:$48 sps:$4 sm:$0xff]   ;;  %v10657_v3 = vld [vmem:[#allocation16 + $0x6cc] ss:$48 sps:$4 sm:$0xff]  }
 0x892   :  { %3321 = vadd.xlane.f32.xlu1 %v3320_v18  ;;  %v3323_v57 = vadd.f32 %v3317_v61, %v3316_v25 }
 0x893   :  { %5287 = vmatpush1.bf16.msra.mxu1 %v10613_v19  ;;  %v10655_v19 = vld [vmem:[#allocation16 + $0x6c8] ss:$48 sps:$4 sm:$0xff]  }
 0x894   :  { %v3324_v24 = vadd.f32 %v3323_v57, %v3318_v62  ;;  %5201 = vmatpush1.bf16.msra.mxu0 %v10610_v4  ;;  %5288 = vmatprep.subr.bf16.mxu1 %v10621_v9  ;;  %v10652_v4 = vld [vmem:[#allocation16 + $0x6c0] ss:$48 sps:$4 sm:$0xff]   ;;  %v10661_v9 = vld [vmem:[#allocation16 + $0x728] ss:$48 sps:$4 sm:$0xff]  }
 0x895   :  { %5202 = vmatprep.subr.bf16.mxu0 %v10618_v6  ;;  %v10663_v6 = vld [vmem:[#allocation16 + $0x72c] ss:$48 sps:$4 sm:$0xff]  }
 0x896   :  { %3325 = vadd.xlane.f32.xlu1 %v3324_v24  ;;  %v10643_v24 = vld [vmem:[#allocation16 + $0x608] ss:$48 sps:$4 sm:$0xff]  }
 0x897   :  { %5289 = vmatpush1.bf16.msra.mxu1 %v10619_v8  ;;  %v10658_v8 = vld [vmem:[#allocation16 + $0x720] ss:$48 sps:$4 sm:$0xff]  }
 0x898   :  { %5203 = vmatpush1.bf16.msra.mxu0 %v10616_v5  ;;  %5290 = vmatprep.subr.bf16.mxu1 %v10627_v11  ;;  %v10660_v5 = vld [vmem:[#allocation16 + $0x724] ss:$48 sps:$4 sm:$0xff]   ;;  %v10669_v11 = vld [vmem:[#allocation16 + $0x78c] ss:$48 sps:$4 sm:$0xff]  }
 0x899   :  { %5204 = vmatprep.subr.bf16.mxu0 %v10624_v10  ;;  %v10666_v10 = vld [vmem:[#allocation16 + $0x784] ss:$48 sps:$4 sm:$0xff]  }
 0x89b   :  { %5291 = vmatpush1.bf16.msra.mxu1 %v10625_v13  ;;  %v10667_v13 = vld [vmem:[#allocation16 + $0x788] ss:$48 sps:$4 sm:$0xff]  }
 0x89c   :  { %5205 = vmatpush1.bf16.msra.mxu0 %v10622_v12  ;;  %5292 = vmatprep.subr.bf16.mxu1 %v10633_v15  ;;  %v10664_v12 = vld [vmem:[#allocation16 + $0x780] ss:$48 sps:$4 sm:$0xff]   ;;  %v10675_v15 = vld [vmem:[#allocation16 + $0x7ec] ss:$48 sps:$4 sm:$0xff]  }
 0x89d   :  { %5206 = vmatprep.subr.bf16.mxu0 %v10630_v31  ;;  %v10672_v31 = vld [vmem:[#allocation16 + $0x7e4] ss:$48 sps:$4 sm:$0xff]  }
 0x89f   :  { %5293 = vmatpush1.bf16.msra.mxu1 %v10631_v20  ;;  %v10673_v20 = vld [vmem:[#allocation16 + $0x7e8] ss:$48 sps:$4 sm:$0xff]  }
 0x8a0   :  { %5207 = vmatpush1.bf16.msra.mxu0 %v10628_v17  ;;  %5294 = vmatprep.subr.bf16.mxu1 %v10639_v22  ;;  %v10670_v17 = vld [vmem:[#allocation16 + $0x7e0] ss:$48 sps:$4 sm:$0xff]   ;;  %v10681_v22 = vld [vmem:[#allocation16 + $0x84c] ss:$48 sps:$4 sm:$0xff]  }
 0x8a1   :  { %5208 = vmatprep.subr.bf16.mxu0 %v10636_v21  ;;  %v10678_v21 = vld [vmem:[#allocation16 + $0x844] ss:$48 sps:$4 sm:$0xff]  }
 0x8a3   :  { %5295 = vmatpush1.bf16.msra.mxu1 %v10637_v28 }
 0x8a4   :  { %5209 = vmatpush1.bf16.msra.mxu0 %v10634_v26  ;;  %5307 = vmatprep.subr.bf16.mxu1 %v10645_v33  ;;  %v10676_v33 = vld [vmem:[#allocation16 + $0x840] ss:$48 sps:$4 sm:$0xff]  }
 0x8a5   :  { %5221 = vmatprep.subr.bf16.mxu0 %v10642_v32  ;;  %v3351_v32 = vrot.slane %v12389_v16, %v12324_v35 }
 0x91f   :  { %v3322_v14 = vpop.xlane.xlu1 %3321 }
 0x920   :  { %v3327_v37 = vmul.f32 0.0026041667, %v3322_v14  ;;  %v10679_v14 = vld [vmem:[#allocation16 + $0x848] ss:$48 sps:$4 sm:$0xff]  }
 0x922   :  { %v3329_v38 = vadd.f32 1e-05, %v3327_v37  ;;  %v10684_v37 = vld [vmem:[#allocation16 + $0x8a4] ss:$48 sps:$4 sm:$0xff]  }
 0x923   :  { %v3326_v39 = vpop.xlane.xlu1 %3325 }
 0x924   :  { %11392 = vrsqrt.f32 %v3329_v38  ;;  %v3328_v40 = vmul.f32 0.0026041667, %v3326_v39  ;;  %v10687_v38 = vld [vmem:[#allocation16 + $0x8ac] ss:$48 sps:$4 sm:$0xff]  }
 0x926   :  { %v3330_v41 = vadd.f32 1e-05, %v3328_v40 }
 0x928   :  { %11394 = vrsqrt.f32 %v3330_v41  ;;  %v3373_v41 = vrot.slane %v12393_v43, %v12324_v35  ;;  %v10691_v43 = vld [vmem:[#allocation16 + $0x18] ss:$48 sps:$4 sm:$0xff]  }
 0x92e   :  { %v12391_v42 = vpop.eup %11392 }
 0x92f   :  { %v3334_v44 = vmul.f32 %v12391_v42, %v12363_v51  ;;  %v3333_v46 = vmul.f32 %v12391_v42, %v12360_v49  ;;  %v3335_v28 = vmul.f32 %v12391_v42, %v12366_v52  ;;  %v10685_v52 = vld [vmem:[#allocation16 + $0x8a8] ss:$48 sps:$4 sm:$0xff]   ;;  %v10690_v42 = vld [vmem:[#allocation16 + $0x14] ss:$48 sps:$4 sm:$0xff]  }
 0x931   :  { %v3356_v56 = vmul.f32 %v3347_v45, %v3334_v44  ;;  %v3355_v59 = vmul.f32 %v3343_v47, %v3333_v46  ;;  %v3357_v40 = vmul.f32 %v3351_v32, %v3335_v28  ;;  %v10693_v44 = vld [vmem:[#allocation16 + $0x1c] ss:$48 sps:$4 sm:$0xff]   ;;  %v10688_v46 = vld [vmem:[#allocation16 + $0x10] ss:$48 sps:$4 sm:$0xff]  }
 0x932   :  { %v12403_v48 = vpop.eup %11394  ;;  %v10742_v28 = vld [vmem:[#allocation16 + $0x370] ss:$48 sps:$4 sm:$0xff]  }
 0x933   :  { %v3337_v51 = vmul.f32 %v12403_v48, %v12378_v55  ;;  %v3336_v27 = vmul.f32 %v12403_v48, %v12375_v50  ;;  %v12413_v18 = vadd.f32 %v3369_v53, %v3356_v56  ;;  %v12417_v61 = vadd.f32 %v3365_v54, %v3355_v59  ;;  %v10640_v55 = vld [vmem:[#allocation16 + $0x600] ss:$48 sps:$4 sm:$0xff]   ;;  %v10702_v56 = vld [vmem:[#allocation16 + $0xd4] ss:$48 sps:$4 sm:$0xff]  }
 0x934   :  { %v3338_v26 = vmul.f32 %v12403_v48, %v12381_v58  ;;  %v10682_v58 = vld [vmem:[#allocation16 + $0x8a0] ss:$48 sps:$4 sm:$0xff]   ;;  %v10696_v48 = vld [vmem:[#allocation16 + $0x74] ss:$48 sps:$4 sm:$0xff]  }
 0x935   :  { %v3359_v49 = vmul.f32 %v3347_v45, %v3337_v51  ;;  %v3358_v60 = vmul.f32 %v3343_v47, %v3336_v27  ;;  %v12445_v45 = vadd.f32 %v3373_v41, %v3357_v40  ;;  %v10697_v51 = vld [vmem:[#allocation16 + $0x78] ss:$48 sps:$4 sm:$0xff]   ;;  %v10705_v27 = vld [vmem:[#allocation16 + $0xdc] ss:$48 sps:$4 sm:$0xff]   ;;  %v10700_v59 = vld [vmem:[#allocation16 + $0xd0] ss:$48 sps:$4 sm:$0xff]  }
 0x936   :  { %v3360_v39 = vmul.f32 %v3351_v32, %v3338_v26  ;;  %v10747_v26 = vld [vmem:[#allocation16 + $0x37c] ss:$48 sps:$4 sm:$0xff]   ;;  %v10745_v32 = vld [vmem:[#allocation16 + $0x378] ss:$48 sps:$4 sm:$0xff]  }
 0x937   :  { %v12415_v25 = vadd.f32 %v3369_v53, %v3359_v49  ;;  %v12419_v62 = vadd.f32 %v3365_v54, %v3358_v60  ;;  %v10699_v53 = vld [vmem:[#allocation16 + $0x7c] ss:$48 sps:$4 sm:$0xff]   ;;  %v10694_v54 = vld [vmem:[#allocation16 + $0x70] ss:$48 sps:$4 sm:$0xff]   ;;  %v10703_v49 = vld [vmem:[#allocation16 + $0xd8] ss:$48 sps:$4 sm:$0xff]  }
 0x938   :  { %v12443_v16 = vadd.f32 %v3373_v41, %v3360_v39  ;;  %v10708_v60 = vld [vmem:[#allocation16 + $0x134] ss:$48 sps:$4 sm:$0xff]   ;;  %v10759_v40 = vld [vmem:[#allocation16 + $0x43c] ss:$48 sps:$4 sm:$0xff]   ;;  %v10754_v41 = vld [vmem:[#allocation16 + $0x430] ss:$48 sps:$4 sm:$0xff]  }
 0x939   :  { %v12423_v57 = vpack.c.bf16 %v12415_v25, %v12413_v18  ;;  %v12427_v50 = vpack.c.bf16 %v12419_v62, %v12417_v61  ;;  %v10756_v39 = vld [vmem:[#allocation16 + $0x434] ss:$48 sps:$4 sm:$0xff]  }
 0x93a   :  { %v12449_v47 = vpack.c.bf16 %v12443_v16, %v12445_v45 }
 0x93b   :  { %5210 = vmatprep.mubr.bf16.mxu0 %v12423_v57  ;;  %5296 = vmatprep.mubr.bf16.mxu1 %v12423_v57 }
 0x93c   :  { %5211 = vmatmul.mubr.bf16.vlgmr.msra.gmra.mrb[36].mxu0 %v12427_v50  ;;  %5297 = vmatmul.mubr.bf16.vlgmr.msra.gmra.mrb[24].mxu1 %v12427_v50 }
 0x93d   :  { %5222 = vmatpush1.bf16.msra.mxu0 %v10640_v55  ;;  %5308 = vmatpush1.bf16.msra.mxu1 %v10643_v24  ;;  %v10711_v55 = vld [vmem:[#allocation16 + $0x13c] ss:$48 sps:$4 sm:$0xff]   ;;  %v10706_v24 = vld [vmem:[#allocation16 + $0x130] ss:$48 sps:$4 sm:$0xff]  }
 0x93e   :  { %5223 = vmatprep.subr.bf16.mxu0 %v10648_v30  ;;  %5309 = vmatprep.subr.bf16.mxu1 %v10651_v63  ;;  %v10709_v30 = vld [vmem:[#allocation16 + $0x138] ss:$48 sps:$4 sm:$0xff]   ;;  %v10714_v63 = vld [vmem:[#allocation16 + $0x194] ss:$48 sps:$4 sm:$0xff]  }
 0x93f   :  { %5253 = vmatprep.mubr.bf16.mxu0 %v11874_v0  ;;  %5339 = vmatprep.mubr.bf16.mxu1 %v11874_v0 }
 0x941   :  { %5224 = vmatpush1.bf16.msra.mxu0 %v10646_v1  ;;  %5310 = vmatpush1.bf16.msra.mxu1 %v10649_v23  ;;  %v10717_v1 = vld [vmem:[#allocation16 + $0x19c] ss:$48 sps:$4 sm:$0xff]   ;;  %v10712_v23 = vld [vmem:[#allocation16 + $0x190] ss:$48 sps:$4 sm:$0xff]  }
 0x942   :  { %5225 = vmatprep.subr.bf16.mxu0 %v10654_v2  ;;  %5311 = vmatprep.subr.bf16.mxu1 %v10657_v3  ;;  %v10715_v2 = vld [vmem:[#allocation16 + $0x198] ss:$48 sps:$4 sm:$0xff]   ;;  %v10720_v3 = vld [vmem:[#allocation16 + $0x1f4] ss:$48 sps:$4 sm:$0xff]  }
 0x945   :  { %5226 = vmatpush1.bf16.msra.mxu0 %v10652_v4  ;;  %5312 = vmatpush1.bf16.msra.mxu1 %v10655_v19  ;;  %v10723_v4 = vld [vmem:[#allocation16 + $0x1fc] ss:$48 sps:$4 sm:$0xff]   ;;  %v10718_v19 = vld [vmem:[#allocation16 + $0x1f0] ss:$48 sps:$4 sm:$0xff]  }
 0x946   :  { %5227 = vmatprep.subr.bf16.mxu0 %v10660_v5  ;;  %5313 = vmatprep.subr.bf16.mxu1 %v10663_v6  ;;  %v10721_v5 = vld [vmem:[#allocation16 + $0x1f8] ss:$48 sps:$4 sm:$0xff]   ;;  %v10726_v6 = vld [vmem:[#allocation16 + $0x254] ss:$48 sps:$4 sm:$0xff]  }
 0x949   :  { %5228 = vmatpush1.bf16.msra.mxu0 %v10658_v8  ;;  %5314 = vmatpush1.bf16.msra.mxu1 %v10661_v9  ;;  %v10729_v8 = vld [vmem:[#allocation16 + $0x25c] ss:$48 sps:$4 sm:$0xff]   ;;  %v10724_v9 = vld [vmem:[#allocation16 + $0x250] ss:$48 sps:$4 sm:$0xff]  }
 0x94a   :  { %5229 = vmatprep.subr.bf16.mxu0 %v10666_v10  ;;  %5315 = vmatprep.subr.bf16.mxu1 %v10669_v11  ;;  %v10727_v10 = vld [vmem:[#allocation16 + $0x258] ss:$48 sps:$4 sm:$0xff]   ;;  %v10732_v11 = vld [vmem:[#allocation16 + $0x2b4] ss:$48 sps:$4 sm:$0xff]  }
 0x94d   :  { %5230 = vmatpush1.bf16.msra.mxu0 %v10664_v12  ;;  %5316 = vmatpush1.bf16.msra.mxu1 %v10667_v13  ;;  %v10735_v12 = vld [vmem:[#allocation16 + $0x2bc] ss:$48 sps:$4 sm:$0xff]   ;;  %v10730_v13 = vld [vmem:[#allocation16 + $0x2b0] ss:$48 sps:$4 sm:$0xff]  }
 0x94e   :  { %5231 = vmatprep.subr.bf16.mxu0 %v10672_v31  ;;  %5317 = vmatprep.subr.bf16.mxu1 %v10675_v15  ;;  %v10733_v31 = vld [vmem:[#allocation16 + $0x2b8] ss:$48 sps:$4 sm:$0xff]   ;;  %v10738_v15 = vld [vmem:[#allocation16 + $0x314] ss:$48 sps:$4 sm:$0xff]  }
 0x951   :  { %5232 = vmatpush1.bf16.msra.mxu0 %v10670_v17  ;;  %5318 = vmatpush1.bf16.msra.mxu1 %v10673_v20  ;;  %v10741_v17 = vld [vmem:[#allocation16 + $0x31c] ss:$48 sps:$4 sm:$0xff]   ;;  %v10736_v20 = vld [vmem:[#allocation16 + $0x310] ss:$48 sps:$4 sm:$0xff]  }
 0x952   :  { %5233 = vmatprep.subr.bf16.mxu0 %v10678_v21  ;;  %5319 = vmatprep.subr.bf16.mxu1 %v10681_v22  ;;  %v10739_v21 = vld [vmem:[#allocation16 + $0x318] ss:$48 sps:$4 sm:$0xff]   ;;  %v10744_v22 = vld [vmem:[#allocation16 + $0x374] ss:$48 sps:$4 sm:$0xff]  }
 0x955   :  { %5234 = vmatpush1.bf16.msra.mxu0 %v10676_v33  ;;  %5320 = vmatpush1.bf16.msra.mxu1 %v10679_v14  ;;  %v10750_v33 = vld [vmem:[#allocation16 + $0x3d4] ss:$48 sps:$4 sm:$0xff]   ;;  %v10753_v14 = vld [vmem:[#allocation16 + $0x3dc] ss:$48 sps:$4 sm:$0xff]  }
 0x956   :  { %5235 = vmatprep.subr.bf16.mxu0 %v10684_v37  ;;  %5321 = vmatprep.subr.bf16.mxu1 %v10687_v38  ;;  %v10748_v37 = vld [vmem:[#allocation16 + $0x3d0] ss:$48 sps:$4 sm:$0xff]   ;;  %v10751_v38 = vld [vmem:[#allocation16 + $0x3d8] ss:$48 sps:$4 sm:$0xff]  }
 0x959   :  { %5236 = vmatpush1.bf16.msra.mxu0 %v10682_v58  ;;  %5322 = vmatpush1.bf16.msra.mxu1 %v10685_v52  ;;  %v10757_v58 = vld [vmem:[#allocation16 + $0x438] ss:$48 sps:$4 sm:$0xff]   ;;  %v10762_v52 = vld [vmem:[#allocation16 + $0x494] ss:$48 sps:$4 sm:$0xff]  }
 0x95a   :  { %5350 = vmatprep.subr.bf16.mxu0 %v10690_v42  ;;  %5436 = vmatprep.subr.bf16.mxu1 %v10693_v44  ;;  %v10765_v42 = vld [vmem:[#allocation16 + $0x49c] ss:$48 sps:$4 sm:$0xff]   ;;  %v10760_v44 = vld [vmem:[#allocation16 + $0x490] ss:$48 sps:$4 sm:$0xff]  }
 0x95c   :  { %5254 = vmatmul.mubr.bf16.vlgmr.msra.gmra.mrb[36].mxu0 %v12449_v47  ;;  %5340 = vmatmul.mubr.bf16.vlgmr.msra.gmra.mrb[24].mxu1 %v12449_v47 }
 0x95d   :  { %5351 = vmatpush1.bf16.msra.mxu0 %v10688_v46  ;;  %5382 = vmatprep.mubr.bf16.mxu0 %v12423_v57  ;;  %v10763_v46 = vld [vmem:[#allocation16 + $0x498] ss:$48 sps:$4 sm:$0xff]  }
 0x95e   :  { %5437 = vmatpush1.bf16.msra.mxu1 %v10691_v43  ;;  %5468 = vmatprep.mubr.bf16.mxu1 %v12423_v57  ;;  %v10768_v43 = vld [vmem:[#allocation16 + $0x4f4] ss:$48 sps:$4 sm:$0xff]  }
 0x95f   :  { %5352 = vmatprep.subr.bf16.mxu0 %v10696_v48  ;;  %5438 = vmatprep.subr.bf16.mxu1 %v10699_v53  ;;  %v10771_v48 = vld [vmem:[#allocation16 + $0x4fc] ss:$48 sps:$4 sm:$0xff]   ;;  %v10766_v53 = vld [vmem:[#allocation16 + $0x4f0] ss:$48 sps:$4 sm:$0xff]  }
 0x961   :  { %5353 = vmatpush1.bf16.msra.mxu0 %v10694_v54  ;;  %v10769_v54 = vld [vmem:[#allocation16 + $0x4f8] ss:$48 sps:$4 sm:$0xff]  }
 0x962   :  { %5439 = vmatpush1.bf16.msra.mxu1 %v10697_v51  ;;  %5354 = vmatprep.subr.bf16.mxu0 %v10702_v56  ;;  %v10774_v51 = vld [vmem:[#allocation16 + $0x554] ss:$48 sps:$4 sm:$0xff]   ;;  %v10777_v56 = vld [vmem:[#allocation16 + $0x55c] ss:$48 sps:$4 sm:$0xff]  }
 0x963   :  { %5440 = vmatprep.subr.bf16.mxu1 %v10705_v27  ;;  %v10772_v27 = vld [vmem:[#allocation16 + $0x550] ss:$48 sps:$4 sm:$0xff]  }
 0x965   :  { %5355 = vmatpush1.bf16.msra.mxu0 %v10700_v59  ;;  %v10775_v59 = vld [vmem:[#allocation16 + $0x558] ss:$48 sps:$4 sm:$0xff]  }
 0x966   :  { %5441 = vmatpush1.bf16.msra.mxu1 %v10703_v49  ;;  %5356 = vmatprep.subr.bf16.mxu0 %v10708_v60  ;;  %v10780_v49 = vld [vmem:[#allocation16 + $0x5b4] ss:$48 sps:$4 sm:$0xff]   ;;  %v10783_v60 = vld [vmem:[#allocation16 + $0x5bc] ss:$48 sps:$4 sm:$0xff]  }
 0x967   :  { %5442 = vmatprep.subr.bf16.mxu1 %v10711_v55  ;;  %v10778_v55 = vld [vmem:[#allocation16 + $0x5b0] ss:$48 sps:$4 sm:$0xff]  }
 0x969   :  { %5357 = vmatpush1.bf16.msra.mxu0 %v10706_v24  ;;  %v10781_v24 = vld [vmem:[#allocation16 + $0x5b8] ss:$48 sps:$4 sm:$0xff]  }
 0x96a   :  { %5443 = vmatpush1.bf16.msra.mxu1 %v10709_v30  ;;  %5358 = vmatprep.subr.bf16.mxu0 %v10714_v63  ;;  %v10786_v30 = vld [vmem:[#allocation16 + $0x614] ss:$48 sps:$4 sm:$0xff]   ;;  %v10789_v63 = vld [vmem:[#allocation16 + $0x61c] ss:$48 sps:$4 sm:$0xff]  }
 0x96b   :  { %5444 = vmatprep.subr.bf16.mxu1 %v10717_v1  ;;  %v10784_v1 = vld [vmem:[#allocation16 + $0x610] ss:$48 sps:$4 sm:$0xff]  }
 0x96d   :  { %5359 = vmatpush1.bf16.msra.mxu0 %v10712_v23  ;;  %v10787_v23 = vld [vmem:[#allocation16 + $0x618] ss:$48 sps:$4 sm:$0xff]  }
 0x96e   :  { %5445 = vmatpush1.bf16.msra.mxu1 %v10715_v2  ;;  %5360 = vmatprep.subr.bf16.mxu0 %v10720_v3  ;;  %v10792_v2 = vld [vmem:[#allocation16 + $0x674] ss:$48 sps:$4 sm:$0xff]   ;;  %v10795_v3 = vld [vmem:[#allocation16 + $0x67c] ss:$48 sps:$4 sm:$0xff]  }
 0x96f   :  { %5446 = vmatprep.subr.bf16.mxu1 %v10723_v4  ;;  %v10790_v4 = vld [vmem:[#allocation16 + $0x670] ss:$48 sps:$4 sm:$0xff]  }
 0x971   :  { %5361 = vmatpush1.bf16.msra.mxu0 %v10718_v19  ;;  %v10793_v19 = vld [vmem:[#allocation16 + $0x678] ss:$48 sps:$4 sm:$0xff]  }
 0x972   :  { %5447 = vmatpush1.bf16.msra.mxu1 %v10721_v5  ;;  %5362 = vmatprep.subr.bf16.mxu0 %v10726_v6  ;;  %v10798_v5 = vld [vmem:[#allocation16 + $0x6d4] ss:$48 sps:$4 sm:$0xff]   ;;  %v10801_v6 = vld [vmem:[#allocation16 + $0x6dc] ss:$48 sps:$4 sm:$0xff]  }
 0x973   :  { %5448 = vmatprep.subr.bf16.mxu1 %v10729_v8  ;;  %v10796_v8 = vld [vmem:[#allocation16 + $0x6d0] ss:$48 sps:$4 sm:$0xff]  }
 0x975   :  { %5363 = vmatpush1.bf16.msra.mxu0 %v10724_v9  ;;  %v10799_v9 = vld [vmem:[#allocation16 + $0x6d8] ss:$48 sps:$4 sm:$0xff]  }
 0x976   :  { %5449 = vmatpush1.bf16.msra.mxu1 %v10727_v10  ;;  %5364 = vmatprep.subr.bf16.mxu0 %v10732_v11  ;;  %v10804_v10 = vld [vmem:[#allocation16 + $0x734] ss:$48 sps:$4 sm:$0xff]   ;;  %v10807_v11 = vld [vmem:[#allocation16 + $0x73c] ss:$48 sps:$4 sm:$0xff]  }
 0x977   :  { %5450 = vmatprep.subr.bf16.mxu1 %v10735_v12  ;;  %v10802_v12 = vld [vmem:[#allocation16 + $0x730] ss:$48 sps:$4 sm:$0xff]  }
 0x979   :  { %5365 = vmatpush1.bf16.msra.mxu0 %v10730_v13  ;;  %v10805_v13 = vld [vmem:[#allocation16 + $0x738] ss:$48 sps:$4 sm:$0xff]  }
 0x97a   :  { %5451 = vmatpush1.bf16.msra.mxu1 %v10733_v31  ;;  %5366 = vmatprep.subr.bf16.mxu0 %v10738_v15  ;;  %v10810_v31 = vld [vmem:[#allocation16 + $0x794] ss:$48 sps:$4 sm:$0xff]   ;;  %v10813_v15 = vld [vmem:[#allocation16 + $0x79c] ss:$48 sps:$4 sm:$0xff]  }
 0x97b   :  { %5452 = vmatprep.subr.bf16.mxu1 %v10741_v17  ;;  %v10808_v17 = vld [vmem:[#allocation16 + $0x790] ss:$48 sps:$4 sm:$0xff]  }
 0x97d   :  { %5367 = vmatpush1.bf16.msra.mxu0 %v10736_v20  ;;  %v10811_v20 = vld [vmem:[#allocation16 + $0x798] ss:$48 sps:$4 sm:$0xff]  }
 0x97e   :  { %5453 = vmatpush1.bf16.msra.mxu1 %v10739_v21  ;;  %5368 = vmatprep.subr.bf16.mxu0 %v10744_v22  ;;  %v10816_v21 = vld [vmem:[#allocation16 + $0x7f4] ss:$48 sps:$4 sm:$0xff]   ;;  %v10819_v22 = vld [vmem:[#allocation16 + $0x7fc] ss:$48 sps:$4 sm:$0xff]  }
 0x97f   :  { %5454 = vmatprep.subr.bf16.mxu1 %v10747_v26  ;;  %v10814_v26 = vld [vmem:[#allocation16 + $0x7f0] ss:$48 sps:$4 sm:$0xff]  }
 0x981   :  { %5369 = vmatpush1.bf16.msra.mxu0 %v10742_v28  ;;  %v10817_v28 = vld [vmem:[#allocation16 + $0x7f8] ss:$48 sps:$4 sm:$0xff]  }
 0x982   :  { %5455 = vmatpush1.bf16.msra.mxu1 %v10745_v32  ;;  %5370 = vmatprep.subr.bf16.mxu0 %v10750_v33  ;;  %v10822_v32 = vld [vmem:[#allocation16 + $0x854] ss:$48 sps:$4 sm:$0xff]   ;;  %v10825_v33 = vld [vmem:[#allocation16 + $0x85c] ss:$48 sps:$4 sm:$0xff]  }
 0x983   :  { %5456 = vmatprep.subr.bf16.mxu1 %v10753_v14  ;;  %v10820_v14 = vld [vmem:[#allocation16 + $0x850] ss:$48 sps:$4 sm:$0xff]  }
 0x985   :  { %5371 = vmatpush1.bf16.msra.mxu0 %v10748_v37  ;;  %v10823_v37 = vld [vmem:[#allocation16 + $0x858] ss:$48 sps:$4 sm:$0xff]  }
 0x986   :  { %5457 = vmatpush1.bf16.msra.mxu1 %v10751_v38  ;;  %5372 = vmatprep.subr.bf16.mxu0 %v10756_v39  ;;  %v10828_v38 = vld [vmem:[#allocation16 + $0x8b4] ss:$48 sps:$4 sm:$0xff]   ;;  %v10831_v39 = vld [vmem:[#allocation16 + $0x8bc] ss:$48 sps:$4 sm:$0xff]  }
 0x987   :  { %5458 = vmatprep.subr.bf16.mxu1 %v10759_v40  ;;  %v10826_v40 = vld [vmem:[#allocation16 + $0x8b0] ss:$48 sps:$4 sm:$0xff]  }
 0x989   :  { %5373 = vmatpush1.bf16.msra.mxu0 %v10754_v41  ;;  %v10829_v41 = vld [vmem:[#allocation16 + $0x8b8] ss:$48 sps:$4 sm:$0xff]  }
 0x98a   :  { %5459 = vmatpush1.bf16.msra.mxu1 %v10757_v58  ;;  %5374 = vmatprep.subr.bf16.mxu0 %v10762_v52  ;;  %v10834_v58 = vld [vmem:[#allocation16 + $0x24] ss:$48 sps:$4 sm:$0xff]   ;;  %v10837_v52 = vld [vmem:[#allocation16 + $0x2c] ss:$48 sps:$4 sm:$0xff]  }
 0x98b   :  { %5460 = vmatprep.subr.bf16.mxu1 %v10765_v42  ;;  %v10832_v42 = vld [vmem:[#allocation16 + $0x20] ss:$48 sps:$4 sm:$0xff]  }
 0x98d   :  { %5375 = vmatpush1.bf16.msra.mxu0 %v10760_v44  ;;  %v10835_v44 = vld [vmem:[#allocation16 + $0x28] ss:$48 sps:$4 sm:$0xff]  }
 0x98e   :  { %5461 = vmatpush1.bf16.msra.mxu1 %v10763_v46  ;;  %5376 = vmatprep.subr.bf16.mxu0 %v10768_v43  ;;  %v10840_v46 = vld [vmem:[#allocation16 + $0x84] ss:$48 sps:$4 sm:$0xff]   ;;  %v10843_v43 = vld [vmem:[#allocation16 + $0x8c] ss:$48 sps:$4 sm:$0xff]  }
 0x98f   :  { %5462 = vmatprep.subr.bf16.mxu1 %v10771_v48  ;;  %v10838_v48 = vld [vmem:[#allocation16 + $0x80] ss:$48 sps:$4 sm:$0xff]  }
 0x991   :  { %5377 = vmatpush1.bf16.msra.mxu0 %v10766_v53  ;;  %v10841_v53 = vld [vmem:[#allocation16 + $0x88] ss:$48 sps:$4 sm:$0xff]  }
 0x992   :  { %5463 = vmatpush1.bf16.msra.mxu1 %v10769_v54  ;;  %5378 = vmatprep.subr.bf16.mxu0 %v10774_v51  ;;  %v10846_v54 = vld [vmem:[#allocation16 + $0xe4] ss:$48 sps:$4 sm:$0xff]   ;;  %v10849_v51 = vld [vmem:[#allocation16 + $0xec] ss:$48 sps:$4 sm:$0xff]  }
 0x993   :  { %5464 = vmatprep.subr.bf16.mxu1 %v10777_v56  ;;  %v10844_v56 = vld [vmem:[#allocation16 + $0xe0] ss:$48 sps:$4 sm:$0xff]  }
 0x995   :  { %5379 = vmatpush1.bf16.msra.mxu0 %v10772_v27  ;;  %v10847_v27 = vld [vmem:[#allocation16 + $0xe8] ss:$48 sps:$4 sm:$0xff]  }
 0x996   :  { %5465 = vmatpush1.bf16.msra.mxu1 %v10775_v59  ;;  %5380 = vmatprep.subr.bf16.mxu0 %v10780_v49  ;;  %v10852_v59 = vld [vmem:[#allocation16 + $0x144] ss:$48 sps:$4 sm:$0xff]   ;;  %v10855_v49 = vld [vmem:[#allocation16 + $0x14c] ss:$48 sps:$4 sm:$0xff]  }
 0x997   :  { %5466 = vmatprep.subr.bf16.mxu1 %v10783_v60  ;;  %v10850_v60 = vld [vmem:[#allocation16 + $0x140] ss:$48 sps:$4 sm:$0xff]  }
 0x999   :  { %5381 = vmatpush1.bf16.msra.mxu0 %v10778_v55  ;;  %v10853_v55 = vld [vmem:[#allocation16 + $0x148] ss:$48 sps:$4 sm:$0xff]  }
 0x99a   :  { %5467 = vmatpush1.bf16.msra.mxu1 %v10781_v24  ;;  %5393 = vmatprep.subr.bf16.mxu0 %v10786_v30  ;;  %v10858_v24 = vld [vmem:[#allocation16 + $0x1a4] ss:$48 sps:$4 sm:$0xff]   ;;  %v10861_v30 = vld [vmem:[#allocation16 + $0x1ac] ss:$48 sps:$4 sm:$0xff]  }
 0x99b   :  { %5479 = vmatprep.subr.bf16.mxu1 %v10789_v63  ;;  %v10859_v63 = vld [vmem:[#allocation16 + $0x1a8] ss:$48 sps:$4 sm:$0xff]  }
 0x99c   :  { %5383 = vmatmul.mubr.bf16.vlgmr.msra.gmra.mrb[40].mxu0 %v12427_v50 }
 0x99d   :  { %5469 = vmatmul.mubr.bf16.vlgmr.msra.gmra.mrb[28].mxu1 %v12427_v50  ;;  %5394 = vmatpush1.bf16.msra.mxu0 %v10784_v1  ;;  %v10864_v1 = vld [vmem:[#allocation16 + $0x204] ss:$48 sps:$4 sm:$0xff]  }
 0x99e   :  { %5480 = vmatpush1.bf16.msra.mxu1 %v10787_v23  ;;  %5395 = vmatprep.subr.bf16.mxu0 %v10792_v2  ;;  %v10867_v23 = vld [vmem:[#allocation16 + $0x20c] ss:$48 sps:$4 sm:$0xff]   ;;  %v10862_v2 = vld [vmem:[#allocation16 + $0x200] ss:$48 sps:$4 sm:$0xff]  }
 0x99f   :  { %5481 = vmatprep.subr.bf16.mxu1 %v10795_v3  ;;  %5425 = vmatprep.mubr.bf16.mxu0 %v11874_v0  ;;  %v10865_v3 = vld [vmem:[#allocation16 + $0x208] ss:$48 sps:$4 sm:$0xff]  }
 0x9a0   :  { %5511 = vmatprep.mubr.bf16.mxu1 %v11874_v0 }
 0x9a1   :  { %5396 = vmatpush1.bf16.msra.mxu0 %v10790_v4  ;;  %v10870_v4 = vld [vmem:[#allocation16 + $0x264] ss:$48 sps:$4 sm:$0xff]  }
 0x9a2   :  { %5482 = vmatpush1.bf16.msra.mxu1 %v10793_v19  ;;  %5397 = vmatprep.subr.bf16.mxu0 %v10798_v5  ;;  %v10873_v19 = vld [vmem:[#allocation16 + $0x26c] ss:$48 sps:$4 sm:$0xff]   ;;  %v10868_v5 = vld [vmem:[#allocation16 + $0x260] ss:$48 sps:$4 sm:$0xff]  }
 0x9a3   :  { %5483 = vmatprep.subr.bf16.mxu1 %v10801_v6  ;;  %v10871_v6 = vld [vmem:[#allocation16 + $0x268] ss:$48 sps:$4 sm:$0xff]  }
 0x9a5   :  { %5398 = vmatpush1.bf16.msra.mxu0 %v10796_v8  ;;  %v10876_v8 = vld [vmem:[#allocation16 + $0x2c4] ss:$48 sps:$4 sm:$0xff]  }
 0x9a6   :  { %5484 = vmatpush1.bf16.msra.mxu1 %v10799_v9  ;;  %5399 = vmatprep.subr.bf16.mxu0 %v10804_v10  ;;  %v10879_v9 = vld [vmem:[#allocation16 + $0x2cc] ss:$48 sps:$4 sm:$0xff]   ;;  %v10874_v10 = vld [vmem:[#allocation16 + $0x2c0] ss:$48 sps:$4 sm:$0xff]  }
 0x9a7   :  { %5485 = vmatprep.subr.bf16.mxu1 %v10807_v11  ;;  %v10877_v11 = vld [vmem:[#allocation16 + $0x2c8] ss:$48 sps:$4 sm:$0xff]  }
 0x9a9   :  { %5400 = vmatpush1.bf16.msra.mxu0 %v10802_v12  ;;  %v10882_v12 = vld [vmem:[#allocation16 + $0x324] ss:$48 sps:$4 sm:$0xff]  }
 0x9aa   :  { %5486 = vmatpush1.bf16.msra.mxu1 %v10805_v13  ;;  %5401 = vmatprep.subr.bf16.mxu0 %v10810_v31  ;;  %v10885_v13 = vld [vmem:[#allocation16 + $0x32c] ss:$48 sps:$4 sm:$0xff]   ;;  %v10880_v31 = vld [vmem:[#allocation16 + $0x320] ss:$48 sps:$4 sm:$0xff]  }
 0x9ab   :  { %5487 = vmatprep.subr.bf16.mxu1 %v10813_v15  ;;  %v10883_v15 = vld [vmem:[#allocation16 + $0x328] ss:$48 sps:$4 sm:$0xff]  }
 0x9ad   :  { %5402 = vmatpush1.bf16.msra.mxu0 %v10808_v17  ;;  %v10888_v17 = vld [vmem:[#allocation16 + $0x384] ss:$48 sps:$4 sm:$0xff]  }
 0x9ae   :  { %5488 = vmatpush1.bf16.msra.mxu1 %v10811_v20  ;;  %5403 = vmatprep.subr.bf16.mxu0 %v10816_v21  ;;  %v10891_v20 = vld [vmem:[#allocation16 + $0x38c] ss:$48 sps:$4 sm:$0xff]   ;;  %v10886_v21 = vld [vmem:[#allocation16 + $0x380] ss:$48 sps:$4 sm:$0xff]  }
 0x9af   :  { %5489 = vmatprep.subr.bf16.mxu1 %v10819_v22  ;;  %v10889_v22 = vld [vmem:[#allocation16 + $0x388] ss:$48 sps:$4 sm:$0xff]  }
 0x9b1   :  { %5404 = vmatpush1.bf16.msra.mxu0 %v10814_v26  ;;  %v10894_v26 = vld [vmem:[#allocation16 + $0x3e4] ss:$48 sps:$4 sm:$0xff]  }
 0x9b2   :  { %5490 = vmatpush1.bf16.msra.mxu1 %v10817_v28  ;;  %5405 = vmatprep.subr.bf16.mxu0 %v10822_v32  ;;  %v10897_v28 = vld [vmem:[#allocation16 + $0x3ec] ss:$48 sps:$4 sm:$0xff]   ;;  %v10892_v32 = vld [vmem:[#allocation16 + $0x3e0] ss:$48 sps:$4 sm:$0xff]  }
 0x9b3   :  { %5491 = vmatprep.subr.bf16.mxu1 %v10825_v33  ;;  %v10895_v33 = vld [vmem:[#allocation16 + $0x3e8] ss:$48 sps:$4 sm:$0xff]  }
 0x9b5   :  { %5406 = vmatpush1.bf16.msra.mxu0 %v10820_v14  ;;  %v10900_v14 = vld [vmem:[#allocation16 + $0x444] ss:$48 sps:$4 sm:$0xff]  }
 0x9b6   :  { %5492 = vmatpush1.bf16.msra.mxu1 %v10823_v37  ;;  %5407 = vmatprep.subr.bf16.mxu0 %v10828_v38  ;;  %v10903_v37 = vld [vmem:[#allocation16 + $0x44c] ss:$48 sps:$4 sm:$0xff]   ;;  %v10898_v38 = vld [vmem:[#allocation16 + $0x440] ss:$48 sps:$4 sm:$0xff]  }
 0x9b7   :  { %5493 = vmatprep.subr.bf16.mxu1 %v10831_v39  ;;  %v10901_v39 = vld [vmem:[#allocation16 + $0x448] ss:$48 sps:$4 sm:$0xff]  }
 0x9b9   :  { %5408 = vmatpush1.bf16.msra.mxu0 %v10826_v40  ;;  %v10906_v40 = vld [vmem:[#allocation16 + $0x4a4] ss:$48 sps:$4 sm:$0xff]  }
 0x9ba   :  { %5494 = vmatpush1.bf16.msra.mxu1 %v10829_v41  ;;  %5522 = vmatprep.subr.bf16.mxu0 %v10834_v58  ;;  %v10909_v41 = vld [vmem:[#allocation16 + $0x4ac] ss:$48 sps:$4 sm:$0xff]   ;;  %v10904_v58 = vld [vmem:[#allocation16 + $0x4a0] ss:$48 sps:$4 sm:$0xff]  }
 0x9bb   :  { %5608 = vmatprep.subr.bf16.mxu1 %v10837_v52  ;;  %v10907_v52 = vld [vmem:[#allocation16 + $0x4a8] ss:$48 sps:$4 sm:$0xff]  }
 0x9bc   :  { %5426 = vmatmul.mubr.bf16.vlgmr.msra.gmra.mrb[40].mxu0 %v12449_v47 }
 0x9bd   :  { %5512 = vmatmul.mubr.bf16.vlgmr.msra.gmra.mrb[28].mxu1 %v12449_v47  ;;  %5523 = vmatpush1.bf16.msra.mxu0 %v10832_v42  ;;  %v10912_v42 = vld [vmem:[#allocation16 + $0x504] ss:$48 sps:$4 sm:$0xff]  }
 0x9be   :  { %5554 = vmatprep.mubr.bf16.mxu0 %v12423_v57  ;;  %5609 = vmatpush1.bf16.msra.mxu1 %v10835_v44  ;;  %v10915_v44 = vld [vmem:[#allocation16 + $0x50c] ss:$48 sps:$4 sm:$0xff]  }
 0x9bf   :  { %5640 = vmatprep.mubr.bf16.mxu1 %v12423_v57  ;;  %5524 = vmatprep.subr.bf16.mxu0 %v10840_v46  ;;  %v10856_v57 = vld [vmem:[#allocation16 + $0x1a0] ss:$48 sps:$4 sm:$0xff]  }
 0x9c0   :  { %5610 = vmatprep.subr.bf16.mxu1 %v10843_v43  ;;  %v10910_v46 = vld [vmem:[#allocation16 + $0x500] ss:$48 sps:$4 sm:$0xff]   ;;  %v10913_v43 = vld [vmem:[#allocation16 + $0x508] ss:$48 sps:$4 sm:$0xff]  }
 0x9c1   :  { %5525 = vmatpush1.bf16.msra.mxu0 %v10838_v48  ;;  %v10918_v48 = vld [vmem:[#allocation16 + $0x564] ss:$48 sps:$4 sm:$0xff]  }
 0x9c2   :  { %5611 = vmatpush1.bf16.msra.mxu1 %v10841_v53  ;;  %5526 = vmatprep.subr.bf16.mxu0 %v10846_v54  ;;  %v10921_v53 = vld [vmem:[#allocation16 + $0x56c] ss:$48 sps:$4 sm:$0xff]   ;;  %v10916_v54 = vld [vmem:[#allocation16 + $0x560] ss:$48 sps:$4 sm:$0xff]  }
 0x9c3   :  { %5612 = vmatprep.subr.bf16.mxu1 %v10849_v51  ;;  %v10919_v51 = vld [vmem:[#allocation16 + $0x568] ss:$48 sps:$4 sm:$0xff]  }
 0x9c5   :  { %5527 = vmatpush1.bf16.msra.mxu0 %v10844_v56  ;;  %v10924_v56 = vld [vmem:[#allocation16 + $0x5c4] ss:$48 sps:$4 sm:$0xff]  }
 0x9c6   :  { %5613 = vmatpush1.bf16.msra.mxu1 %v10847_v27  ;;  %5528 = vmatprep.subr.bf16.mxu0 %v10852_v59  ;;  %v10927_v27 = vld [vmem:[#allocation16 + $0x5cc] ss:$48 sps:$4 sm:$0xff]   ;;  %v10922_v59 = vld [vmem:[#allocation16 + $0x5c0] ss:$48 sps:$4 sm:$0xff]  }
 0x9c7   :  { %5614 = vmatprep.subr.bf16.mxu1 %v10855_v49  ;;  %v10925_v49 = vld [vmem:[#allocation16 + $0x5c8] ss:$48 sps:$4 sm:$0xff]  }
 0x9c9   :  { %5529 = vmatpush1.bf16.msra.mxu0 %v10850_v60  ;;  %v10930_v60 = vld [vmem:[#allocation16 + $0x624] ss:$48 sps:$4 sm:$0xff]  }
 0x9ca   :  { %5615 = vmatpush1.bf16.msra.mxu1 %v10853_v55  ;;  %5530 = vmatprep.subr.bf16.mxu0 %v10858_v24  ;;  %v10933_v55 = vld [vmem:[#allocation16 + $0x62c] ss:$48 sps:$4 sm:$0xff]   ;;  %v10928_v24 = vld [vmem:[#allocation16 + $0x620] ss:$48 sps:$4 sm:$0xff]  }
 0x9cb   :  { %5616 = vmatprep.subr.bf16.mxu1 %v10861_v30  ;;  %v10931_v30 = vld [vmem:[#allocation16 + $0x628] ss:$48 sps:$4 sm:$0xff]  }
 0x9cd   :  { %5531 = vmatpush1.bf16.msra.mxu0 %v10856_v57  ;;  %v10936_v57 = vld [vmem:[#allocation16 + $0x684] ss:$48 sps:$4 sm:$0xff]  }
 0x9ce   :  { %5617 = vmatpush1.bf16.msra.mxu1 %v10859_v63  ;;  %5532 = vmatprep.subr.bf16.mxu0 %v10864_v1  ;;  %v10939_v63 = vld [vmem:[#allocation16 + $0x68c] ss:$48 sps:$4 sm:$0xff]   ;;  %v10934_v1 = vld [vmem:[#allocation16 + $0x680] ss:$48 sps:$4 sm:$0xff]  }
 0x9cf   :  { %5618 = vmatprep.subr.bf16.mxu1 %v10867_v23  ;;  %v10937_v23 = vld [vmem:[#allocation16 + $0x688] ss:$48 sps:$4 sm:$0xff]  }
 0x9d1   :  { %5533 = vmatpush1.bf16.msra.mxu0 %v10862_v2  ;;  %v10942_v2 = vld [vmem:[#allocation16 + $0x6e4] ss:$48 sps:$4 sm:$0xff]  }
 0x9d2   :  { %5619 = vmatpush1.bf16.msra.mxu1 %v10865_v3  ;;  %5534 = vmatprep.subr.bf16.mxu0 %v10870_v4  ;;  %v10945_v3 = vld [vmem:[#allocation16 + $0x6ec] ss:$48 sps:$4 sm:$0xff]   ;;  %v10940_v4 = vld [vmem:[#allocation16 + $0x6e0] ss:$48 sps:$4 sm:$0xff]  }
 0x9d3   :  { %5620 = vmatprep.subr.bf16.mxu1 %v10873_v19  ;;  %v10943_v19 = vld [vmem:[#allocation16 + $0x6e8] ss:$48 sps:$4 sm:$0xff]  }
 0x9d5   :  { %5535 = vmatpush1.bf16.msra.mxu0 %v10868_v5  ;;  %v10948_v5 = vld [vmem:[#allocation16 + $0x744] ss:$48 sps:$4 sm:$0xff]  }
 0x9d6   :  { %5621 = vmatpush1.bf16.msra.mxu1 %v10871_v6  ;;  %5536 = vmatprep.subr.bf16.mxu0 %v10876_v8  ;;  %v10946_v6 = vld [vmem:[#allocation16 + $0x740] ss:$48 sps:$4 sm:$0xff]   ;;  %v10949_v8 = vld [vmem:[#allocation16 + $0x748] ss:$48 sps:$4 sm:$0xff]  }
 0x9d7   :  { %5622 = vmatprep.subr.bf16.mxu1 %v10879_v9  ;;  %v10954_v9 = vld [vmem:[#allocation16 + $0x7a4] ss:$48 sps:$4 sm:$0xff]  }
 0x9d9   :  { %5537 = vmatpush1.bf16.msra.mxu0 %v10874_v10  ;;  %v10957_v10 = vld [vmem:[#allocation16 + $0x7ac] ss:$48 sps:$4 sm:$0xff]  }
 0x9da   :  { %5623 = vmatpush1.bf16.msra.mxu1 %v10877_v11  ;;  %5538 = vmatprep.subr.bf16.mxu0 %v10882_v12  ;;  %v10952_v11 = vld [vmem:[#allocation16 + $0x7a0] ss:$48 sps:$4 sm:$0xff]   ;;  %v10960_v12 = vld [vmem:[#allocation16 + $0x804] ss:$48 sps:$4 sm:$0xff]  }
 0x9db   :  { %5624 = vmatprep.subr.bf16.mxu1 %v10885_v13  ;;  %v10963_v13 = vld [vmem:[#allocation16 + $0x80c] ss:$48 sps:$4 sm:$0xff]  }
 0x9dd   :  { %5539 = vmatpush1.bf16.msra.mxu0 %v10880_v31  ;;  %v10958_v31 = vld [vmem:[#allocation16 + $0x800] ss:$48 sps:$4 sm:$0xff]  }
 0x9de   :  { %5625 = vmatpush1.bf16.msra.mxu1 %v10883_v15  ;;  %5540 = vmatprep.subr.bf16.mxu0 %v10888_v17  ;;  %v10961_v15 = vld [vmem:[#allocation16 + $0x808] ss:$48 sps:$4 sm:$0xff]   ;;  %v10966_v17 = vld [vmem:[#allocation16 + $0x864] ss:$48 sps:$4 sm:$0xff]  }
 0x9df   :  { %5626 = vmatprep.subr.bf16.mxu1 %v10891_v20  ;;  %v10969_v20 = vld [vmem:[#allocation16 + $0x86c] ss:$48 sps:$4 sm:$0xff]  }
 0x9e1   :  { %5541 = vmatpush1.bf16.msra.mxu0 %v10886_v21  ;;  %v10964_v21 = vld [vmem:[#allocation16 + $0x860] ss:$48 sps:$4 sm:$0xff]  }
 0x9e2   :  { %5627 = vmatpush1.bf16.msra.mxu1 %v10889_v22  ;;  %5542 = vmatprep.subr.bf16.mxu0 %v10894_v26  ;;  %v10967_v22 = vld [vmem:[#allocation16 + $0x868] ss:$48 sps:$4 sm:$0xff]   ;;  %v10972_v26 = vld [vmem:[#allocation16 + $0x8c4] ss:$48 sps:$4 sm:$0xff]  }
 0x9e3   :  { %5628 = vmatprep.subr.bf16.mxu1 %v10897_v28  ;;  %v10975_v28 = vld [vmem:[#allocation16 + $0x8cc] ss:$48 sps:$4 sm:$0xff]  }
 0x9e5   :  { %5543 = vmatpush1.bf16.msra.mxu0 %v10892_v32  ;;  %v10970_v32 = vld [vmem:[#allocation16 + $0x8c0] ss:$48 sps:$4 sm:$0xff]  }
 0x9e6   :  { %5629 = vmatpush1.bf16.msra.mxu1 %v10895_v33  ;;  %5544 = vmatprep.subr.bf16.mxu0 %v10900_v14  ;;  %v10973_v33 = vld [vmem:[#allocation16 + $0x8c8] ss:$48 sps:$4 sm:$0xff]   ;;  %v10978_v14 = vld [vmem:[#allocation19 + $0x4] ss:$12 sps:$4 sm:$0xff]  }
 0x9e7   :  { %5630 = vmatprep.subr.bf16.mxu1 %v10903_v37  ;;  %v10979_v37 = vld [vmem:[#allocation19 + $0xc8] ss:$12 sps:$4 sm:$0xff]  }
 0x9e9   :  { %5545 = vmatpush1.bf16.msra.mxu0 %v10898_v38  ;;  %v10976_v38 = vld [vmem:[#allocation19] ss:$12 sps:$4 sm:$0xff]  }
 0x9ea   :  { %5631 = vmatpush1.bf16.msra.mxu1 %v10901_v39  ;;  %5546 = vmatprep.subr.bf16.mxu0 %v10906_v40  ;;  %v10980_v39 = vld [vmem:[#allocation19 + $0x8] ss:$12 sps:$4 sm:$0xff]  }
 0x9eb   :  { %5632 = vmatprep.subr.bf16.mxu1 %v10909_v41  ;;  %v10983_v40 = vld [vmem:[#allocation19 + $0x1c] ss:$12 sps:$4 sm:$0xff]   ;;  %v10984_v41 = vld [vmem:[#allocation19 + $0xe0] ss:$12 sps:$4 sm:$0xff]  }
 0x9ed   :  { %5547 = vmatpush1.bf16.msra.mxu0 %v10904_v58  ;;  %v10981_v58 = vld [vmem:[#allocation19 + $0x18] ss:$12 sps:$4 sm:$0xff]  }
 0x9ee   :  { %5633 = vmatpush1.bf16.msra.mxu1 %v10907_v52  ;;  %5548 = vmatprep.subr.bf16.mxu0 %v10912_v42  ;;  %v10985_v52 = vld [vmem:[#allocation19 + $0x20] ss:$12 sps:$4 sm:$0xff]  }
 0x9ef   :  { %5634 = vmatprep.subr.bf16.mxu1 %v10915_v44  ;;  %v10988_v42 = vld [vmem:[#allocation19 + $0x34] ss:$12 sps:$4 sm:$0xff]   ;;  %v10989_v44 = vld [vmem:[#allocation19 + $0xf8] ss:$12 sps:$4 sm:$0xff]  }
 0x9f1   :  { %5549 = vmatpush1.bf16.msra.mxu0 %v10910_v46  ;;  %v10986_v46 = vld [vmem:[#allocation19 + $0x30] ss:$12 sps:$4 sm:$0xff]  }
 0x9f2   :  { %5635 = vmatpush1.bf16.msra.mxu1 %v10913_v43  ;;  %5550 = vmatprep.subr.bf16.mxu0 %v10918_v48  ;;  %v10990_v43 = vld [vmem:[#allocation19 + $0x38] ss:$12 sps:$4 sm:$0xff]  }
 0x9f3   :  { %5636 = vmatprep.subr.bf16.mxu1 %v10921_v53  ;;  %v10993_v48 = vld [vmem:[#allocation19 + $0x4c] ss:$12 sps:$4 sm:$0xff]   ;;  %v10994_v53 = vld [vmem:[#allocation19 + $0x110] ss:$12 sps:$4 sm:$0xff]  }
 0x9f5   :  { %5551 = vmatpush1.bf16.msra.mxu0 %v10916_v54  ;;  %v10991_v54 = vld [vmem:[#allocation19 + $0x48] ss:$12 sps:$4 sm:$0xff]  }
 0x9f6   :  { %5637 = vmatpush1.bf16.msra.mxu1 %v10919_v51  ;;  %5552 = vmatprep.subr.bf16.mxu0 %v10924_v56  ;;  %v10998_v51 = vld [vmem:[#allocation19 + $0x64] ss:$12 sps:$4 sm:$0xff]   ;;  %v10999_v56 = vld [vmem:[#allocation19 + $0x128] ss:$12 sps:$4 sm:$0xff]  }
 0x9f7   :  { %5638 = vmatprep.subr.bf16.mxu1 %v10927_v27  ;;  %v10996_v27 = vld [vmem:[#allocation19 + $0x60] ss:$12 sps:$4 sm:$0xff]  }
 0x9f9   :  { %5553 = vmatpush1.bf16.msra.mxu0 %v10922_v59  ;;  %v12469_v59 = vld [vmem:[#allocation17] sm:$0xff] }
 0x9fa   :  { %5639 = vmatpush1.bf16.msra.mxu1 %v10925_v49  ;;  %5565 = vmatprep.subr.bf16.mxu0 %v10930_v60  ;;  %v3692_v49 = vsub.s32 3, %v12321_v34  ;;  %v11000_v60 = vld [vmem:[#allocation19 + $0x68] ss:$12 sps:$4 sm:$0xff]  }
 0x9fb   :  { %5651 = vmatprep.subr.bf16.mxu1 %v10933_v55  ;;  %v11003_v55 = vld [vmem:[#allocation19 + $0x7c] ss:$12 sps:$4 sm:$0xff]  }
 0x9fc   :  { %5555 = vmatmul.mubr.bf16.vlgmr.msra.gmra.mrb[44].mxu0 %v12427_v50 }
 0x9fd   :  { %5641 = vmatmul.mubr.bf16.vlgmr.msra.gmra.mrb[32].mxu1 %v12427_v50  ;;  %5566 = vmatpush1.bf16.msra.mxu0 %v10928_v24  ;;  %v10951_v50 = vld [vmem:[#allocation16 + $0x74c] ss:$48 sps:$4 sm:$0xff]  }
 0x9fe   :  { %5652 = vmatpush1.bf16.msra.mxu1 %v10931_v30  ;;  %5567 = vmatprep.subr.bf16.mxu0 %v10936_v57  ;;  %v11004_v24 = vld [vmem:[#allocation19 + $0x140] ss:$12 sps:$4 sm:$0xff]   ;;  %v3681_v30 = vrot.slane %v12469_v59, %v12327_v36  ;;  %v3689_v57 = vrot.slane %v12469_v59, %v12324_v35 }
 0x9ff   :  { %5653 = vmatprep.subr.bf16.mxu1 %v10939_v63  ;;  %5597 = vmatprep.mubr.bf16.mxu0 %v11874_v0  ;;  %v3685_v63 = vrot.slane %v12469_v59, %v12330_v29 }
 0xa00   :  { %5683 = vmatprep.mubr.bf16.mxu1 %v11874_v0  ;;  %v10955_v0 = vld [vmem:[#allocation16 + $0x7a8] ss:$48 sps:$4 sm:$0xff]  }
 0xa01   :  { %5568 = vmatpush1.bf16.msra.mxu0 %v10934_v1  ;;  %v3693_v1 = vrot.slane %v12469_v59, %v3692_v49 }
 0xa02   :  { %5654 = vmatpush1.bf16.msra.mxu1 %v10937_v23  ;;  %5569 = vmatprep.subr.bf16.mxu0 %v10942_v2  ;;  %v11001_v23 = vld [vmem:[#allocation19 + $0x78] ss:$12 sps:$4 sm:$0xff]   ;;  %v11005_v2 = vld [vmem:[#allocation19 + $0x80] ss:$12 sps:$4 sm:$0xff]  }
 0xa03   :  { %5655 = vmatprep.subr.bf16.mxu1 %v10945_v3  ;;  %v11008_v3 = vld [vmem:[#allocation19 + $0x94] ss:$12 sps:$4 sm:$0xff]  }
 0xa05   :  { %5570 = vmatpush1.bf16.msra.mxu0 %v10940_v4 }
 0xa06   :  { %5656 = vmatpush1.bf16.msra.mxu1 %v10943_v19  ;;  %5571 = vmatprep.subr.bf16.mxu0 %v10948_v5  ;;  %v11009_v5 = vld [vmem:[#allocation19 + $0x158] ss:$12 sps:$4 sm:$0xff]  }
 0xa07   :  { %5657 = vmatprep.subr.bf16.mxu1 %v10951_v50 }
 0xa09   :  { %5572 = vmatpush1.bf16.msra.mxu0 %v10946_v6 }
 0xa0a   :  { %5658 = vmatpush1.bf16.msra.mxu1 %v10949_v8  ;;  %5573 = vmatprep.subr.bf16.mxu0 %v10954_v9 }
 0xa0b   :  { %5659 = vmatprep.subr.bf16.mxu1 %v10957_v10 }
 0xa0d   :  { %5574 = vmatpush1.bf16.msra.mxu0 %v10952_v11 }
 0xa0e   :  { %5660 = vmatpush1.bf16.msra.mxu1 %v10955_v0  ;;  %5575 = vmatprep.subr.bf16.mxu0 %v10960_v12 }
 0xa0f   :  { %5661 = vmatprep.subr.bf16.mxu1 %v10963_v13  ;;  %v11006_v13 = vld [vmem:[#allocation19 + $0x90] ss:$12 sps:$4 sm:$0xff]  }
 0xa11   :  { %5576 = vmatpush1.bf16.msra.mxu0 %v10958_v31 }
 0xa12   :  { %5662 = vmatpush1.bf16.msra.mxu1 %v10961_v15  ;;  %5577 = vmatprep.subr.bf16.mxu0 %v10966_v17 }
 0xa13   :  { %5663 = vmatprep.subr.bf16.mxu1 %v10969_v20 }
 0xa15   :  { %5578 = vmatpush1.bf16.msra.mxu0 %v10964_v21  ;;  %v11010_v21 = vld [vmem:[#allocation19 + $0x98] ss:$12 sps:$4 sm:$0xff]  }
 0xa16   :  { %5664 = vmatpush1.bf16.msra.mxu1 %v10967_v22  ;;  %5579 = vmatprep.subr.bf16.mxu0 %v10972_v26  ;;  %v11013_v22 = vld [vmem:[#allocation19 + $0xac] ss:$12 sps:$4 sm:$0xff]  }
 0xa17   :  { %5665 = vmatprep.subr.bf16.mxu1 %v10975_v28 }
 0xa19   :  { %5580 = vmatpush1.bf16.msra.mxu0 %v10970_v32  ;;  %v11014_v32 = vld [vmem:[#allocation19 + $0x170] ss:$12 sps:$4 sm:$0xff]  }
 0xa1a   :  { %5666 = vmatpush1.bf16.msra.mxu1 %v10973_v33  ;;  %7667 = vmatprep.subr.bf16.mxu0 %v10978_v14 }
 0xa1b   :  { %9652 = vmatprep.subr.bf16.mxu1 %v10979_v37 }
 0xa1c   :  { %5598 = vmatmul.mubr.bf16.vlgmr.msra.gmra.mrb[44].mxu0 %v12449_v47 }
 0xa1d   :  { %5684 = vmatmul.mubr.bf16.vlgmr.msra.gmra.mrb[32].mxu1 %v12449_v47  ;;  %7668 = vmatpush1.bf16.msra.mxu0 %v10976_v38  ;;  %v10995_v47 = vld [vmem:[#allocation19 + $0x50] ss:$12 sps:$4 sm:$0xff]  }
 0xa1e   :  { %9653 = vmatpush3.bf16.msra.mxu1 %v10980_v39  ;;  %7669 = vmatprep.subr.bf16.mxu0 %v10983_v40 }
 0xa1f   :  { %9654 = vmatprep.subr.bf16.mxu1 %v10984_v41 }
 0xa21   :  { %7670 = vmatpush1.bf16.msra.mxu0 %v10981_v58 }
 0xa22   :  { %9655 = vmatpush3.bf16.msra.mxu1 %v10985_v52  ;;  %7671 = vmatprep.subr.bf16.mxu0 %v10988_v42  ;;  %v11011_v52 = vld [vmem:[#allocation19 + $0xa8] ss:$12 sps:$4 sm:$0xff]  }
 0xa23   :  { %9656 = vmatprep.subr.bf16.mxu1 %v10989_v44 }
 0xa25   :  { %7672 = vmatpush1.bf16.msra.mxu0 %v10986_v46  ;;  %v11015_v46 = vld [vmem:[#allocation19 + $0xb0] ss:$12 sps:$4 sm:$0xff]  }
 0xa26   :  { %9657 = vmatpush3.bf16.msra.mxu1 %v10990_v43  ;;  %7673 = vmatprep.subr.bf16.mxu0 %v10993_v48 }
 0xa27   :  { %9658 = vmatprep.subr.bf16.mxu1 %v10994_v53  ;;  %v11018_v53 = vld [vmem:[#allocation19 + $0xc4] ss:$12 sps:$4 sm:$0xff]  }
 0xa29   :  { %7674 = vmatpush1.bf16.msra.mxu0 %v10991_v54  ;;  %v11019_v54 = vld [vmem:[#allocation19 + $0x248] ss:$12 sps:$4 sm:$0xff]  }
 0xa2a   :  { %9659 = vmatpush3.bf16.msra.mxu1 %v10995_v47  ;;  %7675 = vmatprep.subr.bf16.mxu0 %v10998_v51  ;;  %v11016_v47 = vld [vmem:[#allocation19 + $0xc0] ss:$12 sps:$4 sm:$0xff]   ;;  %v11020_v51 = vld [vmem:[#allocation19 + $0x188] ss:$12 sps:$4 sm:$0xff]  }
 0xa2b   :  { %9660 = vmatprep.subr.bf16.mxu1 %v10999_v56  ;;  %v11023_v56 = vld [vmem:[#allocation19 + $0xdc] ss:$12 sps:$4 sm:$0xff]  }
 0xa2d   :  { %7676 = vmatpush1.bf16.msra.mxu0 %v10996_v27  ;;  %v11024_v27 = vld [vmem:[#allocation19 + $0x260] ss:$12 sps:$4 sm:$0xff]  }
 0xa2e   :  { %9661 = vmatpush3.bf16.msra.mxu1 %v11000_v60  ;;  %7677 = vmatprep.subr.bf16.mxu0 %v11003_v55  ;;  %v11021_v60 = vld [vmem:[#allocation19 + $0xd8] ss:$12 sps:$4 sm:$0xff]   ;;  %v11025_v55 = vld [vmem:[#allocation19 + $0x1a0] ss:$12 sps:$4 sm:$0xff]  }
 0xa2f   :  { %v5255_v4 = vpop.f32.mrb[36].mxu0  ;;  %v5341_v19 = vpop.f32.mrb[24].mxu1  ;;  %9662 = vmatprep.subr.bf16.mxu1 %v11004_v24  ;;  %v11028_v24 = vld [vmem:[#allocation19 + $0xf4] ss:$12 sps:$4 sm:$0xff]  }
 0xa30   :  { %v10012_v50 = vadd.f32 %v5255_v4, %v3681_v30  ;;  %v10016_v6 = vadd.f32 %v5341_v19, %v3689_v57  ;;  %v5257_v8 = vpop.f32.mrb[37].mxu0  ;;  %v5343_v9 = vpop.f32.mrb[25].mxu1  ;;  %v11038_v4 = vld [vmem:[#allocation19 + $0x124] ss:$12 sps:$4 sm:$0xff]   ;;  %v11039_v19 = vld [vmem:[#allocation19 + $0x2a8] ss:$12 sps:$4 sm:$0xff]  }
 0xa31   :  { %v10013_v10 = vadd.f32 %v5257_v8, %v3685_v63  ;;  %v10017_v11 = vadd.f32 %v5343_v9, %v3693_v1  ;;  %v5259_v0 = vpop.f32.mrb[38].mxu0  ;;  %v5345_v12 = vpop.f32.mrb[26].mxu1  ;;  %7678 = vmatpush1.bf16.msra.mxu0 %v11001_v23  ;;  %v11034_v23 = vld [vmem:[#allocation19 + $0x290] ss:$12 sps:$4 sm:$0xff]   ;;  %v11044_v8 = vld [vmem:[#allocation19 + $0x2c0] ss:$12 sps:$4 sm:$0xff]  }
 0xa32   :  { %v10014_v31 = vadd.f32 %v5259_v0, %v3681_v30  ;;  %v10018_v15 = vadd.f32 %v5345_v12, %v3689_v57  ;;  %9663 = vmatpush3.bf16.msra.mxu1 %v11005_v2  ;;  %v5261_v17 = vpop.f32.mrb[39].mxu0  ;;  %v5347_v20 = vpop.f32.mrb[27].mxu1  ;;  %7679 = vmatprep.subr.bf16.mxu0 %v11008_v3  ;;  %v5694_v33 = vmax.f32 %v10012_v50, 0.0  ;;  %v5696_v14 = vmax.f32 %v10016_v6, 0.0  ;;  %v11029_v30 = vld [vmem:[#allocation19 + $0x278] ss:$12 sps:$4 sm:$0xff]  }
 0xa33   :  { %v10015_v26 = vadd.f32 %v5261_v17, %v3685_v63  ;;  %v10019_v28 = vadd.f32 %v5347_v20, %v3693_v1  ;;  %9664 = vmatprep.subr.bf16.mxu1 %v11009_v5  ;;  %v5695_v39 = vmax.f32 %v10013_v10, 0.0  ;;  %v5697_v40 = vmax.f32 %v10017_v11, 0.0  ;;  %v11026_v57 = vld [vmem:[#allocation19 + $0xf0] ss:$12 sps:$4 sm:$0xff]   ;;  %v11030_v63 = vld [vmem:[#allocation19 + $0x1b8] ss:$12 sps:$4 sm:$0xff]  }
 0xa34   :  { %v5706_v37 = vmax.f32 %v10014_v31, 0.0  ;;  %v5708_v38 = vmax.f32 %v10018_v15, 0.0  ;;  %v11033_v1 = vld [vmem:[#allocation19 + $0x10c] ss:$12 sps:$4 sm:$0xff]   ;;  %v11031_v2 = vld [vmem:[#allocation19 + $0x108] ss:$12 sps:$4 sm:$0xff]  }
 0xa35   :  { %v5707_v41 = vmax.f32 %v10015_v26, 0.0  ;;  %v5709_v58 = vmax.f32 %v10019_v28, 0.0  ;;  %7680 = vmatpush1.bf16.msra.mxu0 %v11006_v13  ;;  %v11035_v3 = vld [vmem:[#allocation19 + $0x1d0] ss:$12 sps:$4 sm:$0xff]   ;;  %v11036_v5 = vld [vmem:[#allocation19 + $0x120] ss:$12 sps:$4 sm:$0xff]  }
 0xa36   :  { %v12481_v42 = vpack.c.bf16 %v5706_v37, %v5694_v33  ;;  %v12483_v44 = vpack.c.bf16 %v5708_v38, %v5696_v14  ;;  %9665 = vmatpush3.bf16.msra.mxu1 %v11010_v21  ;;  %7681 = vmatprep.subr.bf16.mxu0 %v11013_v22  ;;  %v11040_v50 = vld [vmem:[#allocation19 + $0x1e8] ss:$12 sps:$4 sm:$0xff]   ;;  %v11041_v9 = vld [vmem:[#allocation19 + $0x138] ss:$12 sps:$4 sm:$0xff]   ;;  %v11045_v10 = vld [vmem:[#allocation19 + $0x200] ss:$12 sps:$4 sm:$0xff]  }
 0xa37   :  { %v5719_v43 = vpack.c.bf16 %v5707_v41, %v5695_v39  ;;  %v12485_v48 = vpack.c.bf16 %v5709_v58, %v5697_v40  ;;  %9666 = vmatprep.subr.bf16.mxu1 %v11014_v32  ;;  %v11043_v6 = vld [vmem:[#allocation19 + $0x13c] ss:$12 sps:$4 sm:$0xff]   ;;  %v11048_v11 = vld [vmem:[#allocation19 + $0x154] ss:$12 sps:$4 sm:$0xff]   ;;  %v11049_v0 = vld [vmem:[#allocation19 + $0x2d8] ss:$12 sps:$4 sm:$0xff]  }
 0xa38   :  { %v11046_v12 = vld [vmem:[#allocation19 + $0x150] ss:$12 sps:$4 sm:$0xff]   ;;  %v11050_v13 = vld [vmem:[#allocation19 + $0x218] ss:$12 sps:$4 sm:$0xff]   ;;  %v11051_v17 = vld [vmem:[#allocation19 + $0x168] ss:$12 sps:$4 sm:$0xff]  }
 0xa39   :  { %7682 = vmatpush1.bf16.msra.mxu0 %v11011_v52  ;;  %7699 = vmatprep.mubr.bf16.mxu0 %v5719_v43  ;;  %v11053_v31 = vld [vmem:[#allocation19 + $0x16c] ss:$12 sps:$4 sm:$0xff]   ;;  %v11054_v15 = vld [vmem:[#allocation19 + $0x2f0] ss:$12 sps:$4 sm:$0xff]   ;;  %v11080_v22 = vld [vmem:[#allocation19 + $0x3c8] ss:$12 sps:$4 sm:$0xff]  }
 0xa3a   :  { %9667 = vmatpush3.bf16.msra.mxu1 %v11015_v46  ;;  %7957 = vmatprep.mubr.bf16.mxu1 %v5719_v43  ;;  %v11055_v20 = vld [vmem:[#allocation19 + $0x230] ss:$12 sps:$4 sm:$0xff]   ;;  %v11056_v26 = vld [vmem:[#allocation19 + $0x180] ss:$12 sps:$4 sm:$0xff]   ;;  %v11081_v32 = vld [vmem:[#allocation19 + $0x308] ss:$12 sps:$4 sm:$0xff]  }
 0xa3b   :  { %7683 = vmatprep.subr.bf16.mxu0 %v11018_v53  ;;  %9674 = vmatprep.subr.bf16.mxu1 %v11019_v54  ;;  %v11058_v21 = vld [vmem:[#allocation19 + $0x184] ss:$12 sps:$4 sm:$0xff]   ;;  %v11061_v28 = vld [vmem:[#allocation19 + $0x19c] ss:$12 sps:$4 sm:$0xff]   ;;  %v11085_v33 = vld [vmem:[#allocation19 + $0x3e0] ss:$12 sps:$4 sm:$0xff]  }
 0xa3c   :  { %v11059_v14 = vld [vmem:[#allocation19 + $0x198] ss:$12 sps:$4 sm:$0xff]   ;;  %v11064_v37 = vld [vmem:[#allocation19 + $0x1b4] ss:$12 sps:$4 sm:$0xff]   ;;  %v11062_v40 = vld [vmem:[#allocation19 + $0x1b0] ss:$12 sps:$4 sm:$0xff]  }
 0xa3d   :  { %7958 = vmatmul.mubr.bf16.vlgmr.msra.gmra.mrb[36].mxu1 %v12481_v42  ;;  %7684 = vmatpush1.bf16.msra.mxu0 %v11016_v47  ;;  %v11086_v38 = vld [vmem:[#allocation19 + $0x320] ss:$12 sps:$4 sm:$0xff]   ;;  %v11090_v39 = vld [vmem:[#allocation19 + $0x3f8] ss:$12 sps:$4 sm:$0xff]   ;;  %v11095_v52 = vld [vmem:[#allocation19 + $0x410] ss:$12 sps:$4 sm:$0xff]  }
 0xa3e   :  { %9675 = vmatpush3.bf16.msra.mxu1 %v11020_v51  ;;  %7998 = vmatprep.mubr.bf16.mxu1 %v12485_v48  ;;  %v11067_v41 = vld [vmem:[#allocation19 + $0x1cc] ss:$12 sps:$4 sm:$0xff]   ;;  %v11070_v46 = vld [vmem:[#allocation19 + $0x1e4] ss:$12 sps:$4 sm:$0xff]   ;;  %v11073_v54 = vld [vmem:[#allocation19 + $0x1fc] ss:$12 sps:$4 sm:$0xff]  }
 0xa3f   :  { %7685 = vmatprep.subr.bf16.mxu0 %v11023_v56  ;;  %9676 = vmatprep.subr.bf16.mxu1 %v11024_v27  ;;  %v11091_v58 = vld [vmem:[#allocation19 + $0x338] ss:$12 sps:$4 sm:$0xff]   ;;  %v11096_v43 = vld [vmem:[#allocation19 + $0x350] ss:$12 sps:$4 sm:$0xff]   ;;  %v11068_v53 = vld [vmem:[#allocation19 + $0x1e0] ss:$12 sps:$4 sm:$0xff]  }
 0xa40   :  { %v11101_v47 = vld [vmem:[#allocation19 + $0x368] ss:$12 sps:$4 sm:$0xff]   ;;  %v11105_v51 = vld [vmem:[#allocation19 + $0x440] ss:$12 sps:$4 sm:$0xff]   ;;  %v11071_v56 = vld [vmem:[#allocation19 + $0x1f8] ss:$12 sps:$4 sm:$0xff]  }
 0xa41   :  { %7686 = vmatpush1.bf16.msra.mxu0 %v11021_v60  ;;  %v11076_v27 = vld [vmem:[#allocation19 + $0x214] ss:$12 sps:$4 sm:$0xff]  }
 0xa42   :  { %9677 = vmatpush3.bf16.msra.mxu1 %v11025_v55  ;;  %7687 = vmatprep.subr.bf16.mxu0 %v11028_v24  ;;  %v11106_v60 = vld [vmem:[#allocation19 + $0x380] ss:$12 sps:$4 sm:$0xff]   ;;  %v11110_v55 = vld [vmem:[#allocation19 + $0x458] ss:$12 sps:$4 sm:$0xff]   ;;  %v11074_v24 = vld [vmem:[#allocation19 + $0x210] ss:$12 sps:$4 sm:$0xff]  }
 0xa43   :  { %9678 = vmatprep.subr.bf16.mxu1 %v11029_v30  ;;  %v11079_v30 = vld [vmem:[#allocation19 + $0x22c] ss:$12 sps:$4 sm:$0xff]  }
 0xa45   :  { %7688 = vmatpush1.bf16.msra.mxu0 %v11026_v57  ;;  %v11111_v57 = vld [vmem:[#allocation19 + $0x398] ss:$12 sps:$4 sm:$0xff]  }
 0xa46   :  { %9679 = vmatpush3.bf16.msra.mxu1 %v11030_v63  ;;  %7689 = vmatprep.subr.bf16.mxu0 %v11033_v1  ;;  %v11115_v63 = vld [vmem:[#allocation19 + $0x470] ss:$12 sps:$4 sm:$0xff]   ;;  %v11077_v1 = vld [vmem:[#allocation19 + $0x228] ss:$12 sps:$4 sm:$0xff]  }
 0xa47   :  { %9680 = vmatprep.subr.bf16.mxu1 %v11034_v23  ;;  %v11084_v23 = vld [vmem:[#allocation19 + $0x244] ss:$12 sps:$4 sm:$0xff]  }
 0xa49   :  { %7690 = vmatpush1.bf16.msra.mxu0 %v11031_v2  ;;  %v11116_v2 = vld [vmem:[#allocation19 + $0x3b0] ss:$12 sps:$4 sm:$0xff]  }
 0xa4a   :  { %9681 = vmatpush3.bf16.msra.mxu1 %v11035_v3  ;;  %7691 = vmatprep.subr.bf16.mxu0 %v11038_v4  ;;  %v11120_v3 = vld [vmem:[#allocation19 + $0x548] ss:$12 sps:$4 sm:$0xff]   ;;  %v11082_v4 = vld [vmem:[#allocation19 + $0x240] ss:$12 sps:$4 sm:$0xff]  }
 0xa4b   :  { %9682 = vmatprep.subr.bf16.mxu1 %v11039_v19  ;;  %v11089_v19 = vld [vmem:[#allocation19 + $0x25c] ss:$12 sps:$4 sm:$0xff]  }
 0xa4d   :  { %7692 = vmatpush1.bf16.msra.mxu0 %v11036_v5  ;;  %v11087_v5 = vld [vmem:[#allocation19 + $0x258] ss:$12 sps:$4 sm:$0xff]  }
 0xa4e   :  { %9683 = vmatpush3.bf16.msra.mxu1 %v11040_v50  ;;  %7693 = vmatprep.subr.bf16.mxu0 %v11043_v6  ;;  %v11094_v50 = vld [vmem:[#allocation19 + $0x274] ss:$12 sps:$4 sm:$0xff]   ;;  %v11092_v6 = vld [vmem:[#allocation19 + $0x270] ss:$12 sps:$4 sm:$0xff]  }
 0xa4f   :  { %9684 = vmatprep.subr.bf16.mxu1 %v11044_v8  ;;  %v11099_v8 = vld [vmem:[#allocation19 + $0x28c] ss:$12 sps:$4 sm:$0xff]  }
 0xa51   :  { %7694 = vmatpush1.bf16.msra.mxu0 %v11041_v9  ;;  %v11097_v9 = vld [vmem:[#allocation19 + $0x288] ss:$12 sps:$4 sm:$0xff]  }
 0xa52   :  { %9685 = vmatpush3.bf16.msra.mxu1 %v11045_v10  ;;  %7695 = vmatprep.subr.bf16.mxu0 %v11048_v11  ;;  %v11104_v10 = vld [vmem:[#allocation19 + $0x2a4] ss:$12 sps:$4 sm:$0xff]   ;;  %v3696_v11 = vsub.s32 4, %v12321_v34 }
 0xa53   :  { %9686 = vmatprep.subr.bf16.mxu1 %v11049_v0  ;;  %v11102_v0 = vld [vmem:[#allocation19 + $0x2a0] ss:$12 sps:$4 sm:$0xff]  }
 0xa55   :  { %7696 = vmatpush1.bf16.msra.mxu0 %v11046_v12  ;;  %v3704_v12 = vsub.s32 6, %v12321_v34 }
 0xa56   :  { %9687 = vmatpush3.bf16.msra.mxu1 %v11050_v13  ;;  %7697 = vmatprep.subr.bf16.mxu0 %v11053_v31  ;;  %v3700_v13 = vsub.s32 5, %v12321_v34  ;;  %v3708_v31 = vsub.s32 7, %v12321_v34 }
 0xa57   :  { %9688 = vmatprep.subr.bf16.mxu1 %v11054_v15  ;;  %v11109_v15 = vld [vmem:[#allocation19 + $0x2bc] ss:$12 sps:$4 sm:$0xff]  }
 0xa59   :  { %7698 = vmatpush1.bf16.msra.mxu0 %v11051_v17  ;;  %v3697_v17 = vrot.slane %v12469_v59, %v3696_v11  ;;  %v11134_v11 = vld [vmem:[#allocation19 + $0x334] ss:$12 sps:$4 sm:$0xff]  }
 0xa5a   :  { %9689 = vmatpush3.bf16.msra.mxu1 %v11055_v20  ;;  %7710 = vmatprep.subr.bf16.mxu0 %v11058_v21  ;;  %v3705_v20 = vrot.slane %v12469_v59, %v3704_v12  ;;  %v3701_v21 = vrot.slane %v12469_v59, %v3700_v13  ;;  %v11135_v12 = vld [vmem:[#allocation19 + $0x590] ss:$12 sps:$4 sm:$0xff]  }
 0xa5b   :  { %9696 = vmatprep.subr.bf16.mxu1 %v11080_v22  ;;  %v11107_v22 = vld [vmem:[#allocation19 + $0x2b8] ss:$12 sps:$4 sm:$0xff]   ;;  %v11132_v13 = vld [vmem:[#allocation19 + $0x330] ss:$12 sps:$4 sm:$0xff]  }
 0xa5c   :  { %7700 = vmatmul.mubr.bf16.vlgmr.msra.gmra.mrb[48].mxu0 %v12481_v42  ;;  %v11065_v42 = vld [vmem:[#allocation19 + $0x1c8] ss:$12 sps:$4 sm:$0xff]  }
 0xa5d   :  { %7999 = vmatmul.mubr.bf16.vlgmr.msra.gmra.mrb[40].mxu1 %v12483_v44  ;;  %7711 = vmatpush1.bf16.msra.mxu0 %v11056_v26  ;;  %v3709_v26 = vrot.slane %v12469_v59, %v3708_v31  ;;  %v11139_v31 = vld [vmem:[#allocation19 + $0x34c] ss:$12 sps:$4 sm:$0xff]  }
 0xa5e   :  { %7742 = vmatprep.mubr.bf16.mxu0 %v12485_v48  ;;  %7712 = vmatprep.subr.bf16.mxu0 %v11061_v28  ;;  %v11100_v48 = vld [vmem:[#allocation19 + $0x428] ss:$12 sps:$4 sm:$0xff]  }
 0xa5f   :  { %9697 = vmatpush3.bf16.msra.mxu1 %v11081_v32  ;;  %v11114_v28 = vld [vmem:[#allocation19 + $0x2d4] ss:$12 sps:$4 sm:$0xff]  }
 0xa60   :  { %9698 = vmatprep.subr.bf16.mxu1 %v11085_v33 }
 0xa61   :  { %7713 = vmatpush1.bf16.msra.mxu0 %v11059_v14 }
 0xa62   :  { %7714 = vmatprep.subr.bf16.mxu0 %v11064_v37 }
 0xa63   :  { %9699 = vmatpush3.bf16.msra.mxu1 %v11086_v38 }
 0xa64   :  { %9700 = vmatprep.subr.bf16.mxu1 %v11090_v39 }
 0xa65   :  { %7715 = vmatpush1.bf16.msra.mxu0 %v11062_v40 }
 0xa66   :  { %7716 = vmatprep.subr.bf16.mxu0 %v11067_v41 }
 0xa67   :  { %9701 = vmatpush3.bf16.msra.mxu1 %v11091_v58  ;;  %v11112_v58 = vld [vmem:[#allocation19 + $0x2d0] ss:$12 sps:$4 sm:$0xff]  }
 0xa68   :  { %9702 = vmatprep.subr.bf16.mxu1 %v11095_v52 }
 0xa69   :  { %7717 = vmatpush1.bf16.msra.mxu0 %v11065_v42 }
 0xa6a   :  { %7718 = vmatprep.subr.bf16.mxu0 %v11070_v46 }
 0xa6b   :  { %9703 = vmatpush3.bf16.msra.mxu1 %v11096_v43 }
 0xa6c   :  { %9704 = vmatprep.subr.bf16.mxu1 %v11100_v48  ;;  %v11119_v48 = vld [vmem:[#allocation19 + $0x2ec] ss:$12 sps:$4 sm:$0xff]  }
 0xa6d   :  { %7719 = vmatpush1.bf16.msra.mxu0 %v11068_v53 }
 0xa6e   :  { %7720 = vmatprep.subr.bf16.mxu0 %v11073_v54 }
 0xa6f   :  { %9705 = vmatpush3.bf16.msra.mxu1 %v11101_v47 }
 0xa70   :  { %9706 = vmatprep.subr.bf16.mxu1 %v11105_v51 }
 0xa71   :  { %7721 = vmatpush1.bf16.msra.mxu0 %v11071_v56 }
 0xa72   :  { %7722 = vmatprep.subr.bf16.mxu0 %v11076_v27 }
 0xa73   :  { %9707 = vmatpush3.bf16.msra.mxu1 %v11106_v60 }
 0xa74   :  { %9708 = vmatprep.subr.bf16.mxu1 %v11110_v55 }
 0xa75   :  { %7723 = vmatpush1.bf16.msra.mxu0 %v11074_v24 }
 0xa76   :  { %7724 = vmatprep.subr.bf16.mxu0 %v11079_v30  ;;  %v11117_v30 = vld [vmem:[#allocation19 + $0x2e8] ss:$12 sps:$4 sm:$0xff]  }
 0xa77   :  { %9709 = vmatpush3.bf16.msra.mxu1 %v11111_v57 }
 0xa78   :  { %9710 = vmatprep.subr.bf16.mxu1 %v11115_v63 }
 0xa79   :  { %7725 = vmatpush1.bf16.msra.mxu0 %v11077_v1 }
 0xa7a   :  { %7726 = vmatprep.subr.bf16.mxu0 %v11084_v23  ;;  %v11124_v23 = vld [vmem:[#allocation19 + $0x304] ss:$12 sps:$4 sm:$0xff]  }
 0xa7b   :  { %9711 = vmatpush3.bf16.msra.mxu1 %v11116_v2 }
 0xa7c   :  { %9718 = vmatprep.subr.bf16.mxu1 %v11120_v3 }
 0xa7d   :  { %7727 = vmatpush1.bf16.msra.mxu0 %v11082_v4  ;;  %v11121_v4 = vld [vmem:[#allocation19 + $0x488] ss:$12 sps:$4 sm:$0xff]  }
 0xa7e   :  { %7728 = vmatprep.subr.bf16.mxu0 %v11089_v19 }
 0xa81   :  { %7729 = vmatpush1.bf16.msra.mxu0 %v11087_v5  ;;  %v11125_v5 = vld [vmem:[#allocation19 + $0x560] ss:$12 sps:$4 sm:$0xff]  }
 0xa82   :  { %7730 = vmatprep.subr.bf16.mxu0 %v11094_v50  ;;  %v11122_v50 = vld [vmem:[#allocation19 + $0x300] ss:$12 sps:$4 sm:$0xff]  }
 0xa85   :  { %7731 = vmatpush1.bf16.msra.mxu0 %v11092_v6  ;;  %v11129_v6 = vld [vmem:[#allocation19 + $0x31c] ss:$12 sps:$4 sm:$0xff]  }
 0xa86   :  { %7732 = vmatprep.subr.bf16.mxu0 %v11099_v8  ;;  %v11126_v8 = vld [vmem:[#allocation19 + $0x4a0] ss:$12 sps:$4 sm:$0xff]  }
 0xa89   :  { %7733 = vmatpush1.bf16.msra.mxu0 %v11097_v9  ;;  %v11130_v9 = vld [vmem:[#allocation19 + $0x578] ss:$12 sps:$4 sm:$0xff]  }
 0xa8a   :  { %7734 = vmatprep.subr.bf16.mxu0 %v11104_v10  ;;  %v11127_v10 = vld [vmem:[#allocation19 + $0x318] ss:$12 sps:$4 sm:$0xff]  }
 0xa8d   :  { %7735 = vmatpush1.bf16.msra.mxu0 %v11102_v0  ;;  %v11131_v0 = vld [vmem:[#allocation19 + $0x4b8] ss:$12 sps:$4 sm:$0xff]  }
 0xa8e   :  { %7736 = vmatprep.subr.bf16.mxu0 %v11109_v15  ;;  %v11136_v15 = vld [vmem:[#allocation19 + $0x4d0] ss:$12 sps:$4 sm:$0xff]  }
 0xa8f   :  { %v5427_v32 = vpop.f32.mrb[40].mxu0 }
 0xa90   :  { %v10020_v33 = vadd.f32 %v5427_v32, %v3697_v17  ;;  %v5513_v14 = vpop.f32.mrb[28].mxu1  ;;  %v5429_v37 = vpop.f32.mrb[41].mxu0  ;;  %v11146_v32 = vld [vmem:[#allocation19 + $0x500] ss:$12 sps:$4 sm:$0xff]  }
 0xa91   :  { %v10024_v38 = vadd.f32 %v5513_v14, %v3705_v20  ;;  %v10021_v39 = vadd.f32 %v5429_v37, %v3701_v21  ;;  %v5515_v40 = vpop.f32.mrb[29].mxu1  ;;  %v5431_v41 = vpop.f32.mrb[42].mxu0  ;;  %7737 = vmatpush1.bf16.msra.mxu0 %v11107_v22  ;;  %v11145_v22 = vld [vmem:[#allocation19 + $0x5c0] ss:$12 sps:$4 sm:$0xff]   ;;  %v11147_v14 = vld [vmem:[#allocation19 + $0x378] ss:$12 sps:$4 sm:$0xff]  }
 0xa92   :  { %v10025_v52 = vadd.f32 %v5515_v40, %v3709_v26  ;;  %v10022_v42 = vadd.f32 %v5431_v41, %v3697_v17  ;;  %v5517_v46 = vpop.f32.mrb[30].mxu1  ;;  %v5433_v43 = vpop.f32.mrb[43].mxu0  ;;  %7738 = vmatprep.subr.bf16.mxu0 %v11114_v28  ;;  %v5698_v47 = vmax.f32 %v10020_v33, 0.0  ;;  %v11140_v17 = vld [vmem:[#allocation19 + $0x5a8] ss:$12 sps:$4 sm:$0xff]  }
 0xa93   :  { %v10026_v53 = vadd.f32 %v5517_v46, %v3705_v20  ;;  %v10023_v59 = vadd.f32 %v5433_v43, %v3701_v21  ;;  %v5519_v54 = vpop.f32.mrb[31].mxu1  ;;  %v5700_v27 = vmax.f32 %v10024_v38, 0.0  ;;  %v5699_v60 = vmax.f32 %v10021_v39, 0.0  ;;  %v11144_v20 = vld [vmem:[#allocation19 + $0x364] ss:$12 sps:$4 sm:$0xff]  }
 0xa94   :  { %v5710_v51 = vmax.f32 %v10022_v42, 0.0  ;;  %v10027_v56 = vadd.f32 %v5519_v54, %v3709_v26  ;;  %v5701_v57 = vmax.f32 %v10025_v52, 0.0  ;;  %v11141_v21 = vld [vmem:[#allocation19 + $0x4e8] ss:$12 sps:$4 sm:$0xff]   ;;  %v11142_v26 = vld [vmem:[#allocation19 + $0x360] ss:$12 sps:$4 sm:$0xff]  }
 0xa95   :  { %v5712_v55 = vmax.f32 %v10026_v53, 0.0  ;;  %v5711_v24 = vmax.f32 %v10023_v59, 0.0  ;;  %7739 = vmatpush1.bf16.msra.mxu0 %v11112_v58  ;;  %v11149_v28 = vld [vmem:[#allocation19 + $0x37c] ss:$12 sps:$4 sm:$0xff]   ;;  %v11150_v33 = vld [vmem:[#allocation19 + $0x5d8] ss:$12 sps:$4 sm:$0xff]  }
 0xa96   :  { %v12500_v63 = vpack.c.bf16 %v5710_v51, %v5698_v47  ;;  %v5713_v1 = vmax.f32 %v10027_v56, 0.0  ;;  %7740 = vmatprep.subr.bf16.mxu0 %v11119_v48  ;;  %v11154_v37 = vld [vmem:[#allocation19 + $0x394] ss:$12 sps:$4 sm:$0xff]   ;;  %v11151_v38 = vld [vmem:[#allocation19 + $0x518] ss:$12 sps:$4 sm:$0xff]  }
 0xa97   :  { %v12502_v2 = vpack.c.bf16 %v5712_v55, %v5700_v27  ;;  %v5723_v3 = vpack.c.bf16 %v5711_v24, %v5699_v60  ;;  %v11155_v39 = vld [vmem:[#allocation19 + $0x5f0] ss:$12 sps:$4 sm:$0xff]   ;;  %v11159_v41 = vld [vmem:[#allocation19 + $0x3ac] ss:$12 sps:$4 sm:$0xff]   ;;  %v11184_v52 = vld [vmem:[#allocation19 + $0x6c8] ss:$12 sps:$4 sm:$0xff]  }
 0xa98   :  { %v12504_v19 = vpack.c.bf16 %v5713_v1, %v5701_v57  ;;  %v11152_v40 = vld [vmem:[#allocation19 + $0x390] ss:$12 sps:$4 sm:$0xff]   ;;  %v11157_v42 = vld [vmem:[#allocation19 + $0x3a8] ss:$12 sps:$4 sm:$0xff]   ;;  %v11189_v48 = vld [vmem:[#allocation19 + $0x6e0] ss:$12 sps:$4 sm:$0xff]  }
 0xa99   :  { %7741 = vmatpush1.bf16.msra.mxu0 %v11117_v30  ;;  %8039 = vmatprep.mubr.bf16.mxu1 %v5723_v3  ;;  %v11156_v58 = vld [vmem:[#allocation19 + $0x530] ss:$12 sps:$4 sm:$0xff]   ;;  %v11185_v43 = vld [vmem:[#allocation19 + $0x608] ss:$12 sps:$4 sm:$0xff]   ;;  %v11160_v53 = vld [vmem:[#allocation19 + $0x3c0] ss:$12 sps:$4 sm:$0xff]  }
 0xa9a   :  { %8040 = vmatmul.mubr.bf16.vlgmr.msra.gmra.mrb[44].mxu1 %v12500_v63  ;;  %7753 = vmatprep.subr.bf16.mxu0 %v11124_v23  ;;  %v11162_v46 = vld [vmem:[#allocation19 + $0x3c4] ss:$12 sps:$4 sm:$0xff]   ;;  %v11165_v59 = vld [vmem:[#allocation19 + $0x3dc] ss:$12 sps:$4 sm:$0xff]   ;;  %v11190_v54 = vld [vmem:[#allocation19 + $0x620] ss:$12 sps:$4 sm:$0xff]  }
 0xa9b   :  { %9719 = vmatpush3.bf16.msra.mxu1 %v11121_v4  ;;  %8080 = vmatprep.mubr.bf16.mxu1 %v12504_v19  ;;  %v11194_v47 = vld [vmem:[#allocation19 + $0x6f8] ss:$12 sps:$4 sm:$0xff]   ;;  %v11168_v56 = vld [vmem:[#allocation19 + $0x3f4] ss:$12 sps:$4 sm:$0xff]   ;;  %v11199_v60 = vld [vmem:[#allocation19 + $0x710] ss:$12 sps:$4 sm:$0xff]  }
 0xa9c   :  { %7743 = vmatmul.mubr.bf16.vlgmr.msra.gmra.mrb[48].mxu0 %v12483_v44  ;;  %9720 = vmatprep.subr.bf16.mxu1 %v11125_v5  ;;  %v11137_v44 = vld [vmem:[#allocation19 + $0x348] ss:$12 sps:$4 sm:$0xff]   ;;  %v11163_v51 = vld [vmem:[#allocation19 + $0x3d8] ss:$12 sps:$4 sm:$0xff]   ;;  %v11166_v55 = vld [vmem:[#allocation19 + $0x3f0] ss:$12 sps:$4 sm:$0xff]  }
 0xa9d   :  { %7754 = vmatpush1.bf16.msra.mxu0 %v11122_v50  ;;  %7785 = vmatprep.mubr.bf16.mxu0 %v5723_v3  ;;  %v11195_v27 = vld [vmem:[#allocation19 + $0x638] ss:$12 sps:$4 sm:$0xff]   ;;  %v11200_v30 = vld [vmem:[#allocation19 + $0x650] ss:$12 sps:$4 sm:$0xff]   ;;  %v11204_v57 = vld [vmem:[#allocation19 + $0x728] ss:$12 sps:$4 sm:$0xff]  }
 0xa9e   :  { %7755 = vmatprep.subr.bf16.mxu0 %v11129_v6  ;;  %v11171_v24 = vld [vmem:[#allocation19 + $0x40c] ss:$12 sps:$4 sm:$0xff]   ;;  %v11169_v1 = vld [vmem:[#allocation19 + $0x408] ss:$12 sps:$4 sm:$0xff]   ;;  %v11174_v23 = vld [vmem:[#allocation19 + $0x424] ss:$12 sps:$4 sm:$0xff]  }
 0xa9f   :  { %9721 = vmatpush3.bf16.msra.mxu1 %v11126_v8  ;;  %v11205_v3 = vld [vmem:[#allocation19 + $0x668] ss:$12 sps:$4 sm:$0xff]   ;;  %v11209_v4 = vld [vmem:[#allocation19 + $0x740] ss:$12 sps:$4 sm:$0xff]   ;;  %v11214_v8 = vld [vmem:[#allocation19 + $0x758] ss:$12 sps:$4 sm:$0xff]  }
 0xaa0   :  { %9722 = vmatprep.subr.bf16.mxu1 %v11130_v9  ;;  %v11172_v5 = vld [vmem:[#allocation19 + $0x420] ss:$12 sps:$4 sm:$0xff]   ;;  %v11177_v50 = vld [vmem:[#allocation19 + $0x43c] ss:$12 sps:$4 sm:$0xff]   ;;  %v11175_v9 = vld [vmem:[#allocation19 + $0x438] ss:$12 sps:$4 sm:$0xff]  }
 0xaa1   :  { %7756 = vmatpush1.bf16.msra.mxu0 %v11127_v10  ;;  %v11210_v6 = vld [vmem:[#allocation19 + $0x680] ss:$12 sps:$4 sm:$0xff]  }
 0xaa2   :  { %7757 = vmatprep.subr.bf16.mxu0 %v11134_v11  ;;  %v11180_v10 = vld [vmem:[#allocation19 + $0x454] ss:$12 sps:$4 sm:$0xff]   ;;  %v11215_v11 = vld [vmem:[#allocation19 + $0x698] ss:$12 sps:$4 sm:$0xff]  }
 0xaa3   :  { %9723 = vmatpush3.bf16.msra.mxu1 %v11131_v0  ;;  %v11219_v0 = vld [vmem:[#allocation19 + $0x770] ss:$12 sps:$4 sm:$0xff]  }
 0xaa4   :  { %9724 = vmatprep.subr.bf16.mxu1 %v11135_v12  ;;  %v11178_v12 = vld [vmem:[#allocation19 + $0x450] ss:$12 sps:$4 sm:$0xff]  }
 0xaa5   :  { %7758 = vmatpush1.bf16.msra.mxu0 %v11132_v13  ;;  %v11183_v13 = vld [vmem:[#allocation19 + $0x46c] ss:$12 sps:$4 sm:$0xff]  }
 0xaa6   :  { %7759 = vmatprep.subr.bf16.mxu0 %v11139_v31  ;;  %v11220_v31 = vld [vmem:[#allocation19 + $0x6b0] ss:$12 sps:$4 sm:$0xff]  }
 0xaa7   :  { %9725 = vmatpush3.bf16.msra.mxu1 %v11136_v15  ;;  %v11224_v15 = vld [vmem:[#allocation19 + $0x848] ss:$12 sps:$4 sm:$0xff]  }
 0xaa8   :  { %9726 = vmatprep.subr.bf16.mxu1 %v11140_v17  ;;  %v11181_v17 = vld [vmem:[#allocation19 + $0x468] ss:$12 sps:$4 sm:$0xff]  }
 0xaa9   :  { %7760 = vmatpush1.bf16.msra.mxu0 %v11137_v44  ;;  %v11188_v44 = vld [vmem:[#allocation19 + $0x484] ss:$12 sps:$4 sm:$0xff]  }
 0xaaa   :  { %7761 = vmatprep.subr.bf16.mxu0 %v11144_v20  ;;  %v11186_v20 = vld [vmem:[#allocation19 + $0x480] ss:$12 sps:$4 sm:$0xff]  }
 0xaab   :  { %9727 = vmatpush3.bf16.msra.mxu1 %v11141_v21  ;;  %v11193_v21 = vld [vmem:[#allocation19 + $0x49c] ss:$12 sps:$4 sm:$0xff]  }
 0xaac   :  { %9728 = vmatprep.subr.bf16.mxu1 %v11145_v22  ;;  %v11191_v22 = vld [vmem:[#allocation19 + $0x498] ss:$12 sps:$4 sm:$0xff]  }
 0xaad   :  { %7762 = vmatpush1.bf16.msra.mxu0 %v11142_v26  ;;  %v11198_v26 = vld [vmem:[#allocation19 + $0x4b4] ss:$12 sps:$4 sm:$0xff]  }
 0xaae   :  { %7763 = vmatprep.subr.bf16.mxu0 %v11149_v28  ;;  %v11196_v28 = vld [vmem:[#allocation19 + $0x4b0] ss:$12 sps:$4 sm:$0xff]  }
 0xaaf   :  { %9729 = vmatpush3.bf16.msra.mxu1 %v11146_v32  ;;  %v11203_v32 = vld [vmem:[#allocation19 + $0x4cc] ss:$12 sps:$4 sm:$0xff]  }
 0xab0   :  { %9730 = vmatprep.subr.bf16.mxu1 %v11150_v33  ;;  %v11201_v33 = vld [vmem:[#allocation19 + $0x4c8] ss:$12 sps:$4 sm:$0xff]  }
 0xab1   :  { %7764 = vmatpush1.bf16.msra.mxu0 %v11147_v14  ;;  %v11208_v14 = vld [vmem:[#allocation19 + $0x4e4] ss:$12 sps:$4 sm:$0xff]  }
 0xab2   :  { %7765 = vmatprep.subr.bf16.mxu0 %v11154_v37  ;;  %v11206_v37 = vld [vmem:[#allocation19 + $0x4e0] ss:$12 sps:$4 sm:$0xff]  }
 0xab3   :  { %9731 = vmatpush3.bf16.msra.mxu1 %v11151_v38  ;;  %v3675_v38 = vld [vmem:[#allocation17 + $0x8] sm:$0xf] }
 0xab4   :  { %9732 = vmatprep.subr.bf16.mxu1 %v11155_v39  ;;  %v11213_v39 = vld [vmem:[#allocation19 + $0x4fc] ss:$12 sps:$4 sm:$0xff]  }
 0xab5   :  { %7766 = vmatpush1.bf16.msra.mxu0 %v11152_v40  ;;  %v3717_v40 = vrot.slane %v3675_v38, %v12330_v29 }
 0xab6   :  { %7767 = vmatprep.subr.bf16.mxu0 %v11159_v41  ;;  %v11211_v41 = vld [vmem:[#allocation19 + $0x4f8] ss:$12 sps:$4 sm:$0xff]  }
 0xab7   :  { %9733 = vmatpush3.bf16.msra.mxu1 %v11156_v58  ;;  %v3725_v58 = vrot.slane %v3675_v38, %v3692_v49 }
 0xab8   :  { %9740 = vmatprep.subr.bf16.mxu1 %v11184_v52  ;;  %v11218_v52 = vld [vmem:[#allocation19 + $0x514] ss:$12 sps:$4 sm:$0xff]  }
 0xab9   :  { %7768 = vmatpush1.bf16.msra.mxu0 %v11157_v42 }
 0xaba   :  { %8081 = vmatmul.mubr.bf16.vlgmr.msra.gmra.mrb[48].mxu1 %v12502_v2  ;;  %7769 = vmatprep.subr.bf16.mxu0 %v11162_v46 }
 0xabb   :  { %9741 = vmatpush3.bf16.msra.mxu1 %v11185_v43 }
 0xabc   :  { %9742 = vmatprep.subr.bf16.mxu1 %v11189_v48 }
 0xabd   :  { %7770 = vmatpush1.bf16.msra.mxu0 %v11160_v53 }
 0xabe   :  { %7771 = vmatprep.subr.bf16.mxu0 %v11165_v59 }
 0xabf   :  { %9743 = vmatpush3.bf16.msra.mxu1 %v11190_v54 }
 0xac0   :  { %9744 = vmatprep.subr.bf16.mxu1 %v11194_v47 }
 0xac1   :  { %7772 = vmatpush1.bf16.msra.mxu0 %v11163_v51  ;;  %v11216_v51 = vld [vmem:[#allocation19 + $0x510] ss:$12 sps:$4 sm:$0xff]  }
 0xac2   :  { %7773 = vmatprep.subr.bf16.mxu0 %v11168_v56 }
 0xac3   :  { %9745 = vmatpush3.bf16.msra.mxu1 %v11195_v27 }
 0xac4   :  { %9746 = vmatprep.subr.bf16.mxu1 %v11199_v60 }
 0xac5   :  { %7774 = vmatpush1.bf16.msra.mxu0 %v11166_v55 }
 0xac6   :  { %7775 = vmatprep.subr.bf16.mxu0 %v11171_v24  ;;  %v11223_v24 = vld [vmem:[#allocation19 + $0x52c] ss:$12 sps:$4 sm:$0xff]  }
 0xac7   :  { %9747 = vmatpush3.bf16.msra.mxu1 %v11200_v30 }
 0xac8   :  { %9748 = vmatprep.subr.bf16.mxu1 %v11204_v57 }
 0xac9   :  { %7776 = vmatpush1.bf16.msra.mxu0 %v11169_v1 }
 0xaca   :  { %7777 = vmatprep.subr.bf16.mxu0 %v11174_v23 }
 0xacb   :  { %9749 = vmatpush3.bf16.msra.mxu1 %v11205_v3 }
 0xacc   :  { %9750 = vmatprep.subr.bf16.mxu1 %v11209_v4 }
 0xacd   :  { %7778 = vmatpush1.bf16.msra.mxu0 %v11172_v5 }
 0xace   :  { %7779 = vmatprep.subr.bf16.mxu0 %v11177_v50 }
 0xacf   :  { %9751 = vmatpush3.bf16.msra.mxu1 %v11210_v6  ;;  %v11221_v6 = vld [vmem:[#allocation19 + $0x528] ss:$12 sps:$4 sm:$0xff]  }
 0xad0   :  { %9752 = vmatprep.subr.bf16.mxu1 %v11214_v8 }
 0xad1   :  { %7780 = vmatpush1.bf16.msra.mxu0 %v11175_v9 }
 0xad2   :  { %7781 = vmatprep.subr.bf16.mxu0 %v11180_v10 }
 0xad3   :  { %9753 = vmatpush3.bf16.msra.mxu1 %v11215_v11  ;;  %v11228_v11 = vld [vmem:[#allocation19 + $0x544] ss:$12 sps:$4 sm:$0xff]  }
 0xad4   :  { %9754 = vmatprep.subr.bf16.mxu1 %v11219_v0 }
 0xad5   :  { %7782 = vmatpush1.bf16.msra.mxu0 %v11178_v12 }
 0xad6   :  { %7783 = vmatprep.subr.bf16.mxu0 %v11183_v13  ;;  %v11225_v13 = vld [vmem:[#allocation19 + $0x788] ss:$12 sps:$4 sm:$0xff]  }
 0xad7   :  { %9755 = vmatpush3.bf16.msra.mxu1 %v11220_v31 }
 0xad8   :  { %9762 = vmatprep.subr.bf16.mxu1 %v11224_v15  ;;  %v11229_v15 = vld [vmem:[#allocation19 + $0x860] ss:$12 sps:$4 sm:$0xff]  }
 0xad9   :  { %7784 = vmatpush1.bf16.msra.mxu0 %v11181_v17  ;;  %v11226_v17 = vld [vmem:[#allocation19 + $0x540] ss:$12 sps:$4 sm:$0xff]  }
 0xada   :  { %7796 = vmatprep.subr.bf16.mxu0 %v11188_v44  ;;  %v11233_v44 = vld [vmem:[#allocation19 + $0x55c] ss:$12 sps:$4 sm:$0xff]  }
 0xadc   :  { %7786 = vmatmul.mubr.bf16.vlgmr.msra.gmra.mrb[48].mxu0 %v12500_v63  ;;  %v3713_v63 = vrot.slane %v3675_v38, %v12327_v36 }
 0xadd   :  { %7797 = vmatpush1.bf16.msra.mxu0 %v11186_v20  ;;  %7828 = vmatprep.mubr.bf16.mxu0 %v12504_v19  ;;  %v3721_v19 = vrot.slane %v3675_v38, %v12324_v35  ;;  %v11230_v20 = vld [vmem:[#allocation19 + $0x7a0] ss:$12 sps:$4 sm:$0xff]   ;;  %v11244_v38 = vld [vmem:[#allocation19 + $0x8a8] ss:$12 sps:$4 sm:$0xff]  }
 0xade   :  { %7798 = vmatprep.subr.bf16.mxu0 %v11193_v21  ;;  %v11234_v21 = vld [vmem:[#allocation19 + $0x878] ss:$12 sps:$4 sm:$0xff]  }
 0xae1   :  { %7799 = vmatpush1.bf16.msra.mxu0 %v11191_v22  ;;  %v11231_v22 = vld [vmem:[#allocation19 + $0x558] ss:$12 sps:$4 sm:$0xff]  }
 0xae2   :  { %7800 = vmatprep.subr.bf16.mxu0 %v11198_v26  ;;  %v11238_v26 = vld [vmem:[#allocation19 + $0x574] ss:$12 sps:$4 sm:$0xff]  }
 0xae5   :  { %7801 = vmatpush1.bf16.msra.mxu0 %v11196_v28  ;;  %v11235_v28 = vld [vmem:[#allocation19 + $0x7b8] ss:$12 sps:$4 sm:$0xff]  }
 0xae6   :  { %7802 = vmatprep.subr.bf16.mxu0 %v11203_v32  ;;  %v11239_v32 = vld [vmem:[#allocation19 + $0x890] ss:$12 sps:$4 sm:$0xff]  }
 0xae9   :  { %7803 = vmatpush1.bf16.msra.mxu0 %v11201_v33  ;;  %v11236_v33 = vld [vmem:[#allocation19 + $0x570] ss:$12 sps:$4 sm:$0xff]  }
 0xaea   :  { %7804 = vmatprep.subr.bf16.mxu0 %v11208_v14  ;;  %v11243_v14 = vld [vmem:[#allocation19 + $0x58c] ss:$12 sps:$4 sm:$0xff]  }
 0xaed   :  { %7805 = vmatpush1.bf16.msra.mxu0 %v11206_v37  ;;  %v11240_v37 = vld [vmem:[#allocation19 + $0x7d0] ss:$12 sps:$4 sm:$0xff]  }
 0xaee   :  { %7806 = vmatprep.subr.bf16.mxu0 %v11213_v39  ;;  %v11241_v39 = vld [vmem:[#allocation19 + $0x588] ss:$12 sps:$4 sm:$0xff]  }
 0xaef   :  { %v5599_v42 = vpop.f32.mrb[44].mxu0 }
 0xaf0   :  { %v10028_v46 = vadd.f32 %v5599_v42, %v3713_v63  ;;  %v5685_v43 = vpop.f32.mrb[32].mxu1  ;;  %v5601_v48 = vpop.f32.mrb[45].mxu0  ;;  %v11254_v42 = vld [vmem:[#allocation19 + $0x8d8] ss:$12 sps:$4 sm:$0xff]  }
 0xaf1   :  { %v10032_v53 = vadd.f32 %v5685_v43, %v3721_v19  ;;  %v10029_v59 = vadd.f32 %v5601_v48, %v3717_v40  ;;  %v5687_v54 = vpop.f32.mrb[33].mxu1  ;;  %v5603_v47 = vpop.f32.mrb[46].mxu0  ;;  %7807 = vmatpush1.bf16.msra.mxu0 %v11211_v41  ;;  %v11246_v41 = vld [vmem:[#allocation19 + $0x5a0] ss:$12 sps:$4 sm:$0xff]   ;;  %v11255_v48 = vld [vmem:[#allocation19 + $0x818] ss:$12 sps:$4 sm:$0xff]  }
 0xaf2   :  { %v10033_v56 = vadd.f32 %v5687_v54, %v3725_v58  ;;  %v10030_v27 = vadd.f32 %v5603_v47, %v3713_v63  ;;  %v5689_v60 = vpop.f32.mrb[34].mxu1  ;;  %v5605_v55 = vpop.f32.mrb[47].mxu0  ;;  %7808 = vmatprep.subr.bf16.mxu0 %v11218_v52  ;;  %v5702_v57 = vmax.f32 %v10028_v46, 0.0  ;;  %v11248_v63 = vld [vmem:[#allocation19 + $0x5a4] ss:$12 sps:$4 sm:$0xff]  }
 0xaf3   :  { %v10034_v34 = vadd.f32 %v5689_v60, %v3721_v19  ;;  %v10031_v49 = vadd.f32 %v5605_v55, %v3717_v40  ;;  %v5691_v30 = vpop.f32.mrb[35].mxu1  ;;  %v5704_v3 = vmax.f32 %v10032_v53, 0.0  ;;  %v5703_v4 = vmax.f32 %v10029_v59, 0.0  ;;  %v11245_v19 = vld [vmem:[#allocation19 + $0x7e8] ss:$12 sps:$4 sm:$0xff]  }
 0xaf4   :  { %v5714_v1 = vmax.f32 %v10030_v27, 0.0  ;;  %v10035_v23 = vadd.f32 %v5691_v30, %v3725_v58  ;;  %v5705_v8 = vmax.f32 %v10033_v56, 0.0  ;;  %v11249_v40 = vld [vmem:[#allocation19 + $0x8c0] ss:$12 sps:$4 sm:$0xff]   ;;  %v11253_v58 = vld [vmem:[#allocation19 + $0x5bc] ss:$12 sps:$4 sm:$0xff]  }
 0xaf5   :  { %v5716_v5 = vmax.f32 %v10034_v34, 0.0  ;;  %v5715_v50 = vmax.f32 %v10031_v49, 0.0  ;;  %7809 = vmatpush1.bf16.msra.mxu0 %v11216_v51  ;;  %v11250_v52 = vld [vmem:[#allocation19 + $0x800] ss:$12 sps:$4 sm:$0xff]   ;;  %v11251_v46 = vld [vmem:[#allocation19 + $0x5b8] ss:$12 sps:$4 sm:$0xff]  }
 0xaf6   :  { %v12517_v9 = vpack.c.bf16 %v5714_v1, %v5702_v57  ;;  %v5717_v10 = vmax.f32 %v10035_v23, 0.0  ;;  %7810 = vmatprep.subr.bf16.mxu0 %v11223_v24  ;;  %v11258_v43 = vld [vmem:[#allocation19 + $0x5d4] ss:$12 sps:$4 sm:$0xff]   ;;  %v11259_v59 = vld [vmem:[#allocation19 + $0x8f0] ss:$12 sps:$4 sm:$0xff]  }
 0xaf7   :  { %v12519_v0 = vpack.c.bf16 %v5716_v5, %v5704_v3  ;;  %v12521_v12 = vpack.c.bf16 %v5715_v50, %v5703_v4  ;;  %v11256_v47 = vld [vmem:[#allocation19 + $0x5d0] ss:$12 sps:$4 sm:$0xff]   ;;  %v11263_v27 = vld [vmem:[#allocation19 + $0x5ec] ss:$12 sps:$4 sm:$0xff]   ;;  %v11261_v34 = vld [vmem:[#allocation19 + $0x5e8] ss:$12 sps:$4 sm:$0xff]  }
 0xaf8   :  { %v12523_v31 = vpack.c.bf16 %v5717_v10, %v5705_v8  ;;  %v11260_v55 = vld [vmem:[#allocation19 + $0x830] ss:$12 sps:$4 sm:$0xff]   ;;  %v11264_v30 = vld [vmem:[#allocation19 + $0x600] ss:$12 sps:$4 sm:$0xff]   ;;  %v11267_v1 = vld [vmem:[#allocation19 + $0x618] ss:$12 sps:$4 sm:$0xff]  }
 0xaf9   :  { %7811 = vmatpush1.bf16.msra.mxu0 %v11221_v6  ;;  %8121 = vmatprep.mubr.bf16.mxu1 %v12521_v12  ;;  %v11266_v49 = vld [vmem:[#allocation19 + $0x604] ss:$12 sps:$4 sm:$0xff]   ;;  %v11269_v57 = vld [vmem:[#allocation19 + $0x61c] ss:$12 sps:$4 sm:$0xff]   ;;  %v11272_v23 = vld [vmem:[#allocation19 + $0x634] ss:$12 sps:$4 sm:$0xff]  }
 0xafa   :  { %8122 = vmatmul.mubr.bf16.vlgmr.msra.gmra.mrb[52].mxu1 %v12517_v9  ;;  %7812 = vmatprep.subr.bf16.mxu0 %v11228_v11  ;;  %v11270_v3 = vld [vmem:[#allocation19 + $0x630] ss:$12 sps:$4 sm:$0xff]   ;;  %v11275_v4 = vld [vmem:[#allocation19 + $0x64c] ss:$12 sps:$4 sm:$0xff]   ;;  %v11273_v5 = vld [vmem:[#allocation19 + $0x648] ss:$12 sps:$4 sm:$0xff]  }
 0xafb   :  { %9763 = vmatpush3.bf16.msra.mxu1 %v11225_v13  ;;  %8162 = vmatprep.mubr.bf16.mxu1 %v12523_v31  ;;  %v11278_v50 = vld [vmem:[#allocation19 + $0x664] ss:$12 sps:$4 sm:$0xff]   ;;  %v11276_v6 = vld [vmem:[#allocation19 + $0x660] ss:$12 sps:$4 sm:$0xff]   ;;  %v11281_v8 = vld [vmem:[#allocation19 + $0x67c] ss:$12 sps:$4 sm:$0xff]  }
 0xafc   :  { %9764 = vmatprep.subr.bf16.mxu1 %v11229_v15  ;;  %v12531_v10 = vld [vmem:[#allocation20] sm:$0x7] }
 0xafd   :  { %7813 = vmatpush1.bf16.msra.mxu0 %v11226_v17  ;;  %v6127_v11 = vrot.slane %v12531_v10, %v12324_v35  ;;  %v11282_v17 = vld [vmem:[#allocation19 + $0x690] ss:$12 sps:$4 sm:$0xff]  }
 0xafe   :  { %7814 = vmatprep.subr.bf16.mxu0 %v11233_v44 }
 0xaff   :  { %9765 = vmatpush3.bf16.msra.mxu1 %v11230_v20 }
 0xb00   :  { %9766 = vmatprep.subr.bf16.mxu1 %v11234_v21 }
 0xb01   :  { %7815 = vmatpush1.bf16.msra.mxu0 %v11231_v22  ;;  %v11287_v22 = vld [vmem:[#allocation19 + $0x6ac] ss:$12 sps:$4 sm:$0xff]  }
 0xb02   :  { %7816 = vmatprep.subr.bf16.mxu0 %v11238_v26 }
 0xb03   :  { %9767 = vmatpush3.bf16.msra.mxu1 %v11235_v28 }
 0xb04   :  { %9768 = vmatprep.subr.bf16.mxu1 %v11239_v32 }
 0xb05   :  { %7817 = vmatpush1.bf16.msra.mxu0 %v11236_v33 }
 0xb06   :  { %7818 = vmatprep.subr.bf16.mxu0 %v11243_v14  ;;  %v11285_v14 = vld [vmem:[#allocation19 + $0x6a8] ss:$12 sps:$4 sm:$0xff]  }
 0xb07   :  { %9769 = vmatpush3.bf16.msra.mxu1 %v11240_v37 }
 0xb08   :  { %9770 = vmatprep.subr.bf16.mxu1 %v11244_v38  ;;  %v11290_v38 = vld [vmem:[#allocation19 + $0x6c4] ss:$12 sps:$4 sm:$0xff]  }
 0xb09   :  { %7819 = vmatpush1.bf16.msra.mxu0 %v11241_v39  ;;  %v11288_v39 = vld [vmem:[#allocation19 + $0x6c0] ss:$12 sps:$4 sm:$0xff]  }
 0xb0a   :  { %7820 = vmatprep.subr.bf16.mxu0 %v11248_v63  ;;  %v11293_v63 = vld [vmem:[#allocation19 + $0x6dc] ss:$12 sps:$4 sm:$0xff]  }
 0xb0b   :  { %9771 = vmatpush3.bf16.msra.mxu1 %v11245_v19  ;;  %v11291_v19 = vld [vmem:[#allocation19 + $0x6d8] ss:$12 sps:$4 sm:$0xff]  }
 0xb0c   :  { %9772 = vmatprep.subr.bf16.mxu1 %v11249_v40  ;;  %v11296_v40 = vld [vmem:[#allocation19 + $0x6f4] ss:$12 sps:$4 sm:$0xff]  }
 0xb0d   :  { %7821 = vmatpush1.bf16.msra.mxu0 %v11246_v41  ;;  %v11294_v41 = vld [vmem:[#allocation19 + $0x6f0] ss:$12 sps:$4 sm:$0xff]  }
 0xb0e   :  { %7822 = vmatprep.subr.bf16.mxu0 %v11253_v58  ;;  %v11299_v58 = vld [vmem:[#allocation19 + $0x70c] ss:$12 sps:$4 sm:$0xff]  }
 0xb0f   :  { %9773 = vmatpush3.bf16.msra.mxu1 %v11250_v52  ;;  %v11297_v52 = vld [vmem:[#allocation19 + $0x708] ss:$12 sps:$4 sm:$0xff]  }
 0xb10   :  { %v9668_v53 = vpop.f32.mrb[36].mxu1  ;;  %9774 = vmatprep.subr.bf16.mxu1 %v11254_v42  ;;  %v11302_v42 = vld [vmem:[#allocation19 + $0x724] ss:$12 sps:$4 sm:$0xff]  }
 0xb11   :  { %v9669_v54 = vpop.f32.mrb[37].mxu1  ;;  %7823 = vmatpush1.bf16.msra.mxu0 %v11251_v46  ;;  %v11300_v46 = vld [vmem:[#allocation19 + $0x720] ss:$12 sps:$4 sm:$0xff]  }
 0xb12   :  { %v9670_v51 = vadd.f32 %v9669_v54, %v9668_v53  ;;  %v9671_v56 = vpop.f32.mrb[38].mxu1  ;;  %7824 = vmatprep.subr.bf16.mxu0 %v11258_v43  ;;  %v11305_v43 = vld [vmem:[#allocation19 + $0x73c] ss:$12 sps:$4 sm:$0xff]   ;;  %v11308_v53 = vld [vmem:[#allocation19 + $0x754] ss:$12 sps:$4 sm:$0xff]  }
 0xb13   :  { %v9672_v60 = vpop.f32.mrb[39].mxu1  ;;  %9775 = vmatpush3.bf16.msra.mxu1 %v11255_v48  ;;  %v11303_v48 = vld [vmem:[#allocation19 + $0x738] ss:$12 sps:$4 sm:$0xff]  }
 0xb14   :  { %v9673_v24 = vadd.f32 %v9672_v60, %v9671_v56  ;;  %9776 = vmatprep.subr.bf16.mxu1 %v11259_v59  ;;  %v7960_v44 = vadd.f32 %v9670_v51, %v6127_v11  ;;  %v11306_v59 = vld [vmem:[#allocation19 + $0x750] ss:$12 sps:$4 sm:$0xff]   ;;  %v11311_v54 = vld [vmem:[#allocation19 + $0x76c] ss:$12 sps:$4 sm:$0xff]  }
 0xb15   :  { %7825 = vmatpush1.bf16.msra.mxu0 %v11256_v47  ;;  %v11309_v47 = vld [vmem:[#allocation19 + $0x768] ss:$12 sps:$4 sm:$0xff]   ;;  %v11314_v51 = vld [vmem:[#allocation19 + $0x784] ss:$12 sps:$4 sm:$0xff]   ;;  %v11312_v56 = vld [vmem:[#allocation19 + $0x780] ss:$12 sps:$4 sm:$0xff]  }
 0xb16   :  { %7826 = vmatprep.subr.bf16.mxu0 %v11263_v27  ;;  %v7963_v28 = vadd.f32 %v9673_v24, %v6127_v11  ;;  %v11317_v27 = vld [vmem:[#allocation19 + $0x79c] ss:$12 sps:$4 sm:$0xff]   ;;  %v11315_v60 = vld [vmem:[#allocation19 + $0x798] ss:$12 sps:$4 sm:$0xff]  }
 0xb17   :  { %9777 = vmatpush3.bf16.msra.mxu1 %v11260_v55  ;;  %v11320_v55 = vld [vmem:[#allocation19 + $0x7b4] ss:$12 sps:$4 sm:$0xff]   ;;  %v11318_v24 = vld [vmem:[#allocation19 + $0x7b0] ss:$12 sps:$4 sm:$0xff]   ;;  %v11335_v11 = vld [vmem:[#allocation19 + $0x82c] ss:$12 sps:$4 sm:$0xff]  }
 0xb19   :  { %7827 = vmatpush1.bf16.msra.mxu0 %v11261_v34  ;;  %v11323_v34 = vld [vmem:[#allocation19 + $0x7cc] ss:$12 sps:$4 sm:$0xff]  }
 0xb1a   :  { %8163 = vmatmul.mubr.bf16.vlgmr.msra.gmra.mrb[56].mxu1 %v12519_v0  ;;  %7839 = vmatprep.subr.bf16.mxu0 %v11266_v49  ;;  %v11321_v49 = vld [vmem:[#allocation19 + $0x7c8] ss:$12 sps:$4 sm:$0xff]  }
 0xb1c   :  { %7829 = vmatmul.mubr.bf16.vlgmr.msra.gmra.mrb[48].mxu0 %v12502_v2  ;;  %v11279_v2 = vld [vmem:[#allocation19 + $0x678] ss:$12 sps:$4 sm:$0xff]  }
 0xb1d   :  { %7840 = vmatpush1.bf16.msra.mxu0 %v11264_v30  ;;  %7871 = vmatprep.mubr.bf16.mxu0 %v12521_v12  ;;  %v11284_v12 = vld [vmem:[#allocation19 + $0x694] ss:$12 sps:$4 sm:$0xff]   ;;  %v11326_v30 = vld [vmem:[#allocation19 + $0x7e4] ss:$12 sps:$4 sm:$0xff]  }
 0xb1e   :  { %7841 = vmatprep.subr.bf16.mxu0 %v11269_v57  ;;  %v11324_v57 = vld [vmem:[#allocation19 + $0x7e0] ss:$12 sps:$4 sm:$0xff]  }
 0xb21   :  { %7842 = vmatpush1.bf16.msra.mxu0 %v11267_v1  ;;  %v11329_v1 = vld [vmem:[#allocation19 + $0x7fc] ss:$12 sps:$4 sm:$0xff]  }
 0xb22   :  { %7843 = vmatprep.subr.bf16.mxu0 %v11272_v23  ;;  %v11327_v23 = vld [vmem:[#allocation19 + $0x7f8] ss:$12 sps:$4 sm:$0xff]  }
 0xb25   :  { %7844 = vmatpush1.bf16.msra.mxu0 %v11270_v3 }
 0xb26   :  { %7845 = vmatprep.subr.bf16.mxu0 %v11275_v4 }
 0xb29   :  { %7846 = vmatpush1.bf16.msra.mxu0 %v11273_v5 }
 0xb2a   :  { %7847 = vmatprep.subr.bf16.mxu0 %v11278_v50 }
 0xb2d   :  { %7848 = vmatpush1.bf16.msra.mxu0 %v11276_v6 }
 0xb2e   :  { %7849 = vmatprep.subr.bf16.mxu0 %v11281_v8 }
 0xb30   :  { %v9690_v13 = vpop.f32.mrb[40].mxu1 }
 0xb31   :  { %v9691_v15 = vpop.f32.mrb[41].mxu1  ;;  %7850 = vmatpush1.bf16.msra.mxu0 %v11279_v2  ;;  %v11330_v2 = vld [vmem:[#allocation19 + $0x810] ss:$12 sps:$4 sm:$0xff]  }
 0xb32   :  { %v9692_v20 = vadd.f32 %v9691_v15, %v9690_v13  ;;  %v9693_v21 = vpop.f32.mrb[42].mxu1  ;;  %7851 = vmatprep.subr.bf16.mxu0 %v11284_v12  ;;  %v11333_v13 = vld [vmem:[#allocation19 + $0x828] ss:$12 sps:$4 sm:$0xff]   ;;  %v11338_v15 = vld [vmem:[#allocation19 + $0x844] ss:$12 sps:$4 sm:$0xff]  }
 0xb33   :  { %v9694_v26 = vpop.f32.mrb[43].mxu1 }
 0xb34   :  { %v12535_v32 = vadd.f32 %v9692_v20, %v7960_v44  ;;  %v9695_v33 = vadd.f32 %v9694_v26, %v9693_v21  ;;  %v11341_v44 = vld [vmem:[#allocation19 + $0x85c] ss:$12 sps:$4 sm:$0xff]   ;;  %v11339_v20 = vld [vmem:[#allocation19 + $0x858] ss:$12 sps:$4 sm:$0xff]   ;;  %v11344_v21 = vld [vmem:[#allocation19 + $0x874] ss:$12 sps:$4 sm:$0xff]  }
 0xb35   :  { %7852 = vmatpush1.bf16.msra.mxu0 %v11282_v17  ;;  %v11336_v17 = vld [vmem:[#allocation19 + $0x840] ss:$12 sps:$4 sm:$0xff]  }
 0xb36   :  { %v12537_v37 = vadd.f32 %v9695_v33, %v7963_v28  ;;  %7853 = vmatprep.subr.bf16.mxu0 %v11287_v22  ;;  %v11342_v22 = vld [vmem:[#allocation19 + $0x870] ss:$12 sps:$4 sm:$0xff]   ;;  %v11347_v26 = vld [vmem:[#allocation19 + $0x88c] ss:$12 sps:$4 sm:$0xff]   ;;  %v11345_v28 = vld [vmem:[#allocation19 + $0x888] ss:$12 sps:$4 sm:$0xff]  }
 0xb37   :  { %v11348_v33 = vld [vmem:[#allocation19 + $0x8a0] ss:$12 sps:$4 sm:$0xff]  }
 0xb39   :  { %7854 = vmatpush1.bf16.msra.mxu0 %v11285_v14  ;;  %v11353_v14 = vld [vmem:[#allocation19 + $0x8bc] ss:$12 sps:$4 sm:$0xff]  }
 0xb3a   :  { %7855 = vmatprep.subr.bf16.mxu0 %v11290_v38  ;;  %v11351_v38 = vld [vmem:[#allocation19 + $0x8b8] ss:$12 sps:$4 sm:$0xff]  }
 0xb3d   :  { %7856 = vmatpush1.bf16.msra.mxu0 %v11288_v39 }
 0xb3e   :  { %7857 = vmatprep.subr.bf16.mxu0 %v11293_v63  ;;  %v11356_v63 = vld [vmem:[#allocation19 + $0x8d4] ss:$12 sps:$4 sm:$0xff]  }
 0xb41   :  { %7858 = vmatpush1.bf16.msra.mxu0 %v11291_v19 }
 0xb42   :  { %7859 = vmatprep.subr.bf16.mxu0 %v11296_v40 }
 0xb45   :  { %7860 = vmatpush1.bf16.msra.mxu0 %v11294_v41 }
 0xb46   :  { %7861 = vmatprep.subr.bf16.mxu0 %v11299_v58 }
 0xb49   :  { %7862 = vmatpush1.bf16.msra.mxu0 %v11297_v52 }
 0xb4a   :  { %7863 = vmatprep.subr.bf16.mxu0 %v11302_v42  ;;  %v11354_v42 = vld [vmem:[#allocation19 + $0x8d0] ss:$12 sps:$4 sm:$0xff]  }
 0xb4d   :  { %7864 = vmatpush1.bf16.msra.mxu0 %v11300_v46  ;;  %v11359_v46 = vld [vmem:[#allocation19 + $0x8ec] ss:$12 sps:$4 sm:$0xff]  }
 0xb4e   :  { %7865 = vmatprep.subr.bf16.mxu0 %v11305_v43 }
 0xb51   :  { %7866 = vmatpush1.bf16.msra.mxu0 %v11303_v48  ;;  %v11357_v48 = vld [vmem:[#allocation19 + $0x8e8] ss:$12 sps:$4 sm:$0xff]  }
 0xb52   :  { %7867 = vmatprep.subr.bf16.mxu0 %v11308_v53 }
 0xb55   :  { %7868 = vmatpush1.bf16.msra.mxu0 %v11306_v59 }
 0xb56   :  { %7869 = vmatprep.subr.bf16.mxu0 %v11311_v54 }
 0xb59   :  { %7870 = vmatpush1.bf16.msra.mxu0 %v11309_v47 }
 0xb5a   :  { %7882 = vmatprep.subr.bf16.mxu0 %v11314_v51 }
 0xb5c   :  { %7872 = vmatmul.mubr.bf16.vlgmr.msra.gmra.mrb[48].mxu0 %v12517_v9 }
 0xb5d   :  { %7883 = vmatpush1.bf16.msra.mxu0 %v11312_v56  ;;  %7914 = vmatprep.mubr.bf16.mxu0 %v12523_v31  ;;  %v11332_v31 = vld [vmem:[#allocation19 + $0x814] ss:$12 sps:$4 sm:$0xff]  }
 0xb5e   :  { %7884 = vmatprep.subr.bf16.mxu0 %v11317_v27 }
 0xb61   :  { %7885 = vmatpush1.bf16.msra.mxu0 %v11315_v60 }
 0xb62   :  { %7886 = vmatprep.subr.bf16.mxu0 %v11320_v55 }
 0xb65   :  { %7887 = vmatpush1.bf16.msra.mxu0 %v11318_v24 }
 0xb66   :  { %7888 = vmatprep.subr.bf16.mxu0 %v11323_v34 }
 0xb69   :  { %7889 = vmatpush1.bf16.msra.mxu0 %v11321_v49 }
 0xb6a   :  { %7890 = vmatprep.subr.bf16.mxu0 %v11326_v30 }
 0xb6d   :  { %7891 = vmatpush1.bf16.msra.mxu0 %v11324_v57  ;;  %v9712_v9 = vpop.f32.mrb[44].mxu1 }
 0xb6e   :  { %v9713_v3 = vpop.f32.mrb[45].mxu1  ;;  %7892 = vmatprep.subr.bf16.mxu0 %v11329_v1 }
 0xb6f   :  { %v9714_v4 = vadd.f32 %v9713_v3, %v9712_v9  ;;  %v9715_v5 = vpop.f32.mrb[46].mxu1 }
 0xb70   :  { %v9716_v50 = vpop.f32.mrb[47].mxu1 }
 0xb71   :  { %v8042_v6 = vadd.f32 %v9714_v4, %v12535_v32  ;;  %v9717_v8 = vadd.f32 %v9716_v50, %v9715_v5  ;;  %7893 = vmatpush1.bf16.msra.mxu0 %v11327_v23  ;;  %v11350_v32 = vld [vmem:[#allocation19 + $0x8a4] ss:$12 sps:$4 sm:$0xff]   ;;  %v6119_v23 = vrot.slane %v12531_v10, %v12327_v36 }
 0xb72   :  { %7894 = vmatprep.subr.bf16.mxu0 %v11332_v31 }
 0xb73   :  { %v8045_v12 = vadd.f32 %v9717_v8, %v12537_v37 }
 0xb75   :  { %7895 = vmatpush1.bf16.msra.mxu0 %v11330_v2 }
 0xb76   :  { %7896 = vmatprep.subr.bf16.mxu0 %v11335_v11 }
 0xb79   :  { %7897 = vmatpush1.bf16.msra.mxu0 %v11333_v13 }
 0xb7a   :  { %7898 = vmatprep.subr.bf16.mxu0 %v11338_v15 }
 0xb7d   :  { %7899 = vmatpush1.bf16.msra.mxu0 %v11336_v17 }
 0xb7e   :  { %7900 = vmatprep.subr.bf16.mxu0 %v11341_v44 }
 0xb81   :  { %7901 = vmatpush1.bf16.msra.mxu0 %v11339_v20 }
 0xb82   :  { %7902 = vmatprep.subr.bf16.mxu0 %v11344_v21 }
 0xb85   :  { %7903 = vmatpush1.bf16.msra.mxu0 %v11342_v22 }
 0xb86   :  { %7904 = vmatprep.subr.bf16.mxu0 %v11347_v26 }
 0xb89   :  { %7905 = vmatpush1.bf16.msra.mxu0 %v11345_v28 }
 0xb8a   :  { %7906 = vmatprep.subr.bf16.mxu0 %v11350_v32 }
 0xb8d   :  { %v9734_v37 = vpop.f32.mrb[48].mxu1  ;;  %7907 = vmatpush1.bf16.msra.mxu0 %v11348_v33 }
 0xb8e   :  { %v9735_v39 = vpop.f32.mrb[49].mxu1  ;;  %7908 = vmatprep.subr.bf16.mxu0 %v11353_v14 }
 0xb8f   :  { %v9736_v19 = vadd.f32 %v9735_v39, %v9734_v37  ;;  %v9737_v40 = vpop.f32.mrb[50].mxu1 }
 0xb90   :  { %v9738_v41 = vpop.f32.mrb[51].mxu1 }
 0xb91   :  { %v8083_v58 = vadd.f32 %v9736_v19, %v8042_v6  ;;  %v9739_v52 = vadd.f32 %v9738_v41, %v9737_v40  ;;  %7909 = vmatpush1.bf16.msra.mxu0 %v11351_v38 }
 0xb92   :  { %7910 = vmatprep.subr.bf16.mxu0 %v11356_v63 }
 0xb93   :  { %v8086_v43 = vadd.f32 %v9739_v52, %v8045_v12 }
 0xb95   :  { %7911 = vmatpush1.bf16.msra.mxu0 %v11354_v42 }
 0xb96   :  { %7912 = vmatprep.subr.bf16.mxu0 %v11359_v46 }
 0xb99   :  { %7913 = vmatpush1.bf16.msra.mxu0 %v11357_v48 }
 0xb9c   :  { %7915 = vmatmul.mubr.bf16.vlgmr.msra.gmra.mrb[48].mxu0 %v12519_v0  ;;  %v6123_v0 = vrot.slane %v12531_v10, %v12330_v29 }
 0xbcd   :  { %v9756_v53 = vpop.f32.mrb[52].mxu1 }
 0xbce   :  { %v9757_v59 = vpop.f32.mrb[53].mxu1 }
 0xbcf   :  { %v9758_v54 = vadd.f32 %v9757_v59, %v9756_v53  ;;  %v9759_v47 = vpop.f32.mrb[54].mxu1 }
 0xbd0   :  { %v9760_v51 = vpop.f32.mrb[55].mxu1 }
 0xbd1   :  { %v8124_v56 = vadd.f32 %v9758_v54, %v8083_v58  ;;  %v9761_v27 = vadd.f32 %v9760_v51, %v9759_v47  ;;  %v8177_v54 = vld [vmem:[#allocation22] sm:$0x7]  ;;  %v8178_v47 = vld [vmem:[#allocation23] sm:$0x7] }
 0xbd2   :  { %v8225_v51 = vrot.slane %v8177_v54, %v12327_v36 }
 0xbd3   :  { %v8127_v60 = vadd.f32 %v9761_v27, %v8086_v43  ;;  %v8233_v27 = vrot.slane %v8177_v54, %v12324_v35 }
 0xbed   :  { %v9778_v55 = vpop.f32.mrb[56].mxu1 }
 0xbee   :  { %v9779_v24 = vpop.f32.mrb[57].mxu1 }
 0xbef   :  { %v9780_v34 = vadd.f32 %v9779_v24, %v9778_v55  ;;  %v9781_v49 = vpop.f32.mrb[58].mxu1  ;;  %v8247_v55 = vrot.slane %v8178_v47, %v12327_v36 }
 0xbf0   :  { %v9782_v30 = vpop.f32.mrb[59].mxu1 }
 0xbf1   :  { %v8165_v57 = vadd.f32 %v9780_v34, %v8124_v56  ;;  %v9783_v1 = vadd.f32 %v9782_v30, %v9781_v49  ;;  %v8229_v56 = vrot.slane %v8177_v54, %v12330_v29  ;;  %v8251_v30 = vrot.slane %v8178_v47, %v12330_v29  ;;  %v11368_v54 = vld [vmem:[#allocation28 + $0x60] sm:$0xff]  }
 0xbf3   :  { %v8168_v9 = vadd.f32 %v9783_v1, %v8127_v60  ;;  %v8173_v17 = vadd.f32 %v8165_v57, %v12445_v45 }
 0xbf5   :  { %v8176_v21 = vadd.f32 %v8168_v9, %v12443_v16 }
 0xc6f   :  { %v7916_v3 = vpop.f32.mrb[48].mxu0 }
 0xc70   :  { %v10036_v31 = vadd.f32 %v7916_v3, %v6119_v23  ;;  %v7918_v4 = vpop.f32.mrb[49].mxu0 }
 0xc71   :  { %v10037_v5 = vadd.f32 %v7918_v4, %v6123_v0  ;;  %v7920_v50 = vpop.f32.mrb[50].mxu0 }
 0xc72   :  { %v8171_v6 = vadd.f32 %v10036_v31, %v12417_v61  ;;  %v10038_v8 = vadd.f32 %v7920_v50, %v6119_v23  ;;  %v7922_v2 = vpop.f32.mrb[51].mxu0  ;;  %v8255_v23 = vrot.slane %v8178_v47, %v12324_v35  ;;  %v11369_v47 = vld [vmem:[#allocation28 + $0x20] sm:$0xff]  }
 0xc73   :  { %v8172_v11 = vadd.f32 %v10037_v5, %v12413_v18  ;;  %v10039_v12 = vadd.f32 %v7922_v2, %v6123_v0 }
 0xc74   :  { %v8174_v13 = vadd.f32 %v10038_v8, %v12419_v62 }
 0xc75   :  { %v8175_v15 = vadd.f32 %v10039_v12, %v12415_v25  ;;  %v8179_v44 = vadd.f32 %v8172_v11, %v8171_v6 }
 0xc77   :  { %v8180_v10 = vadd.f32 %v8179_v44, %v8173_v17  ;;  %v8183_v20 = vadd.f32 %v8175_v15, %v8174_v13 }
 0xc79   :  { %8181 = vadd.xlane.f32.xlu1 %v8180_v10  ;;  %v8184_v22 = vadd.f32 %v8183_v20, %v8176_v21 }
 0xc7d   :  { %8185 = vadd.xlane.f32.xlu1 %v8184_v22  ;;  %v11361_v22 = vld [vmem:[#allocation28] sm:$0xff]  }
 0xd06   :  { %v8182_v61 = vpop.xlane.xlu1 %8181 }
 0xd07   :  { %v8187_v26 = vmul.f32 0.0026041667, %v8182_v61  ;;  %v11362_v61 = vld [vmem:[#allocation28 + $0x48] sm:$0xff]  }
 0xd09   :  { %v8189_v28 = vsub.f32 %v8171_v6, %v8187_v26  ;;  %v8190_v32 = vsub.f32 %v8172_v11, %v8187_v26  ;;  %v8191_v18 = vsub.f32 %v8173_v17, %v8187_v26 }
 0xd0a   :  { %v8186_v33 = vpop.xlane.xlu1 %8185 }
 0xd0b   :  { %v8188_v14 = vmul.f32 0.0026041667, %v8186_v33  ;;  %v8195_v62 = vmul.f32 %v8189_v28, %v8189_v28  ;;  %v8196_v37 = vmul.f32 %v8190_v32, %v8190_v32  ;;  %v8197_v25 = vmul.f32 %v8191_v18, %v8191_v18 }
 0xd0d   :  { %v8192_v38 = vsub.f32 %v8174_v13, %v8188_v14  ;;  %v8193_v45 = vsub.f32 %v8175_v15, %v8188_v14  ;;  %v8194_v39 = vsub.f32 %v8176_v21, %v8188_v14  ;;  %v8201_v63 = vadd.f32 %v8196_v37, %v8195_v62  ;;  %v11360_v21 = vld [vmem:[#allocation28 + $0x40] sm:$0xff]  }
 0xd0e   :  { %9784 = vmatprep.subr.bf16.mxu1 %v11360_v21 }
 0xd0f   :  { %v8202_v19 = vadd.f32 %v8201_v63, %v8197_v25  ;;  %v8198_v40 = vmul.f32 %v8192_v38, %v8192_v38  ;;  %v8199_v41 = vmul.f32 %v8193_v45, %v8193_v45  ;;  %v8200_v16 = vmul.f32 %v8194_v39, %v8194_v39  ;;  %9785 = vmatpush3.bf16.msra.mxu1 %v11361_v22 }
 0xd10   :  { %9786 = vmatprep.subr.bf16.mxu1 %v11362_v61 }
 0xd11   :  { %8203 = vadd.xlane.f32.xlu1 %v8202_v19  ;;  %v8205_v58 = vadd.f32 %v8199_v41, %v8198_v40 }
 0xd13   :  { %v8206_v52 = vadd.f32 %v8205_v58, %v8200_v16 }
 0xd15   :  { %8207 = vadd.xlane.f32.xlu0 %v8206_v52 }
 0xd9e   :  { %v8204_v42 = vpop.xlane.xlu1 %8203 }
 0xd9f   :  { %v8209_v46 = vmul.f32 0.0026041667, %v8204_v42 }
 0xda1   :  { %v8211_v43 = vadd.f32 1e-05, %v8209_v46  ;;  %v11363_v46 = vld [vmem:[#allocation28 + $0x8] sm:$0xff]  }
 0xda2   :  { %v8208_v48 = vpop.xlane.xlu0 %8207  ;;  %9787 = vmatpush3.bf16.msra.mxu1 %v11363_v46 }
 0xda3   :  { %11396 = vrsqrt.f32 %v8211_v43  ;;  %v8210_v53 = vmul.f32 0.0026041667, %v8208_v48  ;;  %v11364_v43 = vld [vmem:[#allocation28 + $0x50] sm:$0xff]  }
 0xda4   :  { %v11365_v48 = vld [vmem:[#allocation28 + $0x10] sm:$0xff]   ;;  %9788 = vmatprep.subr.bf16.mxu1 %v11364_v43 }
 0xda5   :  { %v8212_v59 = vadd.f32 1e-05, %v8210_v53  ;;  %v11366_v53 = vld [vmem:[#allocation28 + $0x58] sm:$0xff]  }
 0xda6   :  { %9789 = vmatpush3.bf16.msra.mxu1 %v11365_v48  ;;  %v9539_v48 = vld [vmem:[#allocation29] ss:$0 sm:$0xff] }
 0xda7   :  { %11398 = vrsqrt.f32 %v8212_v59  ;;  %v11367_v59 = vld [vmem:[#allocation28 + $0x18] sm:$0xff]   ;;  %9790 = vmatprep.subr.bf16.mxu1 %v11366_v53 }
 0xdaa   :  { %9791 = vmatpush3.bf16.msra.mxu1 %v11367_v59 }
 0xdab   :  { %9792 = vmatprep.subr.bf16.mxu1 %v11368_v54 }
 0xdad   :  { %v11397_v60 = vpop.eup %11396 }
 0xdae   :  { %v8215_v24 = vmul.f32 %v11397_v60, %v8189_v28  ;;  %v8216_v34 = vmul.f32 %v11397_v60, %v8190_v32  ;;  %v8217_v49 = vmul.f32 %v11397_v60, %v8191_v18  ;;  %9793 = vmatpush3.bf16.msra.mxu1 %v11369_v47  ;;  %v11373_v60 = vld [vmem:[#allocation28 + $0x30] sm:$0xff]  }
 0xdb0   :  { %v8237_v57 = vmul.f32 %v8225_v51, %v8215_v24  ;;  %v8238_v1 = vmul.f32 %v8229_v56, %v8216_v34  ;;  %v8239_v9 = vmul.f32 %v8233_v27, %v8217_v49  ;;  %v11375_v24 = vld [vmem:[#allocation28 + $0x38] sm:$0xff]  }
 0xdb1   :  { %v11399_v0 = vpop.eup %11398 }
 0xdb2   :  { %v8259_v3 = vadd.f32 %v8247_v55, %v8237_v57  ;;  %v8260_v31 = vadd.f32 %v8251_v30, %v8238_v1  ;;  %v8218_v4 = vmul.f32 %v11399_v0, %v8192_v38  ;;  %v8219_v5 = vmul.f32 %v11399_v0, %v8193_v45 }
 0xdb3   :  { %v8220_v50 = vmul.f32 %v11399_v0, %v8194_v39  ;;  %v8261_v6 = vadd.f32 %v8255_v23, %v8239_v9 }
 0xdb4   :  { %v8267_v8 = vadd.f32 %v8260_v31, %v8259_v3  ;;  %v8240_v2 = vmul.f32 %v8225_v51, %v8218_v4  ;;  %v8241_v11 = vmul.f32 %v8229_v56, %v8219_v5  ;;  %v11370_v51 = vld [vmem:[#allocation28 + $0x68] sm:$0xff]  }
 0xdb5   :  { %v8242_v12 = vmul.f32 %v8233_v27, %v8220_v50  ;;  %v11371_v56 = vld [vmem:[#allocation28 + $0x28] sm:$0xff]   ;;  %9794 = vmatprep.subr.bf16.mxu1 %v11370_v51  ;;  %v11372_v27 = vld [vmem:[#allocation28 + $0x70] sm:$0xff]  }
 0xdb6   :  { %v8268_v13 = vadd.f32 %v8267_v8, %v8261_v6  ;;  %v8262_v15 = vadd.f32 %v8247_v55, %v8240_v2  ;;  %v8263_v17 = vadd.f32 %v8251_v30, %v8241_v11  ;;  %9795 = vmatpush3.bf16.msra.mxu1 %v11371_v56  ;;  %v11374_v55 = vld [vmem:[#allocation28 + $0x78] sm:$0xff]  }
 0xdb7   :  { %v8264_v44 = vadd.f32 %v8255_v23, %v8242_v12  ;;  %9796 = vmatprep.subr.bf16.mxu1 %v11372_v27  ;;  %v8265_v23 = vld [vmem:[#allocation25] sm:$0x7] }
 0xdb8   :  { %8269 = vadd.xlane.f32.xlu1 %v8268_v13  ;;  %v8271_v10 = vadd.f32 %v8263_v17, %v8262_v15  ;;  %v8317_v4 = vrot.slane %v8265_v23, %v12330_v29  ;;  %v8313_v50 = vrot.slane %v8265_v23, %v12327_v36 }
 0xdba   :  { %v8272_v20 = vadd.f32 %v8271_v10, %v8264_v44  ;;  %9797 = vmatpush3.bf16.msra.mxu1 %v11373_v60 }
 0xdbb   :  { %9798 = vmatprep.subr.bf16.mxu1 %v11374_v55 }
 0xdbc   :  { %8273 = vadd.xlane.f32.xlu0 %v8272_v20 }
 0xdbe   :  { %9799 = vmatpush3.bf16.msra.mxu1 %v11375_v24 }
 0xdbf   :  { %9904 = vmatprep.subr.bf16.mxu1 %v11875_v7 }
 0xe45   :  { %v8270_v26 = vpop.xlane.xlu1 %8269 }
 0xe46   :  { %v8275_v28 = vmul.f32 0.0026041667, %v8270_v26 }
 0xe48   :  { %v8277_v32 = vsub.f32 %v8259_v3, %v8275_v28  ;;  %v8278_v18 = vsub.f32 %v8260_v31, %v8275_v28  ;;  %v12560_v33 = vsub.f32 %v8261_v6, %v8275_v28  ;;  %v8266_v3 = vld [vmem:[#allocation26] sm:$0x7]  ;;  %v11376_v28 = vld [vmem:[#allocation28 + $0x80] sm:$0xff]  }
 0xe49   :  { %v8274_v14 = vpop.xlane.xlu0 %8273  ;;  %v8339_v8 = vrot.slane %v8266_v3, %v12330_v29  ;;  %v8335_v2 = vrot.slane %v8266_v3, %v12327_v36  ;;  %v11378_v36 = vld [vmem:[#allocation28 + $0x90] sm:$0xff]   ;;  %v11379_v29 = vld [vmem:[#allocation28 + $0x98] sm:$0xff]  }
 0xe4a   :  { %v8283_v62 = vmul.f32 %v8277_v32, %v8277_v32  ;;  %v8284_v37 = vmul.f32 %v8278_v18, %v8278_v18  ;;  %v8276_v25 = vmul.f32 0.0026041667, %v8274_v14  ;;  %v8285_v38 = vmul.f32 %v12560_v33, %v12560_v33  ;;  %v11381_v14 = vld [vmem:[#allocation28 + $0xa8] sm:$0xff]  }
 0xe4c   :  { %v8289_v45 = vadd.f32 %v8284_v37, %v8283_v62  ;;  %v8280_v39 = vsub.f32 %v8262_v15, %v8276_v25  ;;  %v8281_v63 = vsub.f32 %v8263_v17, %v8276_v25  ;;  %v12564_v19 = vsub.f32 %v8264_v44, %v8276_v25 }
 0xe4d   :  { %v8321_v25 = vrot.slane %v8265_v23, %v12324_v35 }
 0xe4e   :  { %v8290_v40 = vadd.f32 %v8289_v45, %v8285_v38  ;;  %v8286_v41 = vmul.f32 %v8280_v39, %v8280_v39  ;;  %v8287_v16 = vmul.f32 %v8281_v63, %v8281_v63  ;;  %v8288_v58 = vmul.f32 %v12564_v19, %v12564_v19  ;;  %v11382_v38 = vld [vmem:[#allocation28 + $0xb0] sm:$0xff]  }
 0xe50   :  { %8291 = vadd.xlane.f32.xlu1 %v8290_v40  ;;  %v8293_v52 = vadd.f32 %v8287_v16, %v8286_v41  ;;  %v11383_v40 = vld [vmem:[#allocation28 + $0xb8] sm:$0xff]  }
 0xe52   :  { %v8294_v42 = vadd.f32 %v8293_v52, %v8288_v58 }
 0xe54   :  { %8295 = vadd.xlane.f32.xlu0 %v8294_v42 }
 0xedd   :  { %v8292_v34 = vpop.xlane.xlu1 %8291 }
 0xede   :  { %v8297_v49 = vmul.f32 0.0026041667, %v8292_v34 }
 0xee0   :  { %v8299_v30 = vadd.f32 1e-05, %v8297_v49 }
 0xee1   :  { %v8296_v57 = vpop.xlane.xlu0 %8295 }
 0xee2   :  { %11400 = vrsqrt.f32 %v8299_v30  ;;  %v8298_v1 = vmul.f32 0.0026041667, %v8296_v57 }
 0xee4   :  { %v8300_v9 = vadd.f32 1e-05, %v8298_v1 }
 0xee6   :  { %11402 = vrsqrt.f32 %v8300_v9 }
 0xeec   :  { %v11401_v0 = vpop.eup %11400 }
 0xeed   :  { %v8304_v31 = vmul.f32 %v11401_v0, %v8278_v18  ;;  %v8303_v5 = vmul.f32 %v11401_v0, %v8277_v32  ;;  %v11377_v32 = vld [vmem:[#allocation28 + $0x88] sm:$0xff]   ;;  %v11380_v18 = vld [vmem:[#allocation28 + $0xa0] sm:$0xff]   ;;  %v8305_v37 = vmul.f32 %v11401_v0, %v12560_v33 }
 0xeef   :  { %v8326_v12 = vmul.f32 %v8317_v4, %v8304_v31  ;;  %v8325_v15 = vmul.f32 %v8313_v50, %v8303_v5 }
 0xef0   :  { %v11403_v6 = vpop.eup %11402 }
 0xef1   :  { %v8307_v11 = vmul.f32 %v11403_v6, %v8281_v63  ;;  %v8306_v13 = vmul.f32 %v11403_v6, %v8280_v39  ;;  %v8348_v10 = vadd.f32 %v8339_v8, %v8326_v12  ;;  %v8347_v21 = vadd.f32 %v8335_v2, %v8325_v15 }
 0xef2   :  { %v8308_v62 = vmul.f32 %v11403_v6, %v12564_v19  ;;  %v8327_v39 = vmul.f32 %v8321_v25, %v8305_v37  ;;  %v8343_v63 = vrot.slane %v8266_v3, %v12324_v35 }
 0xef3   :  { %v8329_v17 = vmul.f32 %v8317_v4, %v8307_v11  ;;  %v8328_v44 = vmul.f32 %v8313_v50, %v8306_v13 }
 0xef4   :  { %v8330_v45 = vmul.f32 %v8321_v25, %v8308_v62  ;;  %v8349_v16 = vadd.f32 %v8343_v63, %v8327_v39 }
 0xef5   :  { %v8351_v20 = vadd.f32 %v8339_v8, %v8329_v17  ;;  %v8350_v22 = vadd.f32 %v8335_v2, %v8328_v44 }
 0xef6   :  { %v8352_v41 = vadd.f32 %v8343_v63, %v8330_v45 }
 0xef7   :  { %v8354_v61 = vpack.c.bf16 %v8351_v20, %v8348_v10  ;;  %v8353_v26 = vpack.c.bf16 %v8350_v22, %v8347_v21 }
 0xef8   :  { %v8355_v19 = vpack.c.bf16 %v8352_v41, %v8349_v16 }
 0xef9   :  { %8587 = vmatprep.mubr.bf16.mxu1 %v8354_v61 }
 0xefa   :  { %8588 = vmatmul.mubr.bf16.vlgmr.msra.gmra.mrb[60].mxu1 %v8353_v26 }
 0xefb   :  { %9905 = vmatpush3.bf16.msra.mxu1 %v11376_v28  ;;  %9920 = vmatprep.mubr.msk.bf16.mxu1 %vm11877_vm2, %v11875_v7 }
 0xefc   :  { %9906 = vmatprep.subr.bf16.mxu1 %v11875_v7 }
 0xeff   :  { %9907 = vmatpush3.bf16.msra.mxu1 %v11377_v32 }
 0xf00   :  { %9908 = vmatprep.subr.bf16.mxu1 %v11875_v7 }
 0xf03   :  { %9909 = vmatpush3.bf16.msra.mxu1 %v11378_v36 }
 0xf04   :  { %9910 = vmatprep.subr.bf16.mxu1 %v11875_v7 }
 0xf07   :  { %9911 = vmatpush3.bf16.msra.mxu1 %v11379_v29 }
 0xf08   :  { %9912 = vmatprep.subr.bf16.mxu1 %v11875_v7 }
 0xf0b   :  { %9913 = vmatpush3.bf16.msra.mxu1 %v11380_v18 }
 0xf0c   :  { %9914 = vmatprep.subr.bf16.mxu1 %v11875_v7 }
 0xf0f   :  { %9915 = vmatpush3.bf16.msra.mxu1 %v11381_v14 }
 0xf10   :  { %9916 = vmatprep.subr.bf16.mxu1 %v11875_v7 }
 0xf13   :  { %9917 = vmatpush3.bf16.msra.mxu1 %v11382_v38 }
 0xf14   :  { %9918 = vmatprep.subr.bf16.mxu1 %v11875_v7 }
 0xf17   :  { %9919 = vmatpush3.bf16.msra.mxu1 %v11383_v40 }
 0xf1a   :  { %9921 = vmatmul.mubr.bf16.vlgmr.msra.gmra.mrb[64].mxu1 %v8355_v19 }
 0xfcd   :  { %v9800_v33 = vpop.f32.mrb[60].mxu1 }
 0xfce   :  { %v9801_v58 = vpop.f32.mrb[61].mxu1 }
 0xfcf   :  { %v9802_v52 = vadd.f32 %v9801_v58, %v9800_v33  ;;  %v9803_v42 = vpop.f32.mrb[62].mxu1 }
 0xfd0   :  { %v9804_v46 = vpop.f32.mrb[63].mxu1 }
 0xfd1   :  { %v9805_v43 = vadd.f32 %v9804_v46, %v9803_v42  ;;  %v8590_v53 = vadd.f32 %v9802_v52, %v9539_v48 }
 0xfd3   :  { %v8593_v47 = vadd.f32 %v9805_v43, %v9539_v48 }
 0xfed   :  { %v8630_v59 = vpop.f32.mrb[64].mxu1 }
 0xfee   :  { %v8631_v35 = vadd.f32 %v8630_v59, %v8590_v53  ;;  %v9922_v54 = vpop.f32.mrb[65].mxu1 }
 0xfef   :  { %v8633_v7 = vpop.f32.mrb[66].mxu1 }
 0xff0   :  { %8637 = vst [vmem:[#allocation31] sm:$0xff] %v8631_v35  ;;  %v8634_v51 = vadd.f32 %v8633_v7, %v8593_v47  ;;  %v9923_v56 = vpop.f32.mrb[67].mxu1 }
 0xff2   :  { %8638 = vst [vmem:[#allocation31 + $0x8] sm:$0xff] %v8634_v51 }
 0xff3   :  { %11811 = shalt.err (!%p11808_p8)
}
 0xff4   :  { %s12639_s12 = sld [smem:[#allocation47_spill]] }
 0xffa   :  { %s11812_s21 = scalar_lea.hbm %s12639_s12, 256 }
 0xffb   :  { %p11813_p9 = scmp.ne.s32.totalorder %s12639_s12, %s11812_s21  ;;  %p11816_p10 = scmp.lt.u32.totalorder %s11812_s21, %s12639_s12 }
 0xffd   :  { %p11818_p11 = pnand %p11816_p10, %p11813_p9 }
 0xfff   :  { %11821 = shalt.err (!%p11818_p11)
}
0x1000   :  { %8650 = dma.vmem_to_hbm [thread:$0]  %s8645_s8, 256, %s12639_s12, [#allocation4], %s11858_s24, %s11858_s24, %s11859_s3  }
0x1001   :  { %11842 = dma.done.wait [#allocation4], 256  }
0x1002   :  { %11843 = vsyncadd [#allocation4], 4294967040 }
0x1003   :  { %8654 = vsyncpa [#allocation3], 1 }
0x1004   :  { %8655 = vsyncpa [#allocation6], 1 }
0x1005   :  { %8656 = vsyncpa [#allocation9], 1 }
0x1006   :  { %8657 = vsyncpa [#allocation12], 1 }
0x1007   :  { %8658 = vsyncpa [#allocation15], 1 }
0x1008   :  { %8659 = vsyncpa [#allocation18], 1 }
0x1009   :  { %8660 = vsyncpa [#allocation21], 1 }
0x100a   :  { %8661 = vsyncpa [#allocation24], 1 }
0x100b   :  { %8662 = vsyncpa [#allocation27], 1 }
0x100c   :  { %8663 = vsyncpa [#allocation30], 1 }
0x100d   :  { %8664 = vsyncpa [#allocation4], 1 }

</bundles_post_ra>
